<compile_context>
chip_gen: v7x
topology: tpu7x:2x2x1
jax: 0.10.0
libtpu: 0.0.40
codegen_flags: <defaults>
</compile_context>

<pallas_src>
import math
import functools

import jax
import jax.numpy as jnp
from jax import lax
from jax.experimental import pallas as pl
from jax.experimental.pallas import tpu as pltpu

# ----------------------------- configuration (small demo config) -------------------
D_MODEL = 32
NHEAD = 4
HEAD_DIM = D_MODEL // NHEAD
NUM_ENC_LAYERS = 2
NUM_DEC_LAYERS = 2
DIM_FF = 64            # nn.Transformer default is 2048; scaled down with d_model
NUM_QUERIES = 5
LN_EPS = 1e-5
NEG_INF = -1e9         # large finite negative: robust even if a whole row is masked
SLAB_WIDTH = 128       # lane width: every packed parameter block padded to 128 cols

_VMEM_SPEC = pl.BlockSpec(memory_space=pltpu.MemorySpace.VMEM)


# ------------------------------ fused forward kernel -------------------------------
def _fused_forward_kernel(slab_ref, src_ref, kp_ref, out_ref, *,
                          treedef, index, bs, seq, nq):
    f32 = jnp.float32

    # Recover every parameter from the single VMEM slab via static window loads.
    leaves = [slab_ref[off:off + r, 0:c] for (off, r, c) in index]
    p = jax.tree_util.tree_unflatten(treedef, leaves)

    def layer_norm(x, g, b):
        mu = jnp.mean(x, axis=-1, keepdims=True)
        var = jnp.mean(jnp.square(x - mu), axis=-1, keepdims=True)
        return (x - mu) * lax.rsqrt(var + LN_EPS) * g + b

    def softmax(s):
        m = jnp.max(s, axis=-1, keepdims=True)
        e = jnp.exp(s - m)
        return e / jnp.sum(e, axis=-1, keepdims=True)

    def mha_core(q, k, v, bias, wo, bo):
        # Per-head attention; output projection folded per head
        # (o @ Wo == sum_h o_h @ Wo_h) so the running result stays lane-dense at D.
        acc = None
        for h in range(NHEAD):
            sl = slice(h * HEAD_DIM, (h + 1) * HEAD_DIM)
            # scores = q_h @ k_h^T  (1/sqrt(dh) already folded into Wq/bq)
            s = lax.dot_general(q[:, sl], k[:, sl], (((1,), (1,)), ((), ())),
                                preferred_element_type=f32) + bias
            o_h = jnp.dot(softmax(s), v[:, sl], preferred_element_type=f32)   # (Lq, dh)
            contrib = jnp.dot(o_h, wo[sl, :], preferred_element_type=f32)     # (Lq, D)
            acc = contrib if acc is None else acc + contrib
        return acc + bo

    def self_attention(x, bias, a):
        qkv = jnp.dot(x, a["qkv_w"], preferred_element_type=f32) + a["qkv_b"]
        return mha_core(qkv[:, :D_MODEL], qkv[:, D_MODEL:2 * D_MODEL],
                        qkv[:, 2 * D_MODEL:], bias, a["wo"], a["bo"])

    def cross_attention(xq, xkv, bias, a):
        q = jnp.dot(xq, a["q_w"], preferred_element_type=f32) + a["q_b"]
        kv = jnp.dot(xkv, a["kv_w"], preferred_element_type=f32) + a["kv_b"]
        return mha_core(q, kv[:, :D_MODEL], kv[:, D_MODEL:], bias, a["wo"], a["bo"])

    def ffn(x, lp):
        h = jnp.maximum(
            jnp.dot(x, lp["lin1_w"], preferred_element_type=f32) + lp["lin1_b"], 0.0)
        return jnp.dot(h, lp["lin2_w"], preferred_element_type=f32) + lp["lin2_b"]

    # Block-diagonal additive bias restricting attention to same-batch tokens.
    # Built in-kernel from 2-D iota (no extra DMA'd constants).
    def block_bias(rows_per_b, cols_per_b):
        n_rows, n_cols = bs * rows_per_b, bs * cols_per_b
        r = lax.broadcasted_iota(jnp.int32, (n_rows, n_cols), 0).astype(f32)
        c = lax.broadcasted_iota(jnp.int32, (n_rows, n_cols), 1).astype(f32)
        rb = jnp.floor(r * (1.0 / rows_per_b))
        cb = jnp.floor(c * (1.0 / cols_per_b))
        return jnp.where(rb == cb, 0.0, NEG_INF)

    enc_bias = block_bias(seq, seq) + kp_ref[...]   # + key-padding bias over columns
    dec_self_bias = block_bias(nq, nq)
    cross_bias = block_bias(nq, seq)

    # ---------------- encoder ----------------
    x = src_ref[...]
    for lp in p["encoder"]:
        x = layer_norm(x + self_attention(x, enc_bias, lp["attn"]),
                       lp["ln1_g"], lp["ln1_b"])
        x = layer_norm(x + ffn(x, lp), lp["ln2_g"], lp["ln2_b"])
    mem = layer_norm(x, p["enc_norm_g"], p["enc_norm_b"])

    # ---------------- decoder ----------------
    y = jnp.concatenate([p["query_embed"]] * bs, axis=0)      # tgt, batch-major (B*Q, D)
    for lp in p["decoder"]:
        y = layer_norm(y + self_attention(y, dec_self_bias, lp["self_attn"]),
                       lp["ln1_g"], lp["ln1_b"])
        y = layer_norm(y + cross_attention(y, mem, cross_bias, lp["cross_attn"]),
                       lp["ln2_g"], lp["ln2_b"])
        y = layer_norm(y + ffn(y, lp), lp["ln3_g"], lp["ln3_b"])
    y = layer_norm(y, p["dec_norm_g"], p["dec_norm_b"])

    out_ref[...] = y.astype(out_ref.dtype)


# ------------------------------ parameter prep -------------------------------------
def prep_params(params):
    """Fold 1/sqrt(head_dim) into Wq/bq, fuse QKV (and KV) weights, reshape vectors
    to lane-dense (1, N) rows, keep query_embed so it can live in the slab."""
    scale = 1.0 / math.sqrt(HEAD_DIM)

    def row(v):
        return v.reshape(1, -1)

    def prep_self_attn(a):
        return dict(
            qkv_w=jnp.concatenate([a["wq"] * scale, a["wk"], a["wv"]], axis=1),
            qkv_b=row(jnp.concatenate([a["bq"] * scale, a["bk"], a["bv"]])),
            wo=a["wo"], bo=row(a["bo"]))

    def prep_cross_attn(a):
        return dict(
            q_w=a["wq"] * scale, q_b=row(a["bq"] * scale),
            kv_w=jnp.concatenate([a["wk"], a["wv"]], axis=1),
            kv_b=row(jnp.concatenate([a["bk"], a["bv"]])),
            wo=a["wo"], bo=row(a["bo"]))

    enc = [dict(attn=prep_self_attn(lp["attn"]),
                lin1_w=lp["lin1_w"], lin1_b=row(lp["lin1_b"]),
                lin2_w=lp["lin2_w"], lin2_b=row(lp["lin2_b"]),
                ln1_g=row(lp["norm1"]["w"]), ln1_b=row(lp["norm1"]["b"]),
                ln2_g=row(lp["norm2"]["w"]), ln2_b=row(lp["norm2"]["b"]))
           for lp in params["encoder"]]

    dec = [dict(self_attn=prep_self_attn(lp["self_attn"]),
                cross_attn=prep_cross_attn(lp["cross_attn"]),
                lin1_w=lp["lin1_w"], lin1_b=row(lp["lin1_b"]),
                lin2_w=lp["lin2_w"], lin2_b=row(lp["lin2_b"]),
                ln1_g=row(lp["norm1"]["w"]), ln1_b=row(lp["norm1"]["b"]),
                ln2_g=row(lp["norm2"]["w"]), ln2_b=row(lp["norm2"]["b"]),
                ln3_g=row(lp["norm3"]["w"]), ln3_b=row(lp["norm3"]["b"]))
           for lp in params["decoder"]]

    return dict(encoder=enc, decoder=dec,
                enc_norm_g=row(params["encoder_norm"]["w"]),
                enc_norm_b=row(params["encoder_norm"]["b"]),
                dec_norm_g=row(params["decoder_norm"]["w"]),
                dec_norm_b=row(params["decoder_norm"]["b"]),
                query_embed=params["query_embed"])


def pack_params(prepped):
    """Pack every prepped parameter into ONE lane-dense (rows, 128) f32 slab so the
    kernel takes a single parameter DMA.  Returns (slab, treedef, index) with
    index[i] = (row_offset, rows, cols); offsets are sublane (8-row) aligned."""
    leaves, treedef = jax.tree_util.tree_flatten(prepped)
    blocks, index, offset = [], [], 0
    for leaf in leaves:
        leaf = jnp.asarray(leaf, jnp.float32)
        assert leaf.ndim == 2 and leaf.shape[1] <= SLAB_WIDTH
        r, c = leaf.shape
        r_pad = ((r + 7) // 8) * 8
        block = jnp.zeros((r_pad, SLAB_WIDTH), jnp.float32).at[:r, :c].set(leaf)
        blocks.append(block)
        index.append((offset, r, c))
        offset += r_pad
    return jnp.concatenate(blocks, axis=0), treedef, tuple(index)


# ------------------------------ forward wrapper -------------------------------------
def invar_transformer_forward(slab, src, src_mask, *, treedef, index, nq):
    """src: (bs, seq, d_model), src_mask: (bs, seq, K) -> (bs, num_queries, d_model)."""
    bs, seq, d = src.shape

    # pos_encoding = zeros -> src unchanged; flatten batch-major to (B*S, D)
    x0 = src.astype(jnp.float32).reshape(bs * seq, d)

    # key_padding_mask = (src_mask != 0).any(-1); True => key ignored (encoder only)
    kpm = jnp.any(src_mask != 0, axis=-1)                                   # (bs, seq)
    kp_cols = jnp.where(kpm, NEG_INF, 0.0).astype(jnp.float32).reshape(1, bs * seq)

    kernel = functools.partial(_fused_forward_kernel, treedef=treedef, index=index,
                               bs=bs, seq=seq, nq=nq)
    out = pl.pallas_call(
        kernel,
        out_shape=jax.ShapeDtypeStruct((bs * nq, d), jnp.float32),
        in_specs=[_VMEM_SPEC, _VMEM_SPEC, _VMEM_SPEC],
        out_specs=_VMEM_SPEC,
    )(slab, x0, kp_cols)

    return out.reshape(bs, nq, d)


# ------------------------------ parameter init --------------------------------------
def init_params(key):
    keys = iter(jax.random.split(key, 1024))

    def dense(din, dout):
        return 0.05 * jax.random.normal(next(keys), (din, dout), jnp.float32)

    def vec(d):
        return 0.05 * jax.random.normal(next(keys), (d,), jnp.float32)

    def mha_p():
        return dict(wq=dense(D_MODEL, D_MODEL), bq=vec(D_MODEL),
                    wk=dense(D_MODEL, D_MODEL), bk=vec(D_MODEL),
                    wv=dense(D_MODEL, D_MODEL), bv=vec(D_MODEL),
                    wo=dense(D_MODEL, D_MODEL), bo=vec(D_MODEL))

    def ln_p():
        return dict(w=jnp.ones((D_MODEL,), jnp.float32),
                    b=jnp.zeros((D_MODEL,), jnp.float32))

    enc = [dict(attn=mha_p(),
                lin1_w=dense(D_MODEL, DIM_FF), lin1_b=vec(DIM_FF),
                lin2_w=dense(DIM_FF, D_MODEL), lin2_b=vec(D_MODEL),
                norm1=ln_p(), norm2=ln_p())
           for _ in range(NUM_ENC_LAYERS)]

    dec = [dict(self_attn=mha_p(), cross_attn=mha_p(),
                lin1_w=dense(D_MODEL, DIM_FF), lin1_b=vec(DIM_FF),
                lin2_w=dense(DIM_FF, D_MODEL), lin2_b=vec(D_MODEL),
                norm1=ln_p(), norm2=ln_p(), norm3=ln_p())
           for _ in range(NUM_DEC_LAYERS)]

    return dict(encoder=enc, decoder=dec,
                encoder_norm=ln_p(), decoder_norm=ln_p(),
                query_embed=jax.random.normal(next(keys), (NUM_QUERIES, D_MODEL),
                                              jnp.float32))


# ------------------------------------ main -------------------------------------------
if __name__ == "__main__":
    root = jax.random.PRNGKey(0)
    k_params, k_src = jax.random.split(root)

    bs, seq = 2, 8
    params = init_params(k_params)
    prepped = prep_params(params)
    slab, treedef, index = pack_params(prepped)          # one-time host-side packing

    src = jax.random.normal(k_src, (bs, seq, D_MODEL), jnp.float32)

    # src_mask: nonzero on the last 2 sequence positions -> those keys padded out.
    src_mask = jnp.zeros((bs, seq, 4), jnp.float32)
    src_mask = src_mask.at[:, -2:, :].set(1.0)

    fwd = jax.jit(functools.partial(invar_transformer_forward,
                                    treedef=treedef, index=index, nq=NUM_QUERIES))
    out = jax.block_until_ready(fwd(slab, src, src_mask))

    assert out.shape == (bs, NUM_QUERIES, D_MODEL)
    assert bool(jnp.all(jnp.isfinite(out)))
    print("KERNEL_OK")
</pallas_src>

<mosaic_0001>
module attributes {stable_mosaic.version = 11 : i64} {
  func.func @_fused_forward_kernel(%arg0: memref<1208x128xf32, #tpu.memory_space<vmem>>, %arg1: memref<16x32xf32, #tpu.memory_space<vmem>>, %arg2: memref<1x16xf32, #tpu.memory_space<vmem>>, %arg3: memref<10x32xf32, #tpu.memory_space<vmem>>) attributes {dimension_semantics = [], scalar_prefetch = 0 : i64, scratch_operands = 0 : i64, tpu.core_type = #tpu.core_type<tc>} {
    %c0 = arith.constant 0 : index
    %c0_0 = arith.constant 0 : index
    %0 = vector.load %arg0[%c0, %c0_0] : memref<1208x128xf32, #tpu.memory_space<vmem>>, vector<1x32xf32>
    %c8 = arith.constant 8 : index
    %c0_1 = arith.constant 0 : index
    %1 = vector.load %arg0[%c8, %c0_1] : memref<1208x128xf32, #tpu.memory_space<vmem>>, vector<1x32xf32>
    %c16 = arith.constant 16 : index
    %c0_2 = arith.constant 0 : index
    %2 = vector.load %arg0[%c16, %c0_2] : memref<1208x128xf32, #tpu.memory_space<vmem>>, vector<1x32xf32>
    %c24 = arith.constant 24 : index
    %c0_3 = arith.constant 0 : index
    %3 = vector.load %arg0[%c24, %c0_3] : memref<1208x128xf32, #tpu.memory_space<vmem>>, vector<1x64xf32>
    %c32 = arith.constant 32 : index
    %c0_4 = arith.constant 0 : index
    %4 = vector.load %arg0[%c32, %c0_4] : memref<1208x128xf32, #tpu.memory_space<vmem>>, vector<32x64xf32>
    %c64 = arith.constant 64 : index
    %c0_5 = arith.constant 0 : index
    %5 = vector.load %arg0[%c64, %c0_5] : memref<1208x128xf32, #tpu.memory_space<vmem>>, vector<1x32xf32>
    %c72 = arith.constant 72 : index
    %c0_6 = arith.constant 0 : index
    %6 = vector.load %arg0[%c72, %c0_6] : memref<1208x128xf32, #tpu.memory_space<vmem>>, vector<32x32xf32>
    %c104 = arith.constant 104 : index
    %c0_7 = arith.constant 0 : index
    %7 = vector.load %arg0[%c104, %c0_7] : memref<1208x128xf32, #tpu.memory_space<vmem>>, vector<32x32xf32>
    %c136 = arith.constant 136 : index
    %c0_8 = arith.constant 0 : index
    %8 = vector.load %arg0[%c136, %c0_8] : memref<1208x128xf32, #tpu.memory_space<vmem>>, vector<1x64xf32>
    %c144 = arith.constant 144 : index
    %c0_9 = arith.constant 0 : index
    %9 = vector.load %arg0[%c144, %c0_9] : memref<1208x128xf32, #tpu.memory_space<vmem>>, vector<32x64xf32>
    %c176 = arith.constant 176 : index
    %c0_10 = arith.constant 0 : index
    %10 = vector.load %arg0[%c176, %c0_10] : memref<1208x128xf32, #tpu.memory_space<vmem>>, vector<1x32xf32>
    %c184 = arith.constant 184 : index
    %c0_11 = arith.constant 0 : index
    %11 = vector.load %arg0[%c184, %c0_11] : memref<1208x128xf32, #tpu.memory_space<vmem>>, vector<64x32xf32>
    %c248 = arith.constant 248 : index
    %c0_12 = arith.constant 0 : index
    %12 = vector.load %arg0[%c248, %c0_12] : memref<1208x128xf32, #tpu.memory_space<vmem>>, vector<1x32xf32>
    %c256 = arith.constant 256 : index
    %c0_13 = arith.constant 0 : index
    %13 = vector.load %arg0[%c256, %c0_13] : memref<1208x128xf32, #tpu.memory_space<vmem>>, vector<1x32xf32>
    %c264 = arith.constant 264 : index
    %c0_14 = arith.constant 0 : index
    %14 = vector.load %arg0[%c264, %c0_14] : memref<1208x128xf32, #tpu.memory_space<vmem>>, vector<1x32xf32>
    %c272 = arith.constant 272 : index
    %c0_15 = arith.constant 0 : index
    %15 = vector.load %arg0[%c272, %c0_15] : memref<1208x128xf32, #tpu.memory_space<vmem>>, vector<1x32xf32>
    %c280 = arith.constant 280 : index
    %c0_16 = arith.constant 0 : index
    %16 = vector.load %arg0[%c280, %c0_16] : memref<1208x128xf32, #tpu.memory_space<vmem>>, vector<1x32xf32>
    %c288 = arith.constant 288 : index
    %c0_17 = arith.constant 0 : index
    %17 = vector.load %arg0[%c288, %c0_17] : memref<1208x128xf32, #tpu.memory_space<vmem>>, vector<1x32xf32>
    %c296 = arith.constant 296 : index
    %c0_18 = arith.constant 0 : index
    %18 = vector.load %arg0[%c296, %c0_18] : memref<1208x128xf32, #tpu.memory_space<vmem>>, vector<1x32xf32>
    %c304 = arith.constant 304 : index
    %c0_19 = arith.constant 0 : index
    %19 = vector.load %arg0[%c304, %c0_19] : memref<1208x128xf32, #tpu.memory_space<vmem>>, vector<1x96xf32>
    %c312 = arith.constant 312 : index
    %c0_20 = arith.constant 0 : index
    %20 = vector.load %arg0[%c312, %c0_20] : memref<1208x128xf32, #tpu.memory_space<vmem>>, vector<32x96xf32>
    %c344 = arith.constant 344 : index
    %c0_21 = arith.constant 0 : index
    %21 = vector.load %arg0[%c344, %c0_21] : memref<1208x128xf32, #tpu.memory_space<vmem>>, vector<32x32xf32>
    %c376 = arith.constant 376 : index
    %c0_22 = arith.constant 0 : index
    %22 = vector.load %arg0[%c376, %c0_22] : memref<1208x128xf32, #tpu.memory_space<vmem>>, vector<1x32xf32>
    %c384 = arith.constant 384 : index
    %c0_23 = arith.constant 0 : index
    %23 = vector.load %arg0[%c384, %c0_23] : memref<1208x128xf32, #tpu.memory_space<vmem>>, vector<1x64xf32>
    %c392 = arith.constant 392 : index
    %c0_24 = arith.constant 0 : index
    %24 = vector.load %arg0[%c392, %c0_24] : memref<1208x128xf32, #tpu.memory_space<vmem>>, vector<32x64xf32>
    %c424 = arith.constant 424 : index
    %c0_25 = arith.constant 0 : index
    %25 = vector.load %arg0[%c424, %c0_25] : memref<1208x128xf32, #tpu.memory_space<vmem>>, vector<1x32xf32>
    %c432 = arith.constant 432 : index
    %c0_26 = arith.constant 0 : index
    %26 = vector.load %arg0[%c432, %c0_26] : memref<1208x128xf32, #tpu.memory_space<vmem>>, vector<32x32xf32>
    %c464 = arith.constant 464 : index
    %c0_27 = arith.constant 0 : index
    %27 = vector.load %arg0[%c464, %c0_27] : memref<1208x128xf32, #tpu.memory_space<vmem>>, vector<32x32xf32>
    %c496 = arith.constant 496 : index
    %c0_28 = arith.constant 0 : index
    %28 = vector.load %arg0[%c496, %c0_28] : memref<1208x128xf32, #tpu.memory_space<vmem>>, vector<1x64xf32>
    %c504 = arith.constant 504 : index
    %c0_29 = arith.constant 0 : index
    %29 = vector.load %arg0[%c504, %c0_29] : memref<1208x128xf32, #tpu.memory_space<vmem>>, vector<32x64xf32>
    %c536 = arith.constant 536 : index
    %c0_30 = arith.constant 0 : index
    %30 = vector.load %arg0[%c536, %c0_30] : memref<1208x128xf32, #tpu.memory_space<vmem>>, vector<1x32xf32>
    %c544 = arith.constant 544 : index
    %c0_31 = arith.constant 0 : index
    %31 = vector.load %arg0[%c544, %c0_31] : memref<1208x128xf32, #tpu.memory_space<vmem>>, vector<64x32xf32>
    %c608 = arith.constant 608 : index
    %c0_32 = arith.constant 0 : index
    %32 = vector.load %arg0[%c608, %c0_32] : memref<1208x128xf32, #tpu.memory_space<vmem>>, vector<1x32xf32>
    %c616 = arith.constant 616 : index
    %c0_33 = arith.constant 0 : index
    %33 = vector.load %arg0[%c616, %c0_33] : memref<1208x128xf32, #tpu.memory_space<vmem>>, vector<1x32xf32>
    %c624 = arith.constant 624 : index
    %c0_34 = arith.constant 0 : index
    %34 = vector.load %arg0[%c624, %c0_34] : memref<1208x128xf32, #tpu.memory_space<vmem>>, vector<1x32xf32>
    %c632 = arith.constant 632 : index
    %c0_35 = arith.constant 0 : index
    %35 = vector.load %arg0[%c632, %c0_35] : memref<1208x128xf32, #tpu.memory_space<vmem>>, vector<1x32xf32>
    %c640 = arith.constant 640 : index
    %c0_36 = arith.constant 0 : index
    %36 = vector.load %arg0[%c640, %c0_36] : memref<1208x128xf32, #tpu.memory_space<vmem>>, vector<1x32xf32>
    %c648 = arith.constant 648 : index
    %c0_37 = arith.constant 0 : index
    %37 = vector.load %arg0[%c648, %c0_37] : memref<1208x128xf32, #tpu.memory_space<vmem>>, vector<1x32xf32>
    %c656 = arith.constant 656 : index
    %c0_38 = arith.constant 0 : index
    %38 = vector.load %arg0[%c656, %c0_38] : memref<1208x128xf32, #tpu.memory_space<vmem>>, vector<1x32xf32>
    %c664 = arith.constant 664 : index
    %c0_39 = arith.constant 0 : index
    %39 = vector.load %arg0[%c664, %c0_39] : memref<1208x128xf32, #tpu.memory_space<vmem>>, vector<1x96xf32>
    %c672 = arith.constant 672 : index
    %c0_40 = arith.constant 0 : index
    %40 = vector.load %arg0[%c672, %c0_40] : memref<1208x128xf32, #tpu.memory_space<vmem>>, vector<32x96xf32>
    %c704 = arith.constant 704 : index
    %c0_41 = arith.constant 0 : index
    %41 = vector.load %arg0[%c704, %c0_41] : memref<1208x128xf32, #tpu.memory_space<vmem>>, vector<32x32xf32>
    %c736 = arith.constant 736 : index
    %c0_42 = arith.constant 0 : index
    %42 = vector.load %arg0[%c736, %c0_42] : memref<1208x128xf32, #tpu.memory_space<vmem>>, vector<1x32xf32>
    %c744 = arith.constant 744 : index
    %c0_43 = arith.constant 0 : index
    %43 = vector.load %arg0[%c744, %c0_43] : memref<1208x128xf32, #tpu.memory_space<vmem>>, vector<1x32xf32>
    %c752 = arith.constant 752 : index
    %c0_44 = arith.constant 0 : index
    %44 = vector.load %arg0[%c752, %c0_44] : memref<1208x128xf32, #tpu.memory_space<vmem>>, vector<1x32xf32>
    %c760 = arith.constant 760 : index
    %c0_45 = arith.constant 0 : index
    %45 = vector.load %arg0[%c760, %c0_45] : memref<1208x128xf32, #tpu.memory_space<vmem>>, vector<1x96xf32>
    %c768 = arith.constant 768 : index
    %c0_46 = arith.constant 0 : index
    %46 = vector.load %arg0[%c768, %c0_46] : memref<1208x128xf32, #tpu.memory_space<vmem>>, vector<32x96xf32>
    %c800 = arith.constant 800 : index
    %c0_47 = arith.constant 0 : index
    %47 = vector.load %arg0[%c800, %c0_47] : memref<1208x128xf32, #tpu.memory_space<vmem>>, vector<32x32xf32>
    %c832 = arith.constant 832 : index
    %c0_48 = arith.constant 0 : index
    %48 = vector.load %arg0[%c832, %c0_48] : memref<1208x128xf32, #tpu.memory_space<vmem>>, vector<1x64xf32>
    %c840 = arith.constant 840 : index
    %c0_49 = arith.constant 0 : index
    %49 = vector.load %arg0[%c840, %c0_49] : memref<1208x128xf32, #tpu.memory_space<vmem>>, vector<32x64xf32>
    %c872 = arith.constant 872 : index
    %c0_50 = arith.constant 0 : index
    %50 = vector.load %arg0[%c872, %c0_50] : memref<1208x128xf32, #tpu.memory_space<vmem>>, vector<1x32xf32>
    %c880 = arith.constant 880 : index
    %c0_51 = arith.constant 0 : index
    %51 = vector.load %arg0[%c880, %c0_51] : memref<1208x128xf32, #tpu.memory_space<vmem>>, vector<64x32xf32>
    %c944 = arith.constant 944 : index
    %c0_52 = arith.constant 0 : index
    %52 = vector.load %arg0[%c944, %c0_52] : memref<1208x128xf32, #tpu.memory_space<vmem>>, vector<1x32xf32>
    %c952 = arith.constant 952 : index
    %c0_53 = arith.constant 0 : index
    %53 = vector.load %arg0[%c952, %c0_53] : memref<1208x128xf32, #tpu.memory_space<vmem>>, vector<1x32xf32>
    %c960 = arith.constant 960 : index
    %c0_54 = arith.constant 0 : index
    %54 = vector.load %arg0[%c960, %c0_54] : memref<1208x128xf32, #tpu.memory_space<vmem>>, vector<1x32xf32>
    %c968 = arith.constant 968 : index
    %c0_55 = arith.constant 0 : index
    %55 = vector.load %arg0[%c968, %c0_55] : memref<1208x128xf32, #tpu.memory_space<vmem>>, vector<1x32xf32>
    %c976 = arith.constant 976 : index
    %c0_56 = arith.constant 0 : index
    %56 = vector.load %arg0[%c976, %c0_56] : memref<1208x128xf32, #tpu.memory_space<vmem>>, vector<1x32xf32>
    %c984 = arith.constant 984 : index
    %c0_57 = arith.constant 0 : index
    %57 = vector.load %arg0[%c984, %c0_57] : memref<1208x128xf32, #tpu.memory_space<vmem>>, vector<1x96xf32>
    %c992 = arith.constant 992 : index
    %c0_58 = arith.constant 0 : index
    %58 = vector.load %arg0[%c992, %c0_58] : memref<1208x128xf32, #tpu.memory_space<vmem>>, vector<32x96xf32>
    %c1024 = arith.constant 1024 : index
    %c0_59 = arith.constant 0 : index
    %59 = vector.load %arg0[%c1024, %c0_59] : memref<1208x128xf32, #tpu.memory_space<vmem>>, vector<32x32xf32>
    %c1056 = arith.constant 1056 : index
    %c0_60 = arith.constant 0 : index
    %60 = vector.load %arg0[%c1056, %c0_60] : memref<1208x128xf32, #tpu.memory_space<vmem>>, vector<1x64xf32>
    %c1064 = arith.constant 1064 : index
    %c0_61 = arith.constant 0 : index
    %61 = vector.load %arg0[%c1064, %c0_61] : memref<1208x128xf32, #tpu.memory_space<vmem>>, vector<32x64xf32>
    %c1096 = arith.constant 1096 : index
    %c0_62 = arith.constant 0 : index
    %62 = vector.load %arg0[%c1096, %c0_62] : memref<1208x128xf32, #tpu.memory_space<vmem>>, vector<1x32xf32>
    %c1104 = arith.constant 1104 : index
    %c0_63 = arith.constant 0 : index
    %63 = vector.load %arg0[%c1104, %c0_63] : memref<1208x128xf32, #tpu.memory_space<vmem>>, vector<64x32xf32>
    %c1168 = arith.constant 1168 : index
    %c0_64 = arith.constant 0 : index
    %64 = vector.load %arg0[%c1168, %c0_64] : memref<1208x128xf32, #tpu.memory_space<vmem>>, vector<1x32xf32>
    %c1176 = arith.constant 1176 : index
    %c0_65 = arith.constant 0 : index
    %65 = vector.load %arg0[%c1176, %c0_65] : memref<1208x128xf32, #tpu.memory_space<vmem>>, vector<1x32xf32>
    %c1184 = arith.constant 1184 : index
    %c0_66 = arith.constant 0 : index
    %66 = vector.load %arg0[%c1184, %c0_66] : memref<1208x128xf32, #tpu.memory_space<vmem>>, vector<1x32xf32>
    %c1192 = arith.constant 1192 : index
    %c0_67 = arith.constant 0 : index
    %67 = vector.load %arg0[%c1192, %c0_67] : memref<1208x128xf32, #tpu.memory_space<vmem>>, vector<1x32xf32>
    %c1200 = arith.constant 1200 : index
    %c0_68 = arith.constant 0 : index
    %68 = vector.load %arg0[%c1200, %c0_68] : memref<1208x128xf32, #tpu.memory_space<vmem>>, vector<5x32xf32>
    %69 = tpu.iota {dimensions = array<i32: 0>} : vector<16x16xi32>
    %70 = arith.sitofp %69 : vector<16x16xi32> to vector<16x16xf32>
    %71 = tpu.iota {dimensions = array<i32: 1>} : vector<16x16xi32>
    %72 = arith.sitofp %71 : vector<16x16xi32> to vector<16x16xf32>
    %cst = arith.constant 1.250000e-01 : f32
    %73 = vector.broadcast %cst : f32 to vector<16x16xf32>
    %74 = arith.mulf %70, %73 : vector<16x16xf32>
    %75 = math.floor %74 : vector<16x16xf32>
    %cst_69 = arith.constant 1.250000e-01 : f32
    %76 = vector.broadcast %cst_69 : f32 to vector<16x16xf32>
    %77 = arith.mulf %72, %76 : vector<16x16xf32>
    %78 = math.floor %77 : vector<16x16xf32>
    %79 = arith.cmpf oeq, %75, %78 : vector<16x16xf32>
    %cst_70 = arith.constant 0.000000e+00 : f32
    %cst_71 = arith.constant -1.000000e+09 : f32
    %80 = vector.broadcast %cst_70 : f32 to vector<16x16xf32>
    %81 = vector.broadcast %cst_71 : f32 to vector<16x16xf32>
    %82 = arith.select %79, %80, %81 : vector<16x16xi1>, vector<16x16xf32>
    %c0_72 = arith.constant 0 : index
    %c0_73 = arith.constant 0 : index
    %83 = vector.load %arg2[%c0_72, %c0_73] : memref<1x16xf32, #tpu.memory_space<vmem>>, vector<1x16xf32>
    %84 = vector.broadcast %83 : vector<1x16xf32> to vector<16x16xf32>
    %85 = arith.addf %82, %84 : vector<16x16xf32>
    %86 = tpu.iota {dimensions = array<i32: 0>} : vector<10x10xi32>
    %87 = arith.sitofp %86 : vector<10x10xi32> to vector<10x10xf32>
    %88 = tpu.iota {dimensions = array<i32: 1>} : vector<10x10xi32>
    %89 = arith.sitofp %88 : vector<10x10xi32> to vector<10x10xf32>
    %cst_74 = arith.constant 2.000000e-01 : f32
    %90 = vector.broadcast %cst_74 : f32 to vector<10x10xf32>
    %91 = arith.mulf %87, %90 : vector<10x10xf32>
    %92 = math.floor %91 : vector<10x10xf32>
    %cst_75 = arith.constant 2.000000e-01 : f32
    %93 = vector.broadcast %cst_75 : f32 to vector<10x10xf32>
    %94 = arith.mulf %89, %93 : vector<10x10xf32>
    %95 = math.floor %94 : vector<10x10xf32>
    %96 = arith.cmpf oeq, %92, %95 : vector<10x10xf32>
    %cst_76 = arith.constant 0.000000e+00 : f32
    %cst_77 = arith.constant -1.000000e+09 : f32
    %97 = vector.broadcast %cst_76 : f32 to vector<10x10xf32>
    %98 = vector.broadcast %cst_77 : f32 to vector<10x10xf32>
    %99 = arith.select %96, %97, %98 : vector<10x10xi1>, vector<10x10xf32>
    %100 = tpu.iota {dimensions = array<i32: 0>} : vector<10x16xi32>
    %101 = arith.sitofp %100 : vector<10x16xi32> to vector<10x16xf32>
    %102 = tpu.iota {dimensions = array<i32: 1>} : vector<10x16xi32>
    %103 = arith.sitofp %102 : vector<10x16xi32> to vector<10x16xf32>
    %cst_78 = arith.constant 2.000000e-01 : f32
    %104 = vector.broadcast %cst_78 : f32 to vector<10x16xf32>
    %105 = arith.mulf %101, %104 : vector<10x16xf32>
    %106 = math.floor %105 : vector<10x16xf32>
    %cst_79 = arith.constant 1.250000e-01 : f32
    %107 = vector.broadcast %cst_79 : f32 to vector<10x16xf32>
    %108 = arith.mulf %103, %107 : vector<10x16xf32>
    %109 = math.floor %108 : vector<10x16xf32>
    %110 = arith.cmpf oeq, %106, %109 : vector<10x16xf32>
    %cst_80 = arith.constant 0.000000e+00 : f32
    %cst_81 = arith.constant -1.000000e+09 : f32
    %111 = vector.broadcast %cst_80 : f32 to vector<10x16xf32>
    %112 = vector.broadcast %cst_81 : f32 to vector<10x16xf32>
    %113 = arith.select %110, %111, %112 : vector<10x16xi1>, vector<10x16xf32>
    %c0_82 = arith.constant 0 : index
    %c0_83 = arith.constant 0 : index
    %114 = vector.load %arg1[%c0_82, %c0_83] : memref<16x32xf32, #tpu.memory_space<vmem>>, vector<16x32xf32>
    %cst_84 = arith.constant dense<0.000000e+00> : vector<16x96xf32>
    %115 = tpu.matmul %114, %46, %cst_84 {dimension_numbers = #tpu.dot_dimension_numbers<[1], [0], [0], [1], [0, 0, 1, 1], [], []>} : vector<16x32xf32>, vector<32x96xf32>, vector<16x96xf32> -> vector<16x96xf32>
    %116 = vector.broadcast %45 : vector<1x96xf32> to vector<16x96xf32>
    %117 = arith.addf %115, %116 : vector<16x96xf32>
    %118 = vector.extract_strided_slice %117 {offsets = [0, 0], sizes = [16, 32], strides = [1, 1]} : vector<16x96xf32> to vector<16x32xf32>
    %119 = vector.extract_strided_slice %117 {offsets = [0, 32], sizes = [16, 32], strides = [1, 1]} : vector<16x96xf32> to vector<16x32xf32>
    %120 = vector.extract_strided_slice %117 {offsets = [0, 64], sizes = [16, 32], strides = [1, 1]} : vector<16x96xf32> to vector<16x32xf32>
    %121 = vector.extract_strided_slice %118 {offsets = [0, 0], sizes = [16, 8], strides = [1, 1]} : vector<16x32xf32> to vector<16x8xf32>
    %122 = vector.extract_strided_slice %119 {offsets = [0, 0], sizes = [16, 8], strides = [1, 1]} : vector<16x32xf32> to vector<16x8xf32>
    %cst_85 = arith.constant dense<0.000000e+00> : vector<16x16xf32>
    %123 = tpu.matmul %121, %122, %cst_85 {dimension_numbers = #tpu.dot_dimension_numbers<[1], [1], [0], [0], [0, 0, 1, 0], [], []>} : vector<16x8xf32>, vector<16x8xf32>, vector<16x16xf32> -> vector<16x16xf32>
    %124 = arith.addf %123, %85 : vector<16x16xf32>
    %cst_86 = arith.constant dense<0xFF800000> : vector<16xf32>
    %125 = vector.multi_reduction <maximumf>, %124, %cst_86 [1] : vector<16x16xf32> to vector<16xf32>
    %126 = vector.shape_cast %125 : vector<16xf32> to vector<16x1xf32>
    %127 = vector.broadcast %126 : vector<16x1xf32> to vector<16x16xf32>
    %128 = arith.subf %124, %127 : vector<16x16xf32>
    %129 = math.exp %128 : vector<16x16xf32>
    %cst_87 = arith.constant dense<0.000000e+00> : vector<16xf32>
    %130 = vector.multi_reduction <add>, %129, %cst_87 [1] : vector<16x16xf32> to vector<16xf32>
    %131 = vector.shape_cast %130 : vector<16xf32> to vector<16x1xf32>
    %132 = vector.broadcast %131 : vector<16x1xf32> to vector<16x16xf32>
    %133 = arith.divf %129, %132 : vector<16x16xf32>
    %134 = vector.extract_strided_slice %120 {offsets = [0, 0], sizes = [16, 8], strides = [1, 1]} : vector<16x32xf32> to vector<16x8xf32>
    %cst_88 = arith.constant dense<0.000000e+00> : vector<16x8xf32>
    %135 = tpu.matmul %133, %134, %cst_88 {dimension_numbers = #tpu.dot_dimension_numbers<[1], [0], [0], [1], [0, 0, 1, 1], [], []>} : vector<16x16xf32>, vector<16x8xf32>, vector<16x8xf32> -> vector<16x8xf32>
    %136 = vector.extract_strided_slice %47 {offsets = [0, 0], sizes = [8, 32], strides = [1, 1]} : vector<32x32xf32> to vector<8x32xf32>
    %cst_89 = arith.constant dense<0.000000e+00> : vector<16x32xf32>
    %137 = tpu.matmul %135, %136, %cst_89 {dimension_numbers = #tpu.dot_dimension_numbers<[1], [0], [0], [1], [0, 0, 1, 1], [], []>} : vector<16x8xf32>, vector<8x32xf32>, vector<16x32xf32> -> vector<16x32xf32>
    %138 = vector.extract_strided_slice %118 {offsets = [0, 8], sizes = [16, 8], strides = [1, 1]} : vector<16x32xf32> to vector<16x8xf32>
    %139 = vector.extract_strided_slice %119 {offsets = [0, 8], sizes = [16, 8], strides = [1, 1]} : vector<16x32xf32> to vector<16x8xf32>
    %cst_90 = arith.constant dense<0.000000e+00> : vector<16x16xf32>
    %140 = tpu.matmul %138, %139, %cst_90 {dimension_numbers = #tpu.dot_dimension_numbers<[1], [1], [0], [0], [0, 0, 1, 0], [], []>} : vector<16x8xf32>, vector<16x8xf32>, vector<16x16xf32> -> vector<16x16xf32>
    %141 = arith.addf %140, %85 : vector<16x16xf32>
    %cst_91 = arith.constant dense<0xFF800000> : vector<16xf32>
    %142 = vector.multi_reduction <maximumf>, %141, %cst_91 [1] : vector<16x16xf32> to vector<16xf32>
    %143 = vector.shape_cast %142 : vector<16xf32> to vector<16x1xf32>
    %144 = vector.broadcast %143 : vector<16x1xf32> to vector<16x16xf32>
    %145 = arith.subf %141, %144 : vector<16x16xf32>
    %146 = math.exp %145 : vector<16x16xf32>
    %cst_92 = arith.constant dense<0.000000e+00> : vector<16xf32>
    %147 = vector.multi_reduction <add>, %146, %cst_92 [1] : vector<16x16xf32> to vector<16xf32>
    %148 = vector.shape_cast %147 : vector<16xf32> to vector<16x1xf32>
    %149 = vector.broadcast %148 : vector<16x1xf32> to vector<16x16xf32>
    %150 = arith.divf %146, %149 : vector<16x16xf32>
    %151 = vector.extract_strided_slice %120 {offsets = [0, 8], sizes = [16, 8], strides = [1, 1]} : vector<16x32xf32> to vector<16x8xf32>
    %cst_93 = arith.constant dense<0.000000e+00> : vector<16x8xf32>
    %152 = tpu.matmul %150, %151, %cst_93 {dimension_numbers = #tpu.dot_dimension_numbers<[1], [0], [0], [1], [0, 0, 1, 1], [], []>} : vector<16x16xf32>, vector<16x8xf32>, vector<16x8xf32> -> vector<16x8xf32>
    %153 = vector.extract_strided_slice %47 {offsets = [8, 0], sizes = [8, 32], strides = [1, 1]} : vector<32x32xf32> to vector<8x32xf32>
    %cst_94 = arith.constant dense<0.000000e+00> : vector<16x32xf32>
    %154 = tpu.matmul %152, %153, %cst_94 {dimension_numbers = #tpu.dot_dimension_numbers<[1], [0], [0], [1], [0, 0, 1, 1], [], []>} : vector<16x8xf32>, vector<8x32xf32>, vector<16x32xf32> -> vector<16x32xf32>
    %155 = arith.addf %137, %154 : vector<16x32xf32>
    %156 = vector.extract_strided_slice %118 {offsets = [0, 16], sizes = [16, 8], strides = [1, 1]} : vector<16x32xf32> to vector<16x8xf32>
    %157 = vector.extract_strided_slice %119 {offsets = [0, 16], sizes = [16, 8], strides = [1, 1]} : vector<16x32xf32> to vector<16x8xf32>
    %cst_95 = arith.constant dense<0.000000e+00> : vector<16x16xf32>
    %158 = tpu.matmul %156, %157, %cst_95 {dimension_numbers = #tpu.dot_dimension_numbers<[1], [1], [0], [0], [0, 0, 1, 0], [], []>} : vector<16x8xf32>, vector<16x8xf32>, vector<16x16xf32> -> vector<16x16xf32>
    %159 = arith.addf %158, %85 : vector<16x16xf32>
    %cst_96 = arith.constant dense<0xFF800000> : vector<16xf32>
    %160 = vector.multi_reduction <maximumf>, %159, %cst_96 [1] : vector<16x16xf32> to vector<16xf32>
    %161 = vector.shape_cast %160 : vector<16xf32> to vector<16x1xf32>
    %162 = vector.broadcast %161 : vector<16x1xf32> to vector<16x16xf32>
    %163 = arith.subf %159, %162 : vector<16x16xf32>
    %164 = math.exp %163 : vector<16x16xf32>
    %cst_97 = arith.constant dense<0.000000e+00> : vector<16xf32>
    %165 = vector.multi_reduction <add>, %164, %cst_97 [1] : vector<16x16xf32> to vector<16xf32>
    %166 = vector.shape_cast %165 : vector<16xf32> to vector<16x1xf32>
    %167 = vector.broadcast %166 : vector<16x1xf32> to vector<16x16xf32>
    %168 = arith.divf %164, %167 : vector<16x16xf32>
    %169 = vector.extract_strided_slice %120 {offsets = [0, 16], sizes = [16, 8], strides = [1, 1]} : vector<16x32xf32> to vector<16x8xf32>
    %cst_98 = arith.constant dense<0.000000e+00> : vector<16x8xf32>
    %170 = tpu.matmul %168, %169, %cst_98 {dimension_numbers = #tpu.dot_dimension_numbers<[1], [0], [0], [1], [0, 0, 1, 1], [], []>} : vector<16x16xf32>, vector<16x8xf32>, vector<16x8xf32> -> vector<16x8xf32>
    %171 = vector.extract_strided_slice %47 {offsets = [16, 0], sizes = [8, 32], strides = [1, 1]} : vector<32x32xf32> to vector<8x32xf32>
    %cst_99 = arith.constant dense<0.000000e+00> : vector<16x32xf32>
    %172 = tpu.matmul %170, %171, %cst_99 {dimension_numbers = #tpu.dot_dimension_numbers<[1], [0], [0], [1], [0, 0, 1, 1], [], []>} : vector<16x8xf32>, vector<8x32xf32>, vector<16x32xf32> -> vector<16x32xf32>
    %173 = arith.addf %155, %172 : vector<16x32xf32>
    %174 = vector.extract_strided_slice %118 {offsets = [0, 24], sizes = [16, 8], strides = [1, 1]} : vector<16x32xf32> to vector<16x8xf32>
    %175 = vector.extract_strided_slice %119 {offsets = [0, 24], sizes = [16, 8], strides = [1, 1]} : vector<16x32xf32> to vector<16x8xf32>
    %cst_100 = arith.constant dense<0.000000e+00> : vector<16x16xf32>
    %176 = tpu.matmul %174, %175, %cst_100 {dimension_numbers = #tpu.dot_dimension_numbers<[1], [1], [0], [0], [0, 0, 1, 0], [], []>} : vector<16x8xf32>, vector<16x8xf32>, vector<16x16xf32> -> vector<16x16xf32>
    %177 = arith.addf %176, %85 : vector<16x16xf32>
    %cst_101 = arith.constant dense<0xFF800000> : vector<16xf32>
    %178 = vector.multi_reduction <maximumf>, %177, %cst_101 [1] : vector<16x16xf32> to vector<16xf32>
    %179 = vector.shape_cast %178 : vector<16xf32> to vector<16x1xf32>
    %180 = vector.broadcast %179 : vector<16x1xf32> to vector<16x16xf32>
    %181 = arith.subf %177, %180 : vector<16x16xf32>
    %182 = math.exp %181 : vector<16x16xf32>
    %cst_102 = arith.constant dense<0.000000e+00> : vector<16xf32>
    %183 = vector.multi_reduction <add>, %182, %cst_102 [1] : vector<16x16xf32> to vector<16xf32>
    %184 = vector.shape_cast %183 : vector<16xf32> to vector<16x1xf32>
    %185 = vector.broadcast %184 : vector<16x1xf32> to vector<16x16xf32>
    %186 = arith.divf %182, %185 : vector<16x16xf32>
    %187 = vector.extract_strided_slice %120 {offsets = [0, 24], sizes = [16, 8], strides = [1, 1]} : vector<16x32xf32> to vector<16x8xf32>
    %cst_103 = arith.constant dense<0.000000e+00> : vector<16x8xf32>
    %188 = tpu.matmul %186, %187, %cst_103 {dimension_numbers = #tpu.dot_dimension_numbers<[1], [0], [0], [1], [0, 0, 1, 1], [], []>} : vector<16x16xf32>, vector<16x8xf32>, vector<16x8xf32> -> vector<16x8xf32>
    %189 = vector.extract_strided_slice %47 {offsets = [24, 0], sizes = [8, 32], strides = [1, 1]} : vector<32x32xf32> to vector<8x32xf32>
    %cst_104 = arith.constant dense<0.000000e+00> : vector<16x32xf32>
    %190 = tpu.matmul %188, %189, %cst_104 {dimension_numbers = #tpu.dot_dimension_numbers<[1], [0], [0], [1], [0, 0, 1, 1], [], []>} : vector<16x8xf32>, vector<8x32xf32>, vector<16x32xf32> -> vector<16x32xf32>
    %191 = arith.addf %173, %190 : vector<16x32xf32>
    %192 = vector.broadcast %44 : vector<1x32xf32> to vector<16x32xf32>
    %193 = arith.addf %191, %192 : vector<16x32xf32>
    %194 = arith.addf %114, %193 : vector<16x32xf32>
    %cst_105 = arith.constant dense<0.000000e+00> : vector<16xf32>
    %195 = vector.multi_reduction <add>, %194, %cst_105 [1] : vector<16x32xf32> to vector<16xf32>
    %196 = vector.shape_cast %195 : vector<16xf32> to vector<16x1xf32>
    %cst_106 = arith.constant 3.200000e+01 : f32
    %197 = vector.broadcast %cst_106 : f32 to vector<16x1xf32>
    %198 = arith.divf %196, %197 : vector<16x1xf32>
    %199 = vector.broadcast %198 : vector<16x1xf32> to vector<16x32xf32>
    %200 = arith.subf %194, %199 : vector<16x32xf32>
    %201 = arith.mulf %200, %200 : vector<16x32xf32>
    %cst_107 = arith.constant dense<0.000000e+00> : vector<16xf32>
    %202 = vector.multi_reduction <add>, %201, %cst_107 [1] : vector<16x32xf32> to vector<16xf32>
    %203 = vector.shape_cast %202 : vector<16xf32> to vector<16x1xf32>
    %cst_108 = arith.constant 3.200000e+01 : f32
    %204 = vector.broadcast %cst_108 : f32 to vector<16x1xf32>
    %205 = arith.divf %203, %204 : vector<16x1xf32>
    %206 = vector.broadcast %198 : vector<16x1xf32> to vector<16x32xf32>
    %207 = arith.subf %194, %206 : vector<16x32xf32>
    %cst_109 = arith.constant 9.99999974E-6 : f32
    %208 = vector.broadcast %cst_109 : f32 to vector<16x1xf32>
    %209 = arith.addf %205, %208 : vector<16x1xf32>
    %210 = math.rsqrt %209 : vector<16x1xf32>
    %211 = vector.broadcast %210 : vector<16x1xf32> to vector<16x32xf32>
    %212 = arith.mulf %207, %211 : vector<16x32xf32>
    %213 = vector.broadcast %53 : vector<1x32xf32> to vector<16x32xf32>
    %214 = arith.mulf %212, %213 : vector<16x32xf32>
    %215 = vector.broadcast %52 : vector<1x32xf32> to vector<16x32xf32>
    %216 = arith.addf %214, %215 : vector<16x32xf32>
    %cst_110 = arith.constant dense<0.000000e+00> : vector<16x64xf32>
    %217 = tpu.matmul %216, %49, %cst_110 {dimension_numbers = #tpu.dot_dimension_numbers<[1], [0], [0], [1], [0, 0, 1, 1], [], []>} : vector<16x32xf32>, vector<32x64xf32>, vector<16x64xf32> -> vector<16x64xf32>
    %218 = vector.broadcast %48 : vector<1x64xf32> to vector<16x64xf32>
    %219 = arith.addf %217, %218 : vector<16x64xf32>
    %cst_111 = arith.constant 0.000000e+00 : f32
    %220 = vector.broadcast %cst_111 : f32 to vector<16x64xf32>
    %221 = arith.maximumf %219, %220 : vector<16x64xf32>
    %cst_112 = arith.constant dense<0.000000e+00> : vector<16x32xf32>
    %222 = tpu.matmul %221, %51, %cst_112 {dimension_numbers = #tpu.dot_dimension_numbers<[1], [0], [0], [1], [0, 0, 1, 1], [], []>} : vector<16x64xf32>, vector<64x32xf32>, vector<16x32xf32> -> vector<16x32xf32>
    %223 = vector.broadcast %50 : vector<1x32xf32> to vector<16x32xf32>
    %224 = arith.addf %222, %223 : vector<16x32xf32>
    %225 = arith.addf %216, %224 : vector<16x32xf32>
    %cst_113 = arith.constant dense<0.000000e+00> : vector<16xf32>
    %226 = vector.multi_reduction <add>, %225, %cst_113 [1] : vector<16x32xf32> to vector<16xf32>
    %227 = vector.shape_cast %226 : vector<16xf32> to vector<16x1xf32>
    %cst_114 = arith.constant 3.200000e+01 : f32
    %228 = vector.broadcast %cst_114 : f32 to vector<16x1xf32>
    %229 = arith.divf %227, %228 : vector<16x1xf32>
    %230 = vector.broadcast %229 : vector<16x1xf32> to vector<16x32xf32>
    %231 = arith.subf %225, %230 : vector<16x32xf32>
    %232 = arith.mulf %231, %231 : vector<16x32xf32>
    %cst_115 = arith.constant dense<0.000000e+00> : vector<16xf32>
    %233 = vector.multi_reduction <add>, %232, %cst_115 [1] : vector<16x32xf32> to vector<16xf32>
    %234 = vector.shape_cast %233 : vector<16xf32> to vector<16x1xf32>
    %cst_116 = arith.constant 3.200000e+01 : f32
    %235 = vector.broadcast %cst_116 : f32 to vector<16x1xf32>
    %236 = arith.divf %234, %235 : vector<16x1xf32>
    %237 = vector.broadcast %229 : vector<16x1xf32> to vector<16x32xf32>
    %238 = arith.subf %225, %237 : vector<16x32xf32>
    %cst_117 = arith.constant 9.99999974E-6 : f32
    %239 = vector.broadcast %cst_117 : f32 to vector<16x1xf32>
    %240 = arith.addf %236, %239 : vector<16x1xf32>
    %241 = math.rsqrt %240 : vector<16x1xf32>
    %242 = vector.broadcast %241 : vector<16x1xf32> to vector<16x32xf32>
    %243 = arith.mulf %238, %242 : vector<16x32xf32>
    %244 = vector.broadcast %55 : vector<1x32xf32> to vector<16x32xf32>
    %245 = arith.mulf %243, %244 : vector<16x32xf32>
    %246 = vector.broadcast %54 : vector<1x32xf32> to vector<16x32xf32>
    %247 = arith.addf %245, %246 : vector<16x32xf32>
    %cst_118 = arith.constant dense<0.000000e+00> : vector<16x96xf32>
    %248 = tpu.matmul %247, %58, %cst_118 {dimension_numbers = #tpu.dot_dimension_numbers<[1], [0], [0], [1], [0, 0, 1, 1], [], []>} : vector<16x32xf32>, vector<32x96xf32>, vector<16x96xf32> -> vector<16x96xf32>
    %249 = vector.broadcast %57 : vector<1x96xf32> to vector<16x96xf32>
    %250 = arith.addf %248, %249 : vector<16x96xf32>
    %251 = vector.extract_strided_slice %250 {offsets = [0, 0], sizes = [16, 32], strides = [1, 1]} : vector<16x96xf32> to vector<16x32xf32>
    %252 = vector.extract_strided_slice %250 {offsets = [0, 32], sizes = [16, 32], strides = [1, 1]} : vector<16x96xf32> to vector<16x32xf32>
    %253 = vector.extract_strided_slice %250 {offsets = [0, 64], sizes = [16, 32], strides = [1, 1]} : vector<16x96xf32> to vector<16x32xf32>
    %254 = vector.extract_strided_slice %251 {offsets = [0, 0], sizes = [16, 8], strides = [1, 1]} : vector<16x32xf32> to vector<16x8xf32>
    %255 = vector.extract_strided_slice %252 {offsets = [0, 0], sizes = [16, 8], strides = [1, 1]} : vector<16x32xf32> to vector<16x8xf32>
    %cst_119 = arith.constant dense<0.000000e+00> : vector<16x16xf32>
    %256 = tpu.matmul %254, %255, %cst_119 {dimension_numbers = #tpu.dot_dimension_numbers<[1], [1], [0], [0], [0, 0, 1, 0], [], []>} : vector<16x8xf32>, vector<16x8xf32>, vector<16x16xf32> -> vector<16x16xf32>
    %257 = arith.addf %256, %85 : vector<16x16xf32>
    %cst_120 = arith.constant dense<0xFF800000> : vector<16xf32>
    %258 = vector.multi_reduction <maximumf>, %257, %cst_120 [1] : vector<16x16xf32> to vector<16xf32>
    %259 = vector.shape_cast %258 : vector<16xf32> to vector<16x1xf32>
    %260 = vector.broadcast %259 : vector<16x1xf32> to vector<16x16xf32>
    %261 = arith.subf %257, %260 : vector<16x16xf32>
    %262 = math.exp %261 : vector<16x16xf32>
    %cst_121 = arith.constant dense<0.000000e+00> : vector<16xf32>
    %263 = vector.multi_reduction <add>, %262, %cst_121 [1] : vector<16x16xf32> to vector<16xf32>
    %264 = vector.shape_cast %263 : vector<16xf32> to vector<16x1xf32>
    %265 = vector.broadcast %264 : vector<16x1xf32> to vector<16x16xf32>
    %266 = arith.divf %262, %265 : vector<16x16xf32>
    %267 = vector.extract_strided_slice %253 {offsets = [0, 0], sizes = [16, 8], strides = [1, 1]} : vector<16x32xf32> to vector<16x8xf32>
    %cst_122 = arith.constant dense<0.000000e+00> : vector<16x8xf32>
    %268 = tpu.matmul %266, %267, %cst_122 {dimension_numbers = #tpu.dot_dimension_numbers<[1], [0], [0], [1], [0, 0, 1, 1], [], []>} : vector<16x16xf32>, vector<16x8xf32>, vector<16x8xf32> -> vector<16x8xf32>
    %269 = vector.extract_strided_slice %59 {offsets = [0, 0], sizes = [8, 32], strides = [1, 1]} : vector<32x32xf32> to vector<8x32xf32>
    %cst_123 = arith.constant dense<0.000000e+00> : vector<16x32xf32>
    %270 = tpu.matmul %268, %269, %cst_123 {dimension_numbers = #tpu.dot_dimension_numbers<[1], [0], [0], [1], [0, 0, 1, 1], [], []>} : vector<16x8xf32>, vector<8x32xf32>, vector<16x32xf32> -> vector<16x32xf32>
    %271 = vector.extract_strided_slice %251 {offsets = [0, 8], sizes = [16, 8], strides = [1, 1]} : vector<16x32xf32> to vector<16x8xf32>
    %272 = vector.extract_strided_slice %252 {offsets = [0, 8], sizes = [16, 8], strides = [1, 1]} : vector<16x32xf32> to vector<16x8xf32>
    %cst_124 = arith.constant dense<0.000000e+00> : vector<16x16xf32>
    %273 = tpu.matmul %271, %272, %cst_124 {dimension_numbers = #tpu.dot_dimension_numbers<[1], [1], [0], [0], [0, 0, 1, 0], [], []>} : vector<16x8xf32>, vector<16x8xf32>, vector<16x16xf32> -> vector<16x16xf32>
    %274 = arith.addf %273, %85 : vector<16x16xf32>
    %cst_125 = arith.constant dense<0xFF800000> : vector<16xf32>
    %275 = vector.multi_reduction <maximumf>, %274, %cst_125 [1] : vector<16x16xf32> to vector<16xf32>
    %276 = vector.shape_cast %275 : vector<16xf32> to vector<16x1xf32>
    %277 = vector.broadcast %276 : vector<16x1xf32> to vector<16x16xf32>
    %278 = arith.subf %274, %277 : vector<16x16xf32>
    %279 = math.exp %278 : vector<16x16xf32>
    %cst_126 = arith.constant dense<0.000000e+00> : vector<16xf32>
    %280 = vector.multi_reduction <add>, %279, %cst_126 [1] : vector<16x16xf32> to vector<16xf32>
    %281 = vector.shape_cast %280 : vector<16xf32> to vector<16x1xf32>
    %282 = vector.broadcast %281 : vector<16x1xf32> to vector<16x16xf32>
    %283 = arith.divf %279, %282 : vector<16x16xf32>
    %284 = vector.extract_strided_slice %253 {offsets = [0, 8], sizes = [16, 8], strides = [1, 1]} : vector<16x32xf32> to vector<16x8xf32>
    %cst_127 = arith.constant dense<0.000000e+00> : vector<16x8xf32>
    %285 = tpu.matmul %283, %284, %cst_127 {dimension_numbers = #tpu.dot_dimension_numbers<[1], [0], [0], [1], [0, 0, 1, 1], [], []>} : vector<16x16xf32>, vector<16x8xf32>, vector<16x8xf32> -> vector<16x8xf32>
    %286 = vector.extract_strided_slice %59 {offsets = [8, 0], sizes = [8, 32], strides = [1, 1]} : vector<32x32xf32> to vector<8x32xf32>
    %cst_128 = arith.constant dense<0.000000e+00> : vector<16x32xf32>
    %287 = tpu.matmul %285, %286, %cst_128 {dimension_numbers = #tpu.dot_dimension_numbers<[1], [0], [0], [1], [0, 0, 1, 1], [], []>} : vector<16x8xf32>, vector<8x32xf32>, vector<16x32xf32> -> vector<16x32xf32>
    %288 = arith.addf %270, %287 : vector<16x32xf32>
    %289 = vector.extract_strided_slice %251 {offsets = [0, 16], sizes = [16, 8], strides = [1, 1]} : vector<16x32xf32> to vector<16x8xf32>
    %290 = vector.extract_strided_slice %252 {offsets = [0, 16], sizes = [16, 8], strides = [1, 1]} : vector<16x32xf32> to vector<16x8xf32>
    %cst_129 = arith.constant dense<0.000000e+00> : vector<16x16xf32>
    %291 = tpu.matmul %289, %290, %cst_129 {dimension_numbers = #tpu.dot_dimension_numbers<[1], [1], [0], [0], [0, 0, 1, 0], [], []>} : vector<16x8xf32>, vector<16x8xf32>, vector<16x16xf32> -> vector<16x16xf32>
    %292 = arith.addf %291, %85 : vector<16x16xf32>
    %cst_130 = arith.constant dense<0xFF800000> : vector<16xf32>
    %293 = vector.multi_reduction <maximumf>, %292, %cst_130 [1] : vector<16x16xf32> to vector<16xf32>
    %294 = vector.shape_cast %293 : vector<16xf32> to vector<16x1xf32>
    %295 = vector.broadcast %294 : vector<16x1xf32> to vector<16x16xf32>
    %296 = arith.subf %292, %295 : vector<16x16xf32>
    %297 = math.exp %296 : vector<16x16xf32>
    %cst_131 = arith.constant dense<0.000000e+00> : vector<16xf32>
    %298 = vector.multi_reduction <add>, %297, %cst_131 [1] : vector<16x16xf32> to vector<16xf32>
    %299 = vector.shape_cast %298 : vector<16xf32> to vector<16x1xf32>
    %300 = vector.broadcast %299 : vector<16x1xf32> to vector<16x16xf32>
    %301 = arith.divf %297, %300 : vector<16x16xf32>
    %302 = vector.extract_strided_slice %253 {offsets = [0, 16], sizes = [16, 8], strides = [1, 1]} : vector<16x32xf32> to vector<16x8xf32>
    %cst_132 = arith.constant dense<0.000000e+00> : vector<16x8xf32>
    %303 = tpu.matmul %301, %302, %cst_132 {dimension_numbers = #tpu.dot_dimension_numbers<[1], [0], [0], [1], [0, 0, 1, 1], [], []>} : vector<16x16xf32>, vector<16x8xf32>, vector<16x8xf32> -> vector<16x8xf32>
    %304 = vector.extract_strided_slice %59 {offsets = [16, 0], sizes = [8, 32], strides = [1, 1]} : vector<32x32xf32> to vector<8x32xf32>
    %cst_133 = arith.constant dense<0.000000e+00> : vector<16x32xf32>
    %305 = tpu.matmul %303, %304, %cst_133 {dimension_numbers = #tpu.dot_dimension_numbers<[1], [0], [0], [1], [0, 0, 1, 1], [], []>} : vector<16x8xf32>, vector<8x32xf32>, vector<16x32xf32> -> vector<16x32xf32>
    %306 = arith.addf %288, %305 : vector<16x32xf32>
    %307 = vector.extract_strided_slice %251 {offsets = [0, 24], sizes = [16, 8], strides = [1, 1]} : vector<16x32xf32> to vector<16x8xf32>
    %308 = vector.extract_strided_slice %252 {offsets = [0, 24], sizes = [16, 8], strides = [1, 1]} : vector<16x32xf32> to vector<16x8xf32>
    %cst_134 = arith.constant dense<0.000000e+00> : vector<16x16xf32>
    %309 = tpu.matmul %307, %308, %cst_134 {dimension_numbers = #tpu.dot_dimension_numbers<[1], [1], [0], [0], [0, 0, 1, 0], [], []>} : vector<16x8xf32>, vector<16x8xf32>, vector<16x16xf32> -> vector<16x16xf32>
    %310 = arith.addf %309, %85 : vector<16x16xf32>
    %cst_135 = arith.constant dense<0xFF800000> : vector<16xf32>
    %311 = vector.multi_reduction <maximumf>, %310, %cst_135 [1] : vector<16x16xf32> to vector<16xf32>
    %312 = vector.shape_cast %311 : vector<16xf32> to vector<16x1xf32>
    %313 = vector.broadcast %312 : vector<16x1xf32> to vector<16x16xf32>
    %314 = arith.subf %310, %313 : vector<16x16xf32>
    %315 = math.exp %314 : vector<16x16xf32>
    %cst_136 = arith.constant dense<0.000000e+00> : vector<16xf32>
    %316 = vector.multi_reduction <add>, %315, %cst_136 [1] : vector<16x16xf32> to vector<16xf32>
    %317 = vector.shape_cast %316 : vector<16xf32> to vector<16x1xf32>
    %318 = vector.broadcast %317 : vector<16x1xf32> to vector<16x16xf32>
    %319 = arith.divf %315, %318 : vector<16x16xf32>
    %320 = vector.extract_strided_slice %253 {offsets = [0, 24], sizes = [16, 8], strides = [1, 1]} : vector<16x32xf32> to vector<16x8xf32>
    %cst_137 = arith.constant dense<0.000000e+00> : vector<16x8xf32>
    %321 = tpu.matmul %319, %320, %cst_137 {dimension_numbers = #tpu.dot_dimension_numbers<[1], [0], [0], [1], [0, 0, 1, 1], [], []>} : vector<16x16xf32>, vector<16x8xf32>, vector<16x8xf32> -> vector<16x8xf32>
    %322 = vector.extract_strided_slice %59 {offsets = [24, 0], sizes = [8, 32], strides = [1, 1]} : vector<32x32xf32> to vector<8x32xf32>
    %cst_138 = arith.constant dense<0.000000e+00> : vector<16x32xf32>
    %323 = tpu.matmul %321, %322, %cst_138 {dimension_numbers = #tpu.dot_dimension_numbers<[1], [0], [0], [1], [0, 0, 1, 1], [], []>} : vector<16x8xf32>, vector<8x32xf32>, vector<16x32xf32> -> vector<16x32xf32>
    %324 = arith.addf %306, %323 : vector<16x32xf32>
    %325 = vector.broadcast %56 : vector<1x32xf32> to vector<16x32xf32>
    %326 = arith.addf %324, %325 : vector<16x32xf32>
    %327 = arith.addf %247, %326 : vector<16x32xf32>
    %cst_139 = arith.constant dense<0.000000e+00> : vector<16xf32>
    %328 = vector.multi_reduction <add>, %327, %cst_139 [1] : vector<16x32xf32> to vector<16xf32>
    %329 = vector.shape_cast %328 : vector<16xf32> to vector<16x1xf32>
    %cst_140 = arith.constant 3.200000e+01 : f32
    %330 = vector.broadcast %cst_140 : f32 to vector<16x1xf32>
    %331 = arith.divf %329, %330 : vector<16x1xf32>
    %332 = vector.broadcast %331 : vector<16x1xf32> to vector<16x32xf32>
    %333 = arith.subf %327, %332 : vector<16x32xf32>
    %334 = arith.mulf %333, %333 : vector<16x32xf32>
    %cst_141 = arith.constant dense<0.000000e+00> : vector<16xf32>
    %335 = vector.multi_reduction <add>, %334, %cst_141 [1] : vector<16x32xf32> to vector<16xf32>
    %336 = vector.shape_cast %335 : vector<16xf32> to vector<16x1xf32>
    %cst_142 = arith.constant 3.200000e+01 : f32
    %337 = vector.broadcast %cst_142 : f32 to vector<16x1xf32>
    %338 = arith.divf %336, %337 : vector<16x1xf32>
    %339 = vector.broadcast %331 : vector<16x1xf32> to vector<16x32xf32>
    %340 = arith.subf %327, %339 : vector<16x32xf32>
    %cst_143 = arith.constant 9.99999974E-6 : f32
    %341 = vector.broadcast %cst_143 : f32 to vector<16x1xf32>
    %342 = arith.addf %338, %341 : vector<16x1xf32>
    %343 = math.rsqrt %342 : vector<16x1xf32>
    %344 = vector.broadcast %343 : vector<16x1xf32> to vector<16x32xf32>
    %345 = arith.mulf %340, %344 : vector<16x32xf32>
    %346 = vector.broadcast %65 : vector<1x32xf32> to vector<16x32xf32>
    %347 = arith.mulf %345, %346 : vector<16x32xf32>
    %348 = vector.broadcast %64 : vector<1x32xf32> to vector<16x32xf32>
    %349 = arith.addf %347, %348 : vector<16x32xf32>
    %cst_144 = arith.constant dense<0.000000e+00> : vector<16x64xf32>
    %350 = tpu.matmul %349, %61, %cst_144 {dimension_numbers = #tpu.dot_dimension_numbers<[1], [0], [0], [1], [0, 0, 1, 1], [], []>} : vector<16x32xf32>, vector<32x64xf32>, vector<16x64xf32> -> vector<16x64xf32>
    %351 = vector.broadcast %60 : vector<1x64xf32> to vector<16x64xf32>
    %352 = arith.addf %350, %351 : vector<16x64xf32>
    %cst_145 = arith.constant 0.000000e+00 : f32
    %353 = vector.broadcast %cst_145 : f32 to vector<16x64xf32>
    %354 = arith.maximumf %352, %353 : vector<16x64xf32>
    %cst_146 = arith.constant dense<0.000000e+00> : vector<16x32xf32>
    %355 = tpu.matmul %354, %63, %cst_146 {dimension_numbers = #tpu.dot_dimension_numbers<[1], [0], [0], [1], [0, 0, 1, 1], [], []>} : vector<16x64xf32>, vector<64x32xf32>, vector<16x32xf32> -> vector<16x32xf32>
    %356 = vector.broadcast %62 : vector<1x32xf32> to vector<16x32xf32>
    %357 = arith.addf %355, %356 : vector<16x32xf32>
    %358 = arith.addf %349, %357 : vector<16x32xf32>
    %cst_147 = arith.constant dense<0.000000e+00> : vector<16xf32>
    %359 = vector.multi_reduction <add>, %358, %cst_147 [1] : vector<16x32xf32> to vector<16xf32>
    %360 = vector.shape_cast %359 : vector<16xf32> to vector<16x1xf32>
    %cst_148 = arith.constant 3.200000e+01 : f32
    %361 = vector.broadcast %cst_148 : f32 to vector<16x1xf32>
    %362 = arith.divf %360, %361 : vector<16x1xf32>
    %363 = vector.broadcast %362 : vector<16x1xf32> to vector<16x32xf32>
    %364 = arith.subf %358, %363 : vector<16x32xf32>
    %365 = arith.mulf %364, %364 : vector<16x32xf32>
    %cst_149 = arith.constant dense<0.000000e+00> : vector<16xf32>
    %366 = vector.multi_reduction <add>, %365, %cst_149 [1] : vector<16x32xf32> to vector<16xf32>
    %367 = vector.shape_cast %366 : vector<16xf32> to vector<16x1xf32>
    %cst_150 = arith.constant 3.200000e+01 : f32
    %368 = vector.broadcast %cst_150 : f32 to vector<16x1xf32>
    %369 = arith.divf %367, %368 : vector<16x1xf32>
    %370 = vector.broadcast %362 : vector<16x1xf32> to vector<16x32xf32>
    %371 = arith.subf %358, %370 : vector<16x32xf32>
    %cst_151 = arith.constant 9.99999974E-6 : f32
    %372 = vector.broadcast %cst_151 : f32 to vector<16x1xf32>
    %373 = arith.addf %369, %372 : vector<16x1xf32>
    %374 = math.rsqrt %373 : vector<16x1xf32>
    %375 = vector.broadcast %374 : vector<16x1xf32> to vector<16x32xf32>
    %376 = arith.mulf %371, %375 : vector<16x32xf32>
    %377 = vector.broadcast %67 : vector<1x32xf32> to vector<16x32xf32>
    %378 = arith.mulf %376, %377 : vector<16x32xf32>
    %379 = vector.broadcast %66 : vector<1x32xf32> to vector<16x32xf32>
    %380 = arith.addf %378, %379 : vector<16x32xf32>
    %cst_152 = arith.constant dense<0.000000e+00> : vector<16xf32>
    %381 = vector.multi_reduction <add>, %380, %cst_152 [1] : vector<16x32xf32> to vector<16xf32>
    %382 = vector.shape_cast %381 : vector<16xf32> to vector<16x1xf32>
    %cst_153 = arith.constant 3.200000e+01 : f32
    %383 = vector.broadcast %cst_153 : f32 to vector<16x1xf32>
    %384 = arith.divf %382, %383 : vector<16x1xf32>
    %385 = vector.broadcast %384 : vector<16x1xf32> to vector<16x32xf32>
    %386 = arith.subf %380, %385 : vector<16x32xf32>
    %387 = arith.mulf %386, %386 : vector<16x32xf32>
    %cst_154 = arith.constant dense<0.000000e+00> : vector<16xf32>
    %388 = vector.multi_reduction <add>, %387, %cst_154 [1] : vector<16x32xf32> to vector<16xf32>
    %389 = vector.shape_cast %388 : vector<16xf32> to vector<16x1xf32>
    %cst_155 = arith.constant 3.200000e+01 : f32
    %390 = vector.broadcast %cst_155 : f32 to vector<16x1xf32>
    %391 = arith.divf %389, %390 : vector<16x1xf32>
    %392 = vector.broadcast %384 : vector<16x1xf32> to vector<16x32xf32>
    %393 = arith.subf %380, %392 : vector<16x32xf32>
    %cst_156 = arith.constant 9.99999974E-6 : f32
    %394 = vector.broadcast %cst_156 : f32 to vector<16x1xf32>
    %395 = arith.addf %391, %394 : vector<16x1xf32>
    %396 = math.rsqrt %395 : vector<16x1xf32>
    %397 = vector.broadcast %396 : vector<16x1xf32> to vector<16x32xf32>
    %398 = arith.mulf %393, %397 : vector<16x32xf32>
    %399 = vector.broadcast %43 : vector<1x32xf32> to vector<16x32xf32>
    %400 = arith.mulf %398, %399 : vector<16x32xf32>
    %401 = vector.broadcast %42 : vector<1x32xf32> to vector<16x32xf32>
    %402 = arith.addf %400, %401 : vector<16x32xf32>
    %403 = tpu.concatenate %68, %68 in 0 : vector<5x32xf32>, vector<5x32xf32> -> vector<10x32xf32>
    %cst_157 = arith.constant dense<0.000000e+00> : vector<10x96xf32>
    %404 = tpu.matmul %403, %20, %cst_157 {dimension_numbers = #tpu.dot_dimension_numbers<[1], [0], [0], [1], [0, 0, 1, 1], [], []>} : vector<10x32xf32>, vector<32x96xf32>, vector<10x96xf32> -> vector<10x96xf32>
    %405 = vector.broadcast %19 : vector<1x96xf32> to vector<10x96xf32>
    %406 = arith.addf %404, %405 : vector<10x96xf32>
    %407 = vector.extract_strided_slice %406 {offsets = [0, 0], sizes = [10, 32], strides = [1, 1]} : vector<10x96xf32> to vector<10x32xf32>
    %408 = vector.extract_strided_slice %406 {offsets = [0, 32], sizes = [10, 32], strides = [1, 1]} : vector<10x96xf32> to vector<10x32xf32>
    %409 = vector.extract_strided_slice %406 {offsets = [0, 64], sizes = [10, 32], strides = [1, 1]} : vector<10x96xf32> to vector<10x32xf32>
    %410 = vector.extract_strided_slice %407 {offsets = [0, 0], sizes = [10, 8], strides = [1, 1]} : vector<10x32xf32> to vector<10x8xf32>
    %411 = vector.extract_strided_slice %408 {offsets = [0, 0], sizes = [10, 8], strides = [1, 1]} : vector<10x32xf32> to vector<10x8xf32>
    %cst_158 = arith.constant dense<0.000000e+00> : vector<10x10xf32>
    %412 = tpu.matmul %410, %411, %cst_158 {dimension_numbers = #tpu.dot_dimension_numbers<[1], [1], [0], [0], [0, 0, 1, 0], [], []>} : vector<10x8xf32>, vector<10x8xf32>, vector<10x10xf32> -> vector<10x10xf32>
    %413 = arith.addf %412, %99 : vector<10x10xf32>
    %cst_159 = arith.constant dense<0xFF800000> : vector<10xf32>
    %414 = vector.multi_reduction <maximumf>, %413, %cst_159 [1] : vector<10x10xf32> to vector<10xf32>
    %415 = vector.shape_cast %414 : vector<10xf32> to vector<10x1xf32>
    %416 = vector.broadcast %415 : vector<10x1xf32> to vector<10x10xf32>
    %417 = arith.subf %413, %416 : vector<10x10xf32>
    %418 = math.exp %417 : vector<10x10xf32>
    %cst_160 = arith.constant dense<0.000000e+00> : vector<10xf32>
    %419 = vector.multi_reduction <add>, %418, %cst_160 [1] : vector<10x10xf32> to vector<10xf32>
    %420 = vector.shape_cast %419 : vector<10xf32> to vector<10x1xf32>
    %421 = vector.broadcast %420 : vector<10x1xf32> to vector<10x10xf32>
    %422 = arith.divf %418, %421 : vector<10x10xf32>
    %423 = vector.extract_strided_slice %409 {offsets = [0, 0], sizes = [10, 8], strides = [1, 1]} : vector<10x32xf32> to vector<10x8xf32>
    %cst_161 = arith.constant dense<0.000000e+00> : vector<10x8xf32>
    %424 = tpu.matmul %422, %423, %cst_161 {dimension_numbers = #tpu.dot_dimension_numbers<[1], [0], [0], [1], [0, 0, 1, 1], [], []>} : vector<10x10xf32>, vector<10x8xf32>, vector<10x8xf32> -> vector<10x8xf32>
    %425 = vector.extract_strided_slice %21 {offsets = [0, 0], sizes = [8, 32], strides = [1, 1]} : vector<32x32xf32> to vector<8x32xf32>
    %cst_162 = arith.constant dense<0.000000e+00> : vector<10x32xf32>
    %426 = tpu.matmul %424, %425, %cst_162 {dimension_numbers = #tpu.dot_dimension_numbers<[1], [0], [0], [1], [0, 0, 1, 1], [], []>} : vector<10x8xf32>, vector<8x32xf32>, vector<10x32xf32> -> vector<10x32xf32>
    %427 = vector.extract_strided_slice %407 {offsets = [0, 8], sizes = [10, 8], strides = [1, 1]} : vector<10x32xf32> to vector<10x8xf32>
    %428 = vector.extract_strided_slice %408 {offsets = [0, 8], sizes = [10, 8], strides = [1, 1]} : vector<10x32xf32> to vector<10x8xf32>
    %cst_163 = arith.constant dense<0.000000e+00> : vector<10x10xf32>
    %429 = tpu.matmul %427, %428, %cst_163 {dimension_numbers = #tpu.dot_dimension_numbers<[1], [1], [0], [0], [0, 0, 1, 0], [], []>} : vector<10x8xf32>, vector<10x8xf32>, vector<10x10xf32> -> vector<10x10xf32>
    %430 = arith.addf %429, %99 : vector<10x10xf32>
    %cst_164 = arith.constant dense<0xFF800000> : vector<10xf32>
    %431 = vector.multi_reduction <maximumf>, %430, %cst_164 [1] : vector<10x10xf32> to vector<10xf32>
    %432 = vector.shape_cast %431 : vector<10xf32> to vector<10x1xf32>
    %433 = vector.broadcast %432 : vector<10x1xf32> to vector<10x10xf32>
    %434 = arith.subf %430, %433 : vector<10x10xf32>
    %435 = math.exp %434 : vector<10x10xf32>
    %cst_165 = arith.constant dense<0.000000e+00> : vector<10xf32>
    %436 = vector.multi_reduction <add>, %435, %cst_165 [1] : vector<10x10xf32> to vector<10xf32>
    %437 = vector.shape_cast %436 : vector<10xf32> to vector<10x1xf32>
    %438 = vector.broadcast %437 : vector<10x1xf32> to vector<10x10xf32>
    %439 = arith.divf %435, %438 : vector<10x10xf32>
    %440 = vector.extract_strided_slice %409 {offsets = [0, 8], sizes = [10, 8], strides = [1, 1]} : vector<10x32xf32> to vector<10x8xf32>
    %cst_166 = arith.constant dense<0.000000e+00> : vector<10x8xf32>
    %441 = tpu.matmul %439, %440, %cst_166 {dimension_numbers = #tpu.dot_dimension_numbers<[1], [0], [0], [1], [0, 0, 1, 1], [], []>} : vector<10x10xf32>, vector<10x8xf32>, vector<10x8xf32> -> vector<10x8xf32>
    %442 = vector.extract_strided_slice %21 {offsets = [8, 0], sizes = [8, 32], strides = [1, 1]} : vector<32x32xf32> to vector<8x32xf32>
    %cst_167 = arith.constant dense<0.000000e+00> : vector<10x32xf32>
    %443 = tpu.matmul %441, %442, %cst_167 {dimension_numbers = #tpu.dot_dimension_numbers<[1], [0], [0], [1], [0, 0, 1, 1], [], []>} : vector<10x8xf32>, vector<8x32xf32>, vector<10x32xf32> -> vector<10x32xf32>
    %444 = arith.addf %426, %443 : vector<10x32xf32>
    %445 = vector.extract_strided_slice %407 {offsets = [0, 16], sizes = [10, 8], strides = [1, 1]} : vector<10x32xf32> to vector<10x8xf32>
    %446 = vector.extract_strided_slice %408 {offsets = [0, 16], sizes = [10, 8], strides = [1, 1]} : vector<10x32xf32> to vector<10x8xf32>
    %cst_168 = arith.constant dense<0.000000e+00> : vector<10x10xf32>
    %447 = tpu.matmul %445, %446, %cst_168 {dimension_numbers = #tpu.dot_dimension_numbers<[1], [1], [0], [0], [0, 0, 1, 0], [], []>} : vector<10x8xf32>, vector<10x8xf32>, vector<10x10xf32> -> vector<10x10xf32>
    %448 = arith.addf %447, %99 : vector<10x10xf32>
    %cst_169 = arith.constant dense<0xFF800000> : vector<10xf32>
    %449 = vector.multi_reduction <maximumf>, %448, %cst_169 [1] : vector<10x10xf32> to vector<10xf32>
    %450 = vector.shape_cast %449 : vector<10xf32> to vector<10x1xf32>
    %451 = vector.broadcast %450 : vector<10x1xf32> to vector<10x10xf32>
    %452 = arith.subf %448, %451 : vector<10x10xf32>
    %453 = math.exp %452 : vector<10x10xf32>
    %cst_170 = arith.constant dense<0.000000e+00> : vector<10xf32>
    %454 = vector.multi_reduction <add>, %453, %cst_170 [1] : vector<10x10xf32> to vector<10xf32>
    %455 = vector.shape_cast %454 : vector<10xf32> to vector<10x1xf32>
    %456 = vector.broadcast %455 : vector<10x1xf32> to vector<10x10xf32>
    %457 = arith.divf %453, %456 : vector<10x10xf32>
    %458 = vector.extract_strided_slice %409 {offsets = [0, 16], sizes = [10, 8], strides = [1, 1]} : vector<10x32xf32> to vector<10x8xf32>
    %cst_171 = arith.constant dense<0.000000e+00> : vector<10x8xf32>
    %459 = tpu.matmul %457, %458, %cst_171 {dimension_numbers = #tpu.dot_dimension_numbers<[1], [0], [0], [1], [0, 0, 1, 1], [], []>} : vector<10x10xf32>, vector<10x8xf32>, vector<10x8xf32> -> vector<10x8xf32>
    %460 = vector.extract_strided_slice %21 {offsets = [16, 0], sizes = [8, 32], strides = [1, 1]} : vector<32x32xf32> to vector<8x32xf32>
    %cst_172 = arith.constant dense<0.000000e+00> : vector<10x32xf32>
    %461 = tpu.matmul %459, %460, %cst_172 {dimension_numbers = #tpu.dot_dimension_numbers<[1], [0], [0], [1], [0, 0, 1, 1], [], []>} : vector<10x8xf32>, vector<8x32xf32>, vector<10x32xf32> -> vector<10x32xf32>
    %462 = arith.addf %444, %461 : vector<10x32xf32>
    %463 = vector.extract_strided_slice %407 {offsets = [0, 24], sizes = [10, 8], strides = [1, 1]} : vector<10x32xf32> to vector<10x8xf32>
    %464 = vector.extract_strided_slice %408 {offsets = [0, 24], sizes = [10, 8], strides = [1, 1]} : vector<10x32xf32> to vector<10x8xf32>
    %cst_173 = arith.constant dense<0.000000e+00> : vector<10x10xf32>
    %465 = tpu.matmul %463, %464, %cst_173 {dimension_numbers = #tpu.dot_dimension_numbers<[1], [1], [0], [0], [0, 0, 1, 0], [], []>} : vector<10x8xf32>, vector<10x8xf32>, vector<10x10xf32> -> vector<10x10xf32>
    %466 = arith.addf %465, %99 : vector<10x10xf32>
    %cst_174 = arith.constant dense<0xFF800000> : vector<10xf32>
    %467 = vector.multi_reduction <maximumf>, %466, %cst_174 [1] : vector<10x10xf32> to vector<10xf32>
    %468 = vector.shape_cast %467 : vector<10xf32> to vector<10x1xf32>
    %469 = vector.broadcast %468 : vector<10x1xf32> to vector<10x10xf32>
    %470 = arith.subf %466, %469 : vector<10x10xf32>
    %471 = math.exp %470 : vector<10x10xf32>
    %cst_175 = arith.constant dense<0.000000e+00> : vector<10xf32>
    %472 = vector.multi_reduction <add>, %471, %cst_175 [1] : vector<10x10xf32> to vector<10xf32>
    %473 = vector.shape_cast %472 : vector<10xf32> to vector<10x1xf32>
    %474 = vector.broadcast %473 : vector<10x1xf32> to vector<10x10xf32>
    %475 = arith.divf %471, %474 : vector<10x10xf32>
    %476 = vector.extract_strided_slice %409 {offsets = [0, 24], sizes = [10, 8], strides = [1, 1]} : vector<10x32xf32> to vector<10x8xf32>
    %cst_176 = arith.constant dense<0.000000e+00> : vector<10x8xf32>
    %477 = tpu.matmul %475, %476, %cst_176 {dimension_numbers = #tpu.dot_dimension_numbers<[1], [0], [0], [1], [0, 0, 1, 1], [], []>} : vector<10x10xf32>, vector<10x8xf32>, vector<10x8xf32> -> vector<10x8xf32>
    %478 = vector.extract_strided_slice %21 {offsets = [24, 0], sizes = [8, 32], strides = [1, 1]} : vector<32x32xf32> to vector<8x32xf32>
    %cst_177 = arith.constant dense<0.000000e+00> : vector<10x32xf32>
    %479 = tpu.matmul %477, %478, %cst_177 {dimension_numbers = #tpu.dot_dimension_numbers<[1], [0], [0], [1], [0, 0, 1, 1], [], []>} : vector<10x8xf32>, vector<8x32xf32>, vector<10x32xf32> -> vector<10x32xf32>
    %480 = arith.addf %462, %479 : vector<10x32xf32>
    %481 = vector.broadcast %18 : vector<1x32xf32> to vector<10x32xf32>
    %482 = arith.addf %480, %481 : vector<10x32xf32>
    %483 = arith.addf %403, %482 : vector<10x32xf32>
    %cst_178 = arith.constant dense<0.000000e+00> : vector<10xf32>
    %484 = vector.multi_reduction <add>, %483, %cst_178 [1] : vector<10x32xf32> to vector<10xf32>
    %485 = vector.shape_cast %484 : vector<10xf32> to vector<10x1xf32>
    %cst_179 = arith.constant 3.200000e+01 : f32
    %486 = vector.broadcast %cst_179 : f32 to vector<10x1xf32>
    %487 = arith.divf %485, %486 : vector<10x1xf32>
    %488 = vector.broadcast %487 : vector<10x1xf32> to vector<10x32xf32>
    %489 = arith.subf %483, %488 : vector<10x32xf32>
    %490 = arith.mulf %489, %489 : vector<10x32xf32>
    %cst_180 = arith.constant dense<0.000000e+00> : vector<10xf32>
    %491 = vector.multi_reduction <add>, %490, %cst_180 [1] : vector<10x32xf32> to vector<10xf32>
    %492 = vector.shape_cast %491 : vector<10xf32> to vector<10x1xf32>
    %cst_181 = arith.constant 3.200000e+01 : f32
    %493 = vector.broadcast %cst_181 : f32 to vector<10x1xf32>
    %494 = arith.divf %492, %493 : vector<10x1xf32>
    %495 = vector.broadcast %487 : vector<10x1xf32> to vector<10x32xf32>
    %496 = arith.subf %483, %495 : vector<10x32xf32>
    %cst_182 = arith.constant 9.99999974E-6 : f32
    %497 = vector.broadcast %cst_182 : f32 to vector<10x1xf32>
    %498 = arith.addf %494, %497 : vector<10x1xf32>
    %499 = math.rsqrt %498 : vector<10x1xf32>
    %500 = vector.broadcast %499 : vector<10x1xf32> to vector<10x32xf32>
    %501 = arith.mulf %496, %500 : vector<10x32xf32>
    %502 = vector.broadcast %13 : vector<1x32xf32> to vector<10x32xf32>
    %503 = arith.mulf %501, %502 : vector<10x32xf32>
    %504 = vector.broadcast %12 : vector<1x32xf32> to vector<10x32xf32>
    %505 = arith.addf %503, %504 : vector<10x32xf32>
    %cst_183 = arith.constant dense<0.000000e+00> : vector<10x32xf32>
    %506 = tpu.matmul %505, %6, %cst_183 {dimension_numbers = #tpu.dot_dimension_numbers<[1], [0], [0], [1], [0, 0, 1, 1], [], []>} : vector<10x32xf32>, vector<32x32xf32>, vector<10x32xf32> -> vector<10x32xf32>
    %507 = vector.broadcast %5 : vector<1x32xf32> to vector<10x32xf32>
    %508 = arith.addf %506, %507 : vector<10x32xf32>
    %cst_184 = arith.constant dense<0.000000e+00> : vector<16x64xf32>
    %509 = tpu.matmul %402, %4, %cst_184 {dimension_numbers = #tpu.dot_dimension_numbers<[1], [0], [0], [1], [0, 0, 1, 1], [], []>} : vector<16x32xf32>, vector<32x64xf32>, vector<16x64xf32> -> vector<16x64xf32>
    %510 = vector.broadcast %3 : vector<1x64xf32> to vector<16x64xf32>
    %511 = arith.addf %509, %510 : vector<16x64xf32>
    %512 = vector.extract_strided_slice %511 {offsets = [0, 0], sizes = [16, 32], strides = [1, 1]} : vector<16x64xf32> to vector<16x32xf32>
    %513 = vector.extract_strided_slice %511 {offsets = [0, 32], sizes = [16, 32], strides = [1, 1]} : vector<16x64xf32> to vector<16x32xf32>
    %514 = vector.extract_strided_slice %508 {offsets = [0, 0], sizes = [10, 8], strides = [1, 1]} : vector<10x32xf32> to vector<10x8xf32>
    %515 = vector.extract_strided_slice %512 {offsets = [0, 0], sizes = [16, 8], strides = [1, 1]} : vector<16x32xf32> to vector<16x8xf32>
    %cst_185 = arith.constant dense<0.000000e+00> : vector<10x16xf32>
    %516 = tpu.matmul %514, %515, %cst_185 {dimension_numbers = #tpu.dot_dimension_numbers<[1], [1], [0], [0], [0, 0, 1, 0], [], []>} : vector<10x8xf32>, vector<16x8xf32>, vector<10x16xf32> -> vector<10x16xf32>
    %517 = arith.addf %516, %113 : vector<10x16xf32>
    %cst_186 = arith.constant dense<0xFF800000> : vector<10xf32>
    %518 = vector.multi_reduction <maximumf>, %517, %cst_186 [1] : vector<10x16xf32> to vector<10xf32>
    %519 = vector.shape_cast %518 : vector<10xf32> to vector<10x1xf32>
    %520 = vector.broadcast %519 : vector<10x1xf32> to vector<10x16xf32>
    %521 = arith.subf %517, %520 : vector<10x16xf32>
    %522 = math.exp %521 : vector<10x16xf32>
    %cst_187 = arith.constant dense<0.000000e+00> : vector<10xf32>
    %523 = vector.multi_reduction <add>, %522, %cst_187 [1] : vector<10x16xf32> to vector<10xf32>
    %524 = vector.shape_cast %523 : vector<10xf32> to vector<10x1xf32>
    %525 = vector.broadcast %524 : vector<10x1xf32> to vector<10x16xf32>
    %526 = arith.divf %522, %525 : vector<10x16xf32>
    %527 = vector.extract_strided_slice %513 {offsets = [0, 0], sizes = [16, 8], strides = [1, 1]} : vector<16x32xf32> to vector<16x8xf32>
    %cst_188 = arith.constant dense<0.000000e+00> : vector<10x8xf32>
    %528 = tpu.matmul %526, %527, %cst_188 {dimension_numbers = #tpu.dot_dimension_numbers<[1], [0], [0], [1], [0, 0, 1, 1], [], []>} : vector<10x16xf32>, vector<16x8xf32>, vector<10x8xf32> -> vector<10x8xf32>
    %529 = vector.extract_strided_slice %7 {offsets = [0, 0], sizes = [8, 32], strides = [1, 1]} : vector<32x32xf32> to vector<8x32xf32>
    %cst_189 = arith.constant dense<0.000000e+00> : vector<10x32xf32>
    %530 = tpu.matmul %528, %529, %cst_189 {dimension_numbers = #tpu.dot_dimension_numbers<[1], [0], [0], [1], [0, 0, 1, 1], [], []>} : vector<10x8xf32>, vector<8x32xf32>, vector<10x32xf32> -> vector<10x32xf32>
    %531 = vector.extract_strided_slice %508 {offsets = [0, 8], sizes = [10, 8], strides = [1, 1]} : vector<10x32xf32> to vector<10x8xf32>
    %532 = vector.extract_strided_slice %512 {offsets = [0, 8], sizes = [16, 8], strides = [1, 1]} : vector<16x32xf32> to vector<16x8xf32>
    %cst_190 = arith.constant dense<0.000000e+00> : vector<10x16xf32>
    %533 = tpu.matmul %531, %532, %cst_190 {dimension_numbers = #tpu.dot_dimension_numbers<[1], [1], [0], [0], [0, 0, 1, 0], [], []>} : vector<10x8xf32>, vector<16x8xf32>, vector<10x16xf32> -> vector<10x16xf32>
    %534 = arith.addf %533, %113 : vector<10x16xf32>
    %cst_191 = arith.constant dense<0xFF800000> : vector<10xf32>
    %535 = vector.multi_reduction <maximumf>, %534, %cst_191 [1] : vector<10x16xf32> to vector<10xf32>
    %536 = vector.shape_cast %535 : vector<10xf32> to vector<10x1xf32>
    %537 = vector.broadcast %536 : vector<10x1xf32> to vector<10x16xf32>
    %538 = arith.subf %534, %537 : vector<10x16xf32>
    %539 = math.exp %538 : vector<10x16xf32>
    %cst_192 = arith.constant dense<0.000000e+00> : vector<10xf32>
    %540 = vector.multi_reduction <add>, %539, %cst_192 [1] : vector<10x16xf32> to vector<10xf32>
    %541 = vector.shape_cast %540 : vector<10xf32> to vector<10x1xf32>
    %542 = vector.broadcast %541 : vector<10x1xf32> to vector<10x16xf32>
    %543 = arith.divf %539, %542 : vector<10x16xf32>
    %544 = vector.extract_strided_slice %513 {offsets = [0, 8], sizes = [16, 8], strides = [1, 1]} : vector<16x32xf32> to vector<16x8xf32>
    %cst_193 = arith.constant dense<0.000000e+00> : vector<10x8xf32>
    %545 = tpu.matmul %543, %544, %cst_193 {dimension_numbers = #tpu.dot_dimension_numbers<[1], [0], [0], [1], [0, 0, 1, 1], [], []>} : vector<10x16xf32>, vector<16x8xf32>, vector<10x8xf32> -> vector<10x8xf32>
    %546 = vector.extract_strided_slice %7 {offsets = [8, 0], sizes = [8, 32], strides = [1, 1]} : vector<32x32xf32> to vector<8x32xf32>
    %cst_194 = arith.constant dense<0.000000e+00> : vector<10x32xf32>
    %547 = tpu.matmul %545, %546, %cst_194 {dimension_numbers = #tpu.dot_dimension_numbers<[1], [0], [0], [1], [0, 0, 1, 1], [], []>} : vector<10x8xf32>, vector<8x32xf32>, vector<10x32xf32> -> vector<10x32xf32>
    %548 = arith.addf %530, %547 : vector<10x32xf32>
    %549 = vector.extract_strided_slice %508 {offsets = [0, 16], sizes = [10, 8], strides = [1, 1]} : vector<10x32xf32> to vector<10x8xf32>
    %550 = vector.extract_strided_slice %512 {offsets = [0, 16], sizes = [16, 8], strides = [1, 1]} : vector<16x32xf32> to vector<16x8xf32>
    %cst_195 = arith.constant dense<0.000000e+00> : vector<10x16xf32>
    %551 = tpu.matmul %549, %550, %cst_195 {dimension_numbers = #tpu.dot_dimension_numbers<[1], [1], [0], [0], [0, 0, 1, 0], [], []>} : vector<10x8xf32>, vector<16x8xf32>, vector<10x16xf32> -> vector<10x16xf32>
    %552 = arith.addf %551, %113 : vector<10x16xf32>
    %cst_196 = arith.constant dense<0xFF800000> : vector<10xf32>
    %553 = vector.multi_reduction <maximumf>, %552, %cst_196 [1] : vector<10x16xf32> to vector<10xf32>
    %554 = vector.shape_cast %553 : vector<10xf32> to vector<10x1xf32>
    %555 = vector.broadcast %554 : vector<10x1xf32> to vector<10x16xf32>
    %556 = arith.subf %552, %555 : vector<10x16xf32>
    %557 = math.exp %556 : vector<10x16xf32>
    %cst_197 = arith.constant dense<0.000000e+00> : vector<10xf32>
    %558 = vector.multi_reduction <add>, %557, %cst_197 [1] : vector<10x16xf32> to vector<10xf32>
    %559 = vector.shape_cast %558 : vector<10xf32> to vector<10x1xf32>
    %560 = vector.broadcast %559 : vector<10x1xf32> to vector<10x16xf32>
    %561 = arith.divf %557, %560 : vector<10x16xf32>
    %562 = vector.extract_strided_slice %513 {offsets = [0, 16], sizes = [16, 8], strides = [1, 1]} : vector<16x32xf32> to vector<16x8xf32>
    %cst_198 = arith.constant dense<0.000000e+00> : vector<10x8xf32>
    %563 = tpu.matmul %561, %562, %cst_198 {dimension_numbers = #tpu.dot_dimension_numbers<[1], [0], [0], [1], [0, 0, 1, 1], [], []>} : vector<10x16xf32>, vector<16x8xf32>, vector<10x8xf32> -> vector<10x8xf32>
    %564 = vector.extract_strided_slice %7 {offsets = [16, 0], sizes = [8, 32], strides = [1, 1]} : vector<32x32xf32> to vector<8x32xf32>
    %cst_199 = arith.constant dense<0.000000e+00> : vector<10x32xf32>
    %565 = tpu.matmul %563, %564, %cst_199 {dimension_numbers = #tpu.dot_dimension_numbers<[1], [0], [0], [1], [0, 0, 1, 1], [], []>} : vector<10x8xf32>, vector<8x32xf32>, vector<10x32xf32> -> vector<10x32xf32>
    %566 = arith.addf %548, %565 : vector<10x32xf32>
    %567 = vector.extract_strided_slice %508 {offsets = [0, 24], sizes = [10, 8], strides = [1, 1]} : vector<10x32xf32> to vector<10x8xf32>
    %568 = vector.extract_strided_slice %512 {offsets = [0, 24], sizes = [16, 8], strides = [1, 1]} : vector<16x32xf32> to vector<16x8xf32>
    %cst_200 = arith.constant dense<0.000000e+00> : vector<10x16xf32>
    %569 = tpu.matmul %567, %568, %cst_200 {dimension_numbers = #tpu.dot_dimension_numbers<[1], [1], [0], [0], [0, 0, 1, 0], [], []>} : vector<10x8xf32>, vector<16x8xf32>, vector<10x16xf32> -> vector<10x16xf32>
    %570 = arith.addf %569, %113 : vector<10x16xf32>
    %cst_201 = arith.constant dense<0xFF800000> : vector<10xf32>
    %571 = vector.multi_reduction <maximumf>, %570, %cst_201 [1] : vector<10x16xf32> to vector<10xf32>
    %572 = vector.shape_cast %571 : vector<10xf32> to vector<10x1xf32>
    %573 = vector.broadcast %572 : vector<10x1xf32> to vector<10x16xf32>
    %574 = arith.subf %570, %573 : vector<10x16xf32>
    %575 = math.exp %574 : vector<10x16xf32>
    %cst_202 = arith.constant dense<0.000000e+00> : vector<10xf32>
    %576 = vector.multi_reduction <add>, %575, %cst_202 [1] : vector<10x16xf32> to vector<10xf32>
    %577 = vector.shape_cast %576 : vector<10xf32> to vector<10x1xf32>
    %578 = vector.broadcast %577 : vector<10x1xf32> to vector<10x16xf32>
    %579 = arith.divf %575, %578 : vector<10x16xf32>
    %580 = vector.extract_strided_slice %513 {offsets = [0, 24], sizes = [16, 8], strides = [1, 1]} : vector<16x32xf32> to vector<16x8xf32>
    %cst_203 = arith.constant dense<0.000000e+00> : vector<10x8xf32>
    %581 = tpu.matmul %579, %580, %cst_203 {dimension_numbers = #tpu.dot_dimension_numbers<[1], [0], [0], [1], [0, 0, 1, 1], [], []>} : vector<10x16xf32>, vector<16x8xf32>, vector<10x8xf32> -> vector<10x8xf32>
    %582 = vector.extract_strided_slice %7 {offsets = [24, 0], sizes = [8, 32], strides = [1, 1]} : vector<32x32xf32> to vector<8x32xf32>
    %cst_204 = arith.constant dense<0.000000e+00> : vector<10x32xf32>
    %583 = tpu.matmul %581, %582, %cst_204 {dimension_numbers = #tpu.dot_dimension_numbers<[1], [0], [0], [1], [0, 0, 1, 1], [], []>} : vector<10x8xf32>, vector<8x32xf32>, vector<10x32xf32> -> vector<10x32xf32>
    %584 = arith.addf %566, %583 : vector<10x32xf32>
    %585 = vector.broadcast %2 : vector<1x32xf32> to vector<10x32xf32>
    %586 = arith.addf %584, %585 : vector<10x32xf32>
    %587 = arith.addf %505, %586 : vector<10x32xf32>
    %cst_205 = arith.constant dense<0.000000e+00> : vector<10xf32>
    %588 = vector.multi_reduction <add>, %587, %cst_205 [1] : vector<10x32xf32> to vector<10xf32>
    %589 = vector.shape_cast %588 : vector<10xf32> to vector<10x1xf32>
    %cst_206 = arith.constant 3.200000e+01 : f32
    %590 = vector.broadcast %cst_206 : f32 to vector<10x1xf32>
    %591 = arith.divf %589, %590 : vector<10x1xf32>
    %592 = vector.broadcast %591 : vector<10x1xf32> to vector<10x32xf32>
    %593 = arith.subf %587, %592 : vector<10x32xf32>
    %594 = arith.mulf %593, %593 : vector<10x32xf32>
    %cst_207 = arith.constant dense<0.000000e+00> : vector<10xf32>
    %595 = vector.multi_reduction <add>, %594, %cst_207 [1] : vector<10x32xf32> to vector<10xf32>
    %596 = vector.shape_cast %595 : vector<10xf32> to vector<10x1xf32>
    %cst_208 = arith.constant 3.200000e+01 : f32
    %597 = vector.broadcast %cst_208 : f32 to vector<10x1xf32>
    %598 = arith.divf %596, %597 : vector<10x1xf32>
    %599 = vector.broadcast %591 : vector<10x1xf32> to vector<10x32xf32>
    %600 = arith.subf %587, %599 : vector<10x32xf32>
    %cst_209 = arith.constant 9.99999974E-6 : f32
    %601 = vector.broadcast %cst_209 : f32 to vector<10x1xf32>
    %602 = arith.addf %598, %601 : vector<10x1xf32>
    %603 = math.rsqrt %602 : vector<10x1xf32>
    %604 = vector.broadcast %603 : vector<10x1xf32> to vector<10x32xf32>
    %605 = arith.mulf %600, %604 : vector<10x32xf32>
    %606 = vector.broadcast %15 : vector<1x32xf32> to vector<10x32xf32>
    %607 = arith.mulf %605, %606 : vector<10x32xf32>
    %608 = vector.broadcast %14 : vector<1x32xf32> to vector<10x32xf32>
    %609 = arith.addf %607, %608 : vector<10x32xf32>
    %cst_210 = arith.constant dense<0.000000e+00> : vector<10x64xf32>
    %610 = tpu.matmul %609, %9, %cst_210 {dimension_numbers = #tpu.dot_dimension_numbers<[1], [0], [0], [1], [0, 0, 1, 1], [], []>} : vector<10x32xf32>, vector<32x64xf32>, vector<10x64xf32> -> vector<10x64xf32>
    %611 = vector.broadcast %8 : vector<1x64xf32> to vector<10x64xf32>
    %612 = arith.addf %610, %611 : vector<10x64xf32>
    %cst_211 = arith.constant 0.000000e+00 : f32
    %613 = vector.broadcast %cst_211 : f32 to vector<10x64xf32>
    %614 = arith.maximumf %612, %613 : vector<10x64xf32>
    %cst_212 = arith.constant dense<0.000000e+00> : vector<10x32xf32>
    %615 = tpu.matmul %614, %11, %cst_212 {dimension_numbers = #tpu.dot_dimension_numbers<[1], [0], [0], [1], [0, 0, 1, 1], [], []>} : vector<10x64xf32>, vector<64x32xf32>, vector<10x32xf32> -> vector<10x32xf32>
    %616 = vector.broadcast %10 : vector<1x32xf32> to vector<10x32xf32>
    %617 = arith.addf %615, %616 : vector<10x32xf32>
    %618 = arith.addf %609, %617 : vector<10x32xf32>
    %cst_213 = arith.constant dense<0.000000e+00> : vector<10xf32>
    %619 = vector.multi_reduction <add>, %618, %cst_213 [1] : vector<10x32xf32> to vector<10xf32>
    %620 = vector.shape_cast %619 : vector<10xf32> to vector<10x1xf32>
    %cst_214 = arith.constant 3.200000e+01 : f32
    %621 = vector.broadcast %cst_214 : f32 to vector<10x1xf32>
    %622 = arith.divf %620, %621 : vector<10x1xf32>
    %623 = vector.broadcast %622 : vector<10x1xf32> to vector<10x32xf32>
    %624 = arith.subf %618, %623 : vector<10x32xf32>
    %625 = arith.mulf %624, %624 : vector<10x32xf32>
    %cst_215 = arith.constant dense<0.000000e+00> : vector<10xf32>
    %626 = vector.multi_reduction <add>, %625, %cst_215 [1] : vector<10x32xf32> to vector<10xf32>
    %627 = vector.shape_cast %626 : vector<10xf32> to vector<10x1xf32>
    %cst_216 = arith.constant 3.200000e+01 : f32
    %628 = vector.broadcast %cst_216 : f32 to vector<10x1xf32>
    %629 = arith.divf %627, %628 : vector<10x1xf32>
    %630 = vector.broadcast %622 : vector<10x1xf32> to vector<10x32xf32>
    %631 = arith.subf %618, %630 : vector<10x32xf32>
    %cst_217 = arith.constant 9.99999974E-6 : f32
    %632 = vector.broadcast %cst_217 : f32 to vector<10x1xf32>
    %633 = arith.addf %629, %632 : vector<10x1xf32>
    %634 = math.rsqrt %633 : vector<10x1xf32>
    %635 = vector.broadcast %634 : vector<10x1xf32> to vector<10x32xf32>
    %636 = arith.mulf %631, %635 : vector<10x32xf32>
    %637 = vector.broadcast %17 : vector<1x32xf32> to vector<10x32xf32>
    %638 = arith.mulf %636, %637 : vector<10x32xf32>
    %639 = vector.broadcast %16 : vector<1x32xf32> to vector<10x32xf32>
    %640 = arith.addf %638, %639 : vector<10x32xf32>
    %cst_218 = arith.constant dense<0.000000e+00> : vector<10x96xf32>
    %641 = tpu.matmul %640, %40, %cst_218 {dimension_numbers = #tpu.dot_dimension_numbers<[1], [0], [0], [1], [0, 0, 1, 1], [], []>} : vector<10x32xf32>, vector<32x96xf32>, vector<10x96xf32> -> vector<10x96xf32>
    %642 = vector.broadcast %39 : vector<1x96xf32> to vector<10x96xf32>
    %643 = arith.addf %641, %642 : vector<10x96xf32>
    %644 = vector.extract_strided_slice %643 {offsets = [0, 0], sizes = [10, 32], strides = [1, 1]} : vector<10x96xf32> to vector<10x32xf32>
    %645 = vector.extract_strided_slice %643 {offsets = [0, 32], sizes = [10, 32], strides = [1, 1]} : vector<10x96xf32> to vector<10x32xf32>
    %646 = vector.extract_strided_slice %643 {offsets = [0, 64], sizes = [10, 32], strides = [1, 1]} : vector<10x96xf32> to vector<10x32xf32>
    %647 = vector.extract_strided_slice %644 {offsets = [0, 0], sizes = [10, 8], strides = [1, 1]} : vector<10x32xf32> to vector<10x8xf32>
    %648 = vector.extract_strided_slice %645 {offsets = [0, 0], sizes = [10, 8], strides = [1, 1]} : vector<10x32xf32> to vector<10x8xf32>
    %cst_219 = arith.constant dense<0.000000e+00> : vector<10x10xf32>
    %649 = tpu.matmul %647, %648, %cst_219 {dimension_numbers = #tpu.dot_dimension_numbers<[1], [1], [0], [0], [0, 0, 1, 0], [], []>} : vector<10x8xf32>, vector<10x8xf32>, vector<10x10xf32> -> vector<10x10xf32>
    %650 = arith.addf %649, %99 : vector<10x10xf32>
    %cst_220 = arith.constant dense<0xFF800000> : vector<10xf32>
    %651 = vector.multi_reduction <maximumf>, %650, %cst_220 [1] : vector<10x10xf32> to vector<10xf32>
    %652 = vector.shape_cast %651 : vector<10xf32> to vector<10x1xf32>
    %653 = vector.broadcast %652 : vector<10x1xf32> to vector<10x10xf32>
    %654 = arith.subf %650, %653 : vector<10x10xf32>
    %655 = math.exp %654 : vector<10x10xf32>
    %cst_221 = arith.constant dense<0.000000e+00> : vector<10xf32>
    %656 = vector.multi_reduction <add>, %655, %cst_221 [1] : vector<10x10xf32> to vector<10xf32>
    %657 = vector.shape_cast %656 : vector<10xf32> to vector<10x1xf32>
    %658 = vector.broadcast %657 : vector<10x1xf32> to vector<10x10xf32>
    %659 = arith.divf %655, %658 : vector<10x10xf32>
    %660 = vector.extract_strided_slice %646 {offsets = [0, 0], sizes = [10, 8], strides = [1, 1]} : vector<10x32xf32> to vector<10x8xf32>
    %cst_222 = arith.constant dense<0.000000e+00> : vector<10x8xf32>
    %661 = tpu.matmul %659, %660, %cst_222 {dimension_numbers = #tpu.dot_dimension_numbers<[1], [0], [0], [1], [0, 0, 1, 1], [], []>} : vector<10x10xf32>, vector<10x8xf32>, vector<10x8xf32> -> vector<10x8xf32>
    %662 = vector.extract_strided_slice %41 {offsets = [0, 0], sizes = [8, 32], strides = [1, 1]} : vector<32x32xf32> to vector<8x32xf32>
    %cst_223 = arith.constant dense<0.000000e+00> : vector<10x32xf32>
    %663 = tpu.matmul %661, %662, %cst_223 {dimension_numbers = #tpu.dot_dimension_numbers<[1], [0], [0], [1], [0, 0, 1, 1], [], []>} : vector<10x8xf32>, vector<8x32xf32>, vector<10x32xf32> -> vector<10x32xf32>
    %664 = vector.extract_strided_slice %644 {offsets = [0, 8], sizes = [10, 8], strides = [1, 1]} : vector<10x32xf32> to vector<10x8xf32>
    %665 = vector.extract_strided_slice %645 {offsets = [0, 8], sizes = [10, 8], strides = [1, 1]} : vector<10x32xf32> to vector<10x8xf32>
    %cst_224 = arith.constant dense<0.000000e+00> : vector<10x10xf32>
    %666 = tpu.matmul %664, %665, %cst_224 {dimension_numbers = #tpu.dot_dimension_numbers<[1], [1], [0], [0], [0, 0, 1, 0], [], []>} : vector<10x8xf32>, vector<10x8xf32>, vector<10x10xf32> -> vector<10x10xf32>
    %667 = arith.addf %666, %99 : vector<10x10xf32>
    %cst_225 = arith.constant dense<0xFF800000> : vector<10xf32>
    %668 = vector.multi_reduction <maximumf>, %667, %cst_225 [1] : vector<10x10xf32> to vector<10xf32>
    %669 = vector.shape_cast %668 : vector<10xf32> to vector<10x1xf32>
    %670 = vector.broadcast %669 : vector<10x1xf32> to vector<10x10xf32>
    %671 = arith.subf %667, %670 : vector<10x10xf32>
    %672 = math.exp %671 : vector<10x10xf32>
    %cst_226 = arith.constant dense<0.000000e+00> : vector<10xf32>
    %673 = vector.multi_reduction <add>, %672, %cst_226 [1] : vector<10x10xf32> to vector<10xf32>
    %674 = vector.shape_cast %673 : vector<10xf32> to vector<10x1xf32>
    %675 = vector.broadcast %674 : vector<10x1xf32> to vector<10x10xf32>
    %676 = arith.divf %672, %675 : vector<10x10xf32>
    %677 = vector.extract_strided_slice %646 {offsets = [0, 8], sizes = [10, 8], strides = [1, 1]} : vector<10x32xf32> to vector<10x8xf32>
    %cst_227 = arith.constant dense<0.000000e+00> : vector<10x8xf32>
    %678 = tpu.matmul %676, %677, %cst_227 {dimension_numbers = #tpu.dot_dimension_numbers<[1], [0], [0], [1], [0, 0, 1, 1], [], []>} : vector<10x10xf32>, vector<10x8xf32>, vector<10x8xf32> -> vector<10x8xf32>
    %679 = vector.extract_strided_slice %41 {offsets = [8, 0], sizes = [8, 32], strides = [1, 1]} : vector<32x32xf32> to vector<8x32xf32>
    %cst_228 = arith.constant dense<0.000000e+00> : vector<10x32xf32>
    %680 = tpu.matmul %678, %679, %cst_228 {dimension_numbers = #tpu.dot_dimension_numbers<[1], [0], [0], [1], [0, 0, 1, 1], [], []>} : vector<10x8xf32>, vector<8x32xf32>, vector<10x32xf32> -> vector<10x32xf32>
    %681 = arith.addf %663, %680 : vector<10x32xf32>
    %682 = vector.extract_strided_slice %644 {offsets = [0, 16], sizes = [10, 8], strides = [1, 1]} : vector<10x32xf32> to vector<10x8xf32>
    %683 = vector.extract_strided_slice %645 {offsets = [0, 16], sizes = [10, 8], strides = [1, 1]} : vector<10x32xf32> to vector<10x8xf32>
    %cst_229 = arith.constant dense<0.000000e+00> : vector<10x10xf32>
    %684 = tpu.matmul %682, %683, %cst_229 {dimension_numbers = #tpu.dot_dimension_numbers<[1], [1], [0], [0], [0, 0, 1, 0], [], []>} : vector<10x8xf32>, vector<10x8xf32>, vector<10x10xf32> -> vector<10x10xf32>
    %685 = arith.addf %684, %99 : vector<10x10xf32>
    %cst_230 = arith.constant dense<0xFF800000> : vector<10xf32>
    %686 = vector.multi_reduction <maximumf>, %685, %cst_230 [1] : vector<10x10xf32> to vector<10xf32>
    %687 = vector.shape_cast %686 : vector<10xf32> to vector<10x1xf32>
    %688 = vector.broadcast %687 : vector<10x1xf32> to vector<10x10xf32>
    %689 = arith.subf %685, %688 : vector<10x10xf32>
    %690 = math.exp %689 : vector<10x10xf32>
    %cst_231 = arith.constant dense<0.000000e+00> : vector<10xf32>
    %691 = vector.multi_reduction <add>, %690, %cst_231 [1] : vector<10x10xf32> to vector<10xf32>
    %692 = vector.shape_cast %691 : vector<10xf32> to vector<10x1xf32>
    %693 = vector.broadcast %692 : vector<10x1xf32> to vector<10x10xf32>
    %694 = arith.divf %690, %693 : vector<10x10xf32>
    %695 = vector.extract_strided_slice %646 {offsets = [0, 16], sizes = [10, 8], strides = [1, 1]} : vector<10x32xf32> to vector<10x8xf32>
    %cst_232 = arith.constant dense<0.000000e+00> : vector<10x8xf32>
    %696 = tpu.matmul %694, %695, %cst_232 {dimension_numbers = #tpu.dot_dimension_numbers<[1], [0], [0], [1], [0, 0, 1, 1], [], []>} : vector<10x10xf32>, vector<10x8xf32>, vector<10x8xf32> -> vector<10x8xf32>
    %697 = vector.extract_strided_slice %41 {offsets = [16, 0], sizes = [8, 32], strides = [1, 1]} : vector<32x32xf32> to vector<8x32xf32>
    %cst_233 = arith.constant dense<0.000000e+00> : vector<10x32xf32>
    %698 = tpu.matmul %696, %697, %cst_233 {dimension_numbers = #tpu.dot_dimension_numbers<[1], [0], [0], [1], [0, 0, 1, 1], [], []>} : vector<10x8xf32>, vector<8x32xf32>, vector<10x32xf32> -> vector<10x32xf32>
    %699 = arith.addf %681, %698 : vector<10x32xf32>
    %700 = vector.extract_strided_slice %644 {offsets = [0, 24], sizes = [10, 8], strides = [1, 1]} : vector<10x32xf32> to vector<10x8xf32>
    %701 = vector.extract_strided_slice %645 {offsets = [0, 24], sizes = [10, 8], strides = [1, 1]} : vector<10x32xf32> to vector<10x8xf32>
    %cst_234 = arith.constant dense<0.000000e+00> : vector<10x10xf32>
    %702 = tpu.matmul %700, %701, %cst_234 {dimension_numbers = #tpu.dot_dimension_numbers<[1], [1], [0], [0], [0, 0, 1, 0], [], []>} : vector<10x8xf32>, vector<10x8xf32>, vector<10x10xf32> -> vector<10x10xf32>
    %703 = arith.addf %702, %99 : vector<10x10xf32>
    %cst_235 = arith.constant dense<0xFF800000> : vector<10xf32>
    %704 = vector.multi_reduction <maximumf>, %703, %cst_235 [1] : vector<10x10xf32> to vector<10xf32>
    %705 = vector.shape_cast %704 : vector<10xf32> to vector<10x1xf32>
    %706 = vector.broadcast %705 : vector<10x1xf32> to vector<10x10xf32>
    %707 = arith.subf %703, %706 : vector<10x10xf32>
    %708 = math.exp %707 : vector<10x10xf32>
    %cst_236 = arith.constant dense<0.000000e+00> : vector<10xf32>
    %709 = vector.multi_reduction <add>, %708, %cst_236 [1] : vector<10x10xf32> to vector<10xf32>
    %710 = vector.shape_cast %709 : vector<10xf32> to vector<10x1xf32>
    %711 = vector.broadcast %710 : vector<10x1xf32> to vector<10x10xf32>
    %712 = arith.divf %708, %711 : vector<10x10xf32>
    %713 = vector.extract_strided_slice %646 {offsets = [0, 24], sizes = [10, 8], strides = [1, 1]} : vector<10x32xf32> to vector<10x8xf32>
    %cst_237 = arith.constant dense<0.000000e+00> : vector<10x8xf32>
    %714 = tpu.matmul %712, %713, %cst_237 {dimension_numbers = #tpu.dot_dimension_numbers<[1], [0], [0], [1], [0, 0, 1, 1], [], []>} : vector<10x10xf32>, vector<10x8xf32>, vector<10x8xf32> -> vector<10x8xf32>
    %715 = vector.extract_strided_slice %41 {offsets = [24, 0], sizes = [8, 32], strides = [1, 1]} : vector<32x32xf32> to vector<8x32xf32>
    %cst_238 = arith.constant dense<0.000000e+00> : vector<10x32xf32>
    %716 = tpu.matmul %714, %715, %cst_238 {dimension_numbers = #tpu.dot_dimension_numbers<[1], [0], [0], [1], [0, 0, 1, 1], [], []>} : vector<10x8xf32>, vector<8x32xf32>, vector<10x32xf32> -> vector<10x32xf32>
    %717 = arith.addf %699, %716 : vector<10x32xf32>
    %718 = vector.broadcast %38 : vector<1x32xf32> to vector<10x32xf32>
    %719 = arith.addf %717, %718 : vector<10x32xf32>
    %720 = arith.addf %640, %719 : vector<10x32xf32>
    %cst_239 = arith.constant dense<0.000000e+00> : vector<10xf32>
    %721 = vector.multi_reduction <add>, %720, %cst_239 [1] : vector<10x32xf32> to vector<10xf32>
    %722 = vector.shape_cast %721 : vector<10xf32> to vector<10x1xf32>
    %cst_240 = arith.constant 3.200000e+01 : f32
    %723 = vector.broadcast %cst_240 : f32 to vector<10x1xf32>
    %724 = arith.divf %722, %723 : vector<10x1xf32>
    %725 = vector.broadcast %724 : vector<10x1xf32> to vector<10x32xf32>
    %726 = arith.subf %720, %725 : vector<10x32xf32>
    %727 = arith.mulf %726, %726 : vector<10x32xf32>
    %cst_241 = arith.constant dense<0.000000e+00> : vector<10xf32>
    %728 = vector.multi_reduction <add>, %727, %cst_241 [1] : vector<10x32xf32> to vector<10xf32>
    %729 = vector.shape_cast %728 : vector<10xf32> to vector<10x1xf32>
    %cst_242 = arith.constant 3.200000e+01 : f32
    %730 = vector.broadcast %cst_242 : f32 to vector<10x1xf32>
    %731 = arith.divf %729, %730 : vector<10x1xf32>
    %732 = vector.broadcast %724 : vector<10x1xf32> to vector<10x32xf32>
    %733 = arith.subf %720, %732 : vector<10x32xf32>
    %cst_243 = arith.constant 9.99999974E-6 : f32
    %734 = vector.broadcast %cst_243 : f32 to vector<10x1xf32>
    %735 = arith.addf %731, %734 : vector<10x1xf32>
    %736 = math.rsqrt %735 : vector<10x1xf32>
    %737 = vector.broadcast %736 : vector<10x1xf32> to vector<10x32xf32>
    %738 = arith.mulf %733, %737 : vector<10x32xf32>
    %739 = vector.broadcast %33 : vector<1x32xf32> to vector<10x32xf32>
    %740 = arith.mulf %738, %739 : vector<10x32xf32>
    %741 = vector.broadcast %32 : vector<1x32xf32> to vector<10x32xf32>
    %742 = arith.addf %740, %741 : vector<10x32xf32>
    %cst_244 = arith.constant dense<0.000000e+00> : vector<10x32xf32>
    %743 = tpu.matmul %742, %26, %cst_244 {dimension_numbers = #tpu.dot_dimension_numbers<[1], [0], [0], [1], [0, 0, 1, 1], [], []>} : vector<10x32xf32>, vector<32x32xf32>, vector<10x32xf32> -> vector<10x32xf32>
    %744 = vector.broadcast %25 : vector<1x32xf32> to vector<10x32xf32>
    %745 = arith.addf %743, %744 : vector<10x32xf32>
    %cst_245 = arith.constant dense<0.000000e+00> : vector<16x64xf32>
    %746 = tpu.matmul %402, %24, %cst_245 {dimension_numbers = #tpu.dot_dimension_numbers<[1], [0], [0], [1], [0, 0, 1, 1], [], []>} : vector<16x32xf32>, vector<32x64xf32>, vector<16x64xf32> -> vector<16x64xf32>
    %747 = vector.broadcast %23 : vector<1x64xf32> to vector<16x64xf32>
    %748 = arith.addf %746, %747 : vector<16x64xf32>
    %749 = vector.extract_strided_slice %748 {offsets = [0, 0], sizes = [16, 32], strides = [1, 1]} : vector<16x64xf32> to vector<16x32xf32>
    %750 = vector.extract_strided_slice %748 {offsets = [0, 32], sizes = [16, 32], strides = [1, 1]} : vector<16x64xf32> to vector<16x32xf32>
    %751 = vector.extract_strided_slice %745 {offsets = [0, 0], sizes = [10, 8], strides = [1, 1]} : vector<10x32xf32> to vector<10x8xf32>
    %752 = vector.extract_strided_slice %749 {offsets = [0, 0], sizes = [16, 8], strides = [1, 1]} : vector<16x32xf32> to vector<16x8xf32>
    %cst_246 = arith.constant dense<0.000000e+00> : vector<10x16xf32>
    %753 = tpu.matmul %751, %752, %cst_246 {dimension_numbers = #tpu.dot_dimension_numbers<[1], [1], [0], [0], [0, 0, 1, 0], [], []>} : vector<10x8xf32>, vector<16x8xf32>, vector<10x16xf32> -> vector<10x16xf32>
    %754 = arith.addf %753, %113 : vector<10x16xf32>
    %cst_247 = arith.constant dense<0xFF800000> : vector<10xf32>
    %755 = vector.multi_reduction <maximumf>, %754, %cst_247 [1] : vector<10x16xf32> to vector<10xf32>
    %756 = vector.shape_cast %755 : vector<10xf32> to vector<10x1xf32>
    %757 = vector.broadcast %756 : vector<10x1xf32> to vector<10x16xf32>
    %758 = arith.subf %754, %757 : vector<10x16xf32>
    %759 = math.exp %758 : vector<10x16xf32>
    %cst_248 = arith.constant dense<0.000000e+00> : vector<10xf32>
    %760 = vector.multi_reduction <add>, %759, %cst_248 [1] : vector<10x16xf32> to vector<10xf32>
    %761 = vector.shape_cast %760 : vector<10xf32> to vector<10x1xf32>
    %762 = vector.broadcast %761 : vector<10x1xf32> to vector<10x16xf32>
    %763 = arith.divf %759, %762 : vector<10x16xf32>
    %764 = vector.extract_strided_slice %750 {offsets = [0, 0], sizes = [16, 8], strides = [1, 1]} : vector<16x32xf32> to vector<16x8xf32>
    %cst_249 = arith.constant dense<0.000000e+00> : vector<10x8xf32>
    %765 = tpu.matmul %763, %764, %cst_249 {dimension_numbers = #tpu.dot_dimension_numbers<[1], [0], [0], [1], [0, 0, 1, 1], [], []>} : vector<10x16xf32>, vector<16x8xf32>, vector<10x8xf32> -> vector<10x8xf32>
    %766 = vector.extract_strided_slice %27 {offsets = [0, 0], sizes = [8, 32], strides = [1, 1]} : vector<32x32xf32> to vector<8x32xf32>
    %cst_250 = arith.constant dense<0.000000e+00> : vector<10x32xf32>
    %767 = tpu.matmul %765, %766, %cst_250 {dimension_numbers = #tpu.dot_dimension_numbers<[1], [0], [0], [1], [0, 0, 1, 1], [], []>} : vector<10x8xf32>, vector<8x32xf32>, vector<10x32xf32> -> vector<10x32xf32>
    %768 = vector.extract_strided_slice %745 {offsets = [0, 8], sizes = [10, 8], strides = [1, 1]} : vector<10x32xf32> to vector<10x8xf32>
    %769 = vector.extract_strided_slice %749 {offsets = [0, 8], sizes = [16, 8], strides = [1, 1]} : vector<16x32xf32> to vector<16x8xf32>
    %cst_251 = arith.constant dense<0.000000e+00> : vector<10x16xf32>
    %770 = tpu.matmul %768, %769, %cst_251 {dimension_numbers = #tpu.dot_dimension_numbers<[1], [1], [0], [0], [0, 0, 1, 0], [], []>} : vector<10x8xf32>, vector<16x8xf32>, vector<10x16xf32> -> vector<10x16xf32>
    %771 = arith.addf %770, %113 : vector<10x16xf32>
    %cst_252 = arith.constant dense<0xFF800000> : vector<10xf32>
    %772 = vector.multi_reduction <maximumf>, %771, %cst_252 [1] : vector<10x16xf32> to vector<10xf32>
    %773 = vector.shape_cast %772 : vector<10xf32> to vector<10x1xf32>
    %774 = vector.broadcast %773 : vector<10x1xf32> to vector<10x16xf32>
    %775 = arith.subf %771, %774 : vector<10x16xf32>
    %776 = math.exp %775 : vector<10x16xf32>
    %cst_253 = arith.constant dense<0.000000e+00> : vector<10xf32>
    %777 = vector.multi_reduction <add>, %776, %cst_253 [1] : vector<10x16xf32> to vector<10xf32>
    %778 = vector.shape_cast %777 : vector<10xf32> to vector<10x1xf32>
    %779 = vector.broadcast %778 : vector<10x1xf32> to vector<10x16xf32>
    %780 = arith.divf %776, %779 : vector<10x16xf32>
    %781 = vector.extract_strided_slice %750 {offsets = [0, 8], sizes = [16, 8], strides = [1, 1]} : vector<16x32xf32> to vector<16x8xf32>
    %cst_254 = arith.constant dense<0.000000e+00> : vector<10x8xf32>
    %782 = tpu.matmul %780, %781, %cst_254 {dimension_numbers = #tpu.dot_dimension_numbers<[1], [0], [0], [1], [0, 0, 1, 1], [], []>} : vector<10x16xf32>, vector<16x8xf32>, vector<10x8xf32> -> vector<10x8xf32>
    %783 = vector.extract_strided_slice %27 {offsets = [8, 0], sizes = [8, 32], strides = [1, 1]} : vector<32x32xf32> to vector<8x32xf32>
    %cst_255 = arith.constant dense<0.000000e+00> : vector<10x32xf32>
    %784 = tpu.matmul %782, %783, %cst_255 {dimension_numbers = #tpu.dot_dimension_numbers<[1], [0], [0], [1], [0, 0, 1, 1], [], []>} : vector<10x8xf32>, vector<8x32xf32>, vector<10x32xf32> -> vector<10x32xf32>
    %785 = arith.addf %767, %784 : vector<10x32xf32>
    %786 = vector.extract_strided_slice %745 {offsets = [0, 16], sizes = [10, 8], strides = [1, 1]} : vector<10x32xf32> to vector<10x8xf32>
    %787 = vector.extract_strided_slice %749 {offsets = [0, 16], sizes = [16, 8], strides = [1, 1]} : vector<16x32xf32> to vector<16x8xf32>
    %cst_256 = arith.constant dense<0.000000e+00> : vector<10x16xf32>
    %788 = tpu.matmul %786, %787, %cst_256 {dimension_numbers = #tpu.dot_dimension_numbers<[1], [1], [0], [0], [0, 0, 1, 0], [], []>} : vector<10x8xf32>, vector<16x8xf32>, vector<10x16xf32> -> vector<10x16xf32>
    %789 = arith.addf %788, %113 : vector<10x16xf32>
    %cst_257 = arith.constant dense<0xFF800000> : vector<10xf32>
    %790 = vector.multi_reduction <maximumf>, %789, %cst_257 [1] : vector<10x16xf32> to vector<10xf32>
    %791 = vector.shape_cast %790 : vector<10xf32> to vector<10x1xf32>
    %792 = vector.broadcast %791 : vector<10x1xf32> to vector<10x16xf32>
    %793 = arith.subf %789, %792 : vector<10x16xf32>
    %794 = math.exp %793 : vector<10x16xf32>
    %cst_258 = arith.constant dense<0.000000e+00> : vector<10xf32>
    %795 = vector.multi_reduction <add>, %794, %cst_258 [1] : vector<10x16xf32> to vector<10xf32>
    %796 = vector.shape_cast %795 : vector<10xf32> to vector<10x1xf32>
    %797 = vector.broadcast %796 : vector<10x1xf32> to vector<10x16xf32>
    %798 = arith.divf %794, %797 : vector<10x16xf32>
    %799 = vector.extract_strided_slice %750 {offsets = [0, 16], sizes = [16, 8], strides = [1, 1]} : vector<16x32xf32> to vector<16x8xf32>
    %cst_259 = arith.constant dense<0.000000e+00> : vector<10x8xf32>
    %800 = tpu.matmul %798, %799, %cst_259 {dimension_numbers = #tpu.dot_dimension_numbers<[1], [0], [0], [1], [0, 0, 1, 1], [], []>} : vector<10x16xf32>, vector<16x8xf32>, vector<10x8xf32> -> vector<10x8xf32>
    %801 = vector.extract_strided_slice %27 {offsets = [16, 0], sizes = [8, 32], strides = [1, 1]} : vector<32x32xf32> to vector<8x32xf32>
    %cst_260 = arith.constant dense<0.000000e+00> : vector<10x32xf32>
    %802 = tpu.matmul %800, %801, %cst_260 {dimension_numbers = #tpu.dot_dimension_numbers<[1], [0], [0], [1], [0, 0, 1, 1], [], []>} : vector<10x8xf32>, vector<8x32xf32>, vector<10x32xf32> -> vector<10x32xf32>
    %803 = arith.addf %785, %802 : vector<10x32xf32>
    %804 = vector.extract_strided_slice %745 {offsets = [0, 24], sizes = [10, 8], strides = [1, 1]} : vector<10x32xf32> to vector<10x8xf32>
    %805 = vector.extract_strided_slice %749 {offsets = [0, 24], sizes = [16, 8], strides = [1, 1]} : vector<16x32xf32> to vector<16x8xf32>
    %cst_261 = arith.constant dense<0.000000e+00> : vector<10x16xf32>
    %806 = tpu.matmul %804, %805, %cst_261 {dimension_numbers = #tpu.dot_dimension_numbers<[1], [1], [0], [0], [0, 0, 1, 0], [], []>} : vector<10x8xf32>, vector<16x8xf32>, vector<10x16xf32> -> vector<10x16xf32>
    %807 = arith.addf %806, %113 : vector<10x16xf32>
    %cst_262 = arith.constant dense<0xFF800000> : vector<10xf32>
    %808 = vector.multi_reduction <maximumf>, %807, %cst_262 [1] : vector<10x16xf32> to vector<10xf32>
    %809 = vector.shape_cast %808 : vector<10xf32> to vector<10x1xf32>
    %810 = vector.broadcast %809 : vector<10x1xf32> to vector<10x16xf32>
    %811 = arith.subf %807, %810 : vector<10x16xf32>
    %812 = math.exp %811 : vector<10x16xf32>
    %cst_263 = arith.constant dense<0.000000e+00> : vector<10xf32>
    %813 = vector.multi_reduction <add>, %812, %cst_263 [1] : vector<10x16xf32> to vector<10xf32>
    %814 = vector.shape_cast %813 : vector<10xf32> to vector<10x1xf32>
    %815 = vector.broadcast %814 : vector<10x1xf32> to vector<10x16xf32>
    %816 = arith.divf %812, %815 : vector<10x16xf32>
    %817 = vector.extract_strided_slice %750 {offsets = [0, 24], sizes = [16, 8], strides = [1, 1]} : vector<16x32xf32> to vector<16x8xf32>
    %cst_264 = arith.constant dense<0.000000e+00> : vector<10x8xf32>
    %818 = tpu.matmul %816, %817, %cst_264 {dimension_numbers = #tpu.dot_dimension_numbers<[1], [0], [0], [1], [0, 0, 1, 1], [], []>} : vector<10x16xf32>, vector<16x8xf32>, vector<10x8xf32> -> vector<10x8xf32>
    %819 = vector.extract_strided_slice %27 {offsets = [24, 0], sizes = [8, 32], strides = [1, 1]} : vector<32x32xf32> to vector<8x32xf32>
    %cst_265 = arith.constant dense<0.000000e+00> : vector<10x32xf32>
    %820 = tpu.matmul %818, %819, %cst_265 {dimension_numbers = #tpu.dot_dimension_numbers<[1], [0], [0], [1], [0, 0, 1, 1], [], []>} : vector<10x8xf32>, vector<8x32xf32>, vector<10x32xf32> -> vector<10x32xf32>
    %821 = arith.addf %803, %820 : vector<10x32xf32>
    %822 = vector.broadcast %22 : vector<1x32xf32> to vector<10x32xf32>
    %823 = arith.addf %821, %822 : vector<10x32xf32>
    %824 = arith.addf %742, %823 : vector<10x32xf32>
    %cst_266 = arith.constant dense<0.000000e+00> : vector<10xf32>
    %825 = vector.multi_reduction <add>, %824, %cst_266 [1] : vector<10x32xf32> to vector<10xf32>
    %826 = vector.shape_cast %825 : vector<10xf32> to vector<10x1xf32>
    %cst_267 = arith.constant 3.200000e+01 : f32
    %827 = vector.broadcast %cst_267 : f32 to vector<10x1xf32>
    %828 = arith.divf %826, %827 : vector<10x1xf32>
    %829 = vector.broadcast %828 : vector<10x1xf32> to vector<10x32xf32>
    %830 = arith.subf %824, %829 : vector<10x32xf32>
    %831 = arith.mulf %830, %830 : vector<10x32xf32>
    %cst_268 = arith.constant dense<0.000000e+00> : vector<10xf32>
    %832 = vector.multi_reduction <add>, %831, %cst_268 [1] : vector<10x32xf32> to vector<10xf32>
    %833 = vector.shape_cast %832 : vector<10xf32> to vector<10x1xf32>
    %cst_269 = arith.constant 3.200000e+01 : f32
    %834 = vector.broadcast %cst_269 : f32 to vector<10x1xf32>
    %835 = arith.divf %833, %834 : vector<10x1xf32>
    %836 = vector.broadcast %828 : vector<10x1xf32> to vector<10x32xf32>
    %837 = arith.subf %824, %836 : vector<10x32xf32>
    %cst_270 = arith.constant 9.99999974E-6 : f32
    %838 = vector.broadcast %cst_270 : f32 to vector<10x1xf32>
    %839 = arith.addf %835, %838 : vector<10x1xf32>
    %840 = math.rsqrt %839 : vector<10x1xf32>
    %841 = vector.broadcast %840 : vector<10x1xf32> to vector<10x32xf32>
    %842 = arith.mulf %837, %841 : vector<10x32xf32>
    %843 = vector.broadcast %35 : vector<1x32xf32> to vector<10x32xf32>
    %844 = arith.mulf %842, %843 : vector<10x32xf32>
    %845 = vector.broadcast %34 : vector<1x32xf32> to vector<10x32xf32>
    %846 = arith.addf %844, %845 : vector<10x32xf32>
    %cst_271 = arith.constant dense<0.000000e+00> : vector<10x64xf32>
    %847 = tpu.matmul %846, %29, %cst_271 {dimension_numbers = #tpu.dot_dimension_numbers<[1], [0], [0], [1], [0, 0, 1, 1], [], []>} : vector<10x32xf32>, vector<32x64xf32>, vector<10x64xf32> -> vector<10x64xf32>
    %848 = vector.broadcast %28 : vector<1x64xf32> to vector<10x64xf32>
    %849 = arith.addf %847, %848 : vector<10x64xf32>
    %cst_272 = arith.constant 0.000000e+00 : f32
    %850 = vector.broadcast %cst_272 : f32 to vector<10x64xf32>
    %851 = arith.maximumf %849, %850 : vector<10x64xf32>
    %cst_273 = arith.constant dense<0.000000e+00> : vector<10x32xf32>
    %852 = tpu.matmul %851, %31, %cst_273 {dimension_numbers = #tpu.dot_dimension_numbers<[1], [0], [0], [1], [0, 0, 1, 1], [], []>} : vector<10x64xf32>, vector<64x32xf32>, vector<10x32xf32> -> vector<10x32xf32>
    %853 = vector.broadcast %30 : vector<1x32xf32> to vector<10x32xf32>
    %854 = arith.addf %852, %853 : vector<10x32xf32>
    %855 = arith.addf %846, %854 : vector<10x32xf32>
    %cst_274 = arith.constant dense<0.000000e+00> : vector<10xf32>
    %856 = vector.multi_reduction <add>, %855, %cst_274 [1] : vector<10x32xf32> to vector<10xf32>
    %857 = vector.shape_cast %856 : vector<10xf32> to vector<10x1xf32>
    %cst_275 = arith.constant 3.200000e+01 : f32
    %858 = vector.broadcast %cst_275 : f32 to vector<10x1xf32>
    %859 = arith.divf %857, %858 : vector<10x1xf32>
    %860 = vector.broadcast %859 : vector<10x1xf32> to vector<10x32xf32>
    %861 = arith.subf %855, %860 : vector<10x32xf32>
    %862 = arith.mulf %861, %861 : vector<10x32xf32>
    %cst_276 = arith.constant dense<0.000000e+00> : vector<10xf32>
    %863 = vector.multi_reduction <add>, %862, %cst_276 [1] : vector<10x32xf32> to vector<10xf32>
    %864 = vector.shape_cast %863 : vector<10xf32> to vector<10x1xf32>
    %cst_277 = arith.constant 3.200000e+01 : f32
    %865 = vector.broadcast %cst_277 : f32 to vector<10x1xf32>
    %866 = arith.divf %864, %865 : vector<10x1xf32>
    %867 = vector.broadcast %859 : vector<10x1xf32> to vector<10x32xf32>
    %868 = arith.subf %855, %867 : vector<10x32xf32>
    %cst_278 = arith.constant 9.99999974E-6 : f32
    %869 = vector.broadcast %cst_278 : f32 to vector<10x1xf32>
    %870 = arith.addf %866, %869 : vector<10x1xf32>
    %871 = math.rsqrt %870 : vector<10x1xf32>
    %872 = vector.broadcast %871 : vector<10x1xf32> to vector<10x32xf32>
    %873 = arith.mulf %868, %872 : vector<10x32xf32>
    %874 = vector.broadcast %37 : vector<1x32xf32> to vector<10x32xf32>
    %875 = arith.mulf %873, %874 : vector<10x32xf32>
    %876 = vector.broadcast %36 : vector<1x32xf32> to vector<10x32xf32>
    %877 = arith.addf %875, %876 : vector<10x32xf32>
    %cst_279 = arith.constant dense<0.000000e+00> : vector<10xf32>
    %878 = vector.multi_reduction <add>, %877, %cst_279 [1] : vector<10x32xf32> to vector<10xf32>
    %879 = vector.shape_cast %878 : vector<10xf32> to vector<10x1xf32>
    %cst_280 = arith.constant 3.200000e+01 : f32
    %880 = vector.broadcast %cst_280 : f32 to vector<10x1xf32>
    %881 = arith.divf %879, %880 : vector<10x1xf32>
    %882 = vector.broadcast %881 : vector<10x1xf32> to vector<10x32xf32>
    %883 = arith.subf %877, %882 : vector<10x32xf32>
    %884 = arith.mulf %883, %883 : vector<10x32xf32>
    %cst_281 = arith.constant dense<0.000000e+00> : vector<10xf32>
    %885 = vector.multi_reduction <add>, %884, %cst_281 [1] : vector<10x32xf32> to vector<10xf32>
    %886 = vector.shape_cast %885 : vector<10xf32> to vector<10x1xf32>
    %cst_282 = arith.constant 3.200000e+01 : f32
    %887 = vector.broadcast %cst_282 : f32 to vector<10x1xf32>
    %888 = arith.divf %886, %887 : vector<10x1xf32>
    %889 = vector.broadcast %881 : vector<10x1xf32> to vector<10x32xf32>
    %890 = arith.subf %877, %889 : vector<10x32xf32>
    %cst_283 = arith.constant 9.99999974E-6 : f32
    %891 = vector.broadcast %cst_283 : f32 to vector<10x1xf32>
    %892 = arith.addf %888, %891 : vector<10x1xf32>
    %893 = math.rsqrt %892 : vector<10x1xf32>
    %894 = vector.broadcast %893 : vector<10x1xf32> to vector<10x32xf32>
    %895 = arith.mulf %890, %894 : vector<10x32xf32>
    %896 = vector.broadcast %1 : vector<1x32xf32> to vector<10x32xf32>
    %897 = arith.mulf %895, %896 : vector<10x32xf32>
    %898 = vector.broadcast %0 : vector<1x32xf32> to vector<10x32xf32>
    %899 = arith.addf %897, %898 : vector<10x32xf32>
    %c0_284 = arith.constant 0 : index
    %c0_285 = arith.constant 0 : index
    %900 = vector.load %arg3[%c0_284, %c0_285] : memref<10x32xf32, #tpu.memory_space<vmem>>, vector<10x32xf32>
    tpu.vector_store %arg3[%c0_284, %c0_285], %899 {strides = array<i32>} : memref<10x32xf32, #tpu.memory_space<vmem>>, vector<10x32xf32>,
    return
  }
}

</mosaic_0001>

<bundles_post_ra>
// kernel: invar_transformer_forward.1
= control target key start
LH: loop header
LB: loop body
LE: loop exit
PB: predicated region body
PF: predicated region fallthrough
CT: control target
= control target key end

     0   :  { %8 = vsyncpa [#allocation3], 0  ;;  %s11158_s12 = smov [#allocation2]   ;;  %s12088_s0 = inlined_call_operand.hbm [shape: f32[1208,128], index: 0, kind: input, shape index: {}]   ;;  %s12089_s1 = inlined_call_operand.vmem [shape: f32[16,32], index: 1, kind: input, shape index: {}]   ;;  %s12090_s2 = inlined_call_operand.vmem [shape: f32[1,16], index: 2, kind: input, shape index: {}]   ;;  %s12091_s3 = inlined_call_operand.vmem [shape: f32[10,32], index: 3, kind: output, shape index: {}]  }
   0x1   :  { %s14_s13 = sshll.u32 %s11158_s12, 4  ;;  %s11134_s16 = scalar_lea.hbm %s12088_s0, 19328  ;;  %s15_s13 = int_to_ptr.vmem [resolvable:$true] %s14_s13 }
   0x2   :  { %p11135_p0 = scmp.ne.s32.totalorder %s12088_s0, %s11134_s16  ;;  %p11138_p1 = scmp.lt.u32.totalorder %s11134_s16, %s12088_s0 }
   0x4   :  { %p11140_p2 = pnand %p11138_p1, %p11135_p0 }
   0x6   :  { %11143 = shalt.err (!%p11140_p2)
}
   0x7   :  { %s11144_s21 = scalar_lea.vmem %s15_s13, 19328  ;;  %p11149_p4 = scmp.lt.s32.totalorder %s15_s13, %s15_s13 }
   0x8   :  { %p11145_p3 = scmp.ne.s32.totalorder %s15_s13, %s11144_s21  ;;  %p11150_p5 = scmp.lt.s32.totalorder %s11144_s21, %s11144_s21 }
   0xa   :  { %p11151_p6 = por %p11150_p5, %p11149_p4 }
   0xc   :  { %p11152_p7 = pnand %p11151_p6, %p11145_p3 }
   0xe   :  { %11155 = shalt.err (!%p11152_p7)
}
   0xf   :  { %s11159_s22 = smov 128   ;;  %s11160_s23 = smov 8  }
  0x10   :  { %20 = dma.hbm_to_vmem [thread:$0]  %s12088_s0, 19328, %s15_s13, [#allocation3], %s11159_s22, %s11159_s22, %s11160_s23  }
  0x11   :  { %11156 = dma.done.wait [#allocation3], 19328  }
  0x12   :  { %11157 = vsyncadd [#allocation3], 4294947968  ;;  %vm226_vm0 = vcmask 261120   ;;  %v124_v0 = vld [vmem:[#allocation2 + $0x300] sm:$0xff]  ;;  %v125_v1 = vld [vmem:[#allocation2 + $0x308] sm:$0xff]  ;;  %vm314_vm1 = vcmask 64512   ;;  %v179_v31 = vlaneseq }
  0x13   :  { %v126_v2 = vld [vmem:[#allocation2 + $0x310] sm:$0xff]  ;;  %v10196_v3 = vpack.c.bf16 %v125_v1, %v124_v0  ;;  %v127_v4 = vld [vmem:[#allocation2 + $0x318] sm:$0xff]  ;;  %v11209_v5 = vld [vmem:[%s12089_s1] sm:$0xff]  ;;  %s11161_s29 = smov 120   ;;  %s11163_s30 = smov 88   ;;  %vm398_vm5 = vcmask 130048  }
  0x14   :  { %v10200_v6 = vpack.c.bf16 %v127_v4, %v126_v2  ;;  %9540 = vmatprep.mubr.msk.f32.mxu1 %vm226_vm0, %v11209_v5  ;;  %v11216_v7 = vld [vmem:[%s12089_s1 + $0x8] sm:$0xff]  ;;  %v8878_v8 = vld [vmem:[#allocation2 + $0x2f8] ss:$0 sm:$0xff]  ;;  %s11162_s1 = smov 96   ;;  %s11164_s4 = smov 112   ;;  %vm11246_vm2 = vmpackc.low %vm314_vm1, %vm314_vm1  ;;  %v11268_v32 = vshrl.u32 %v179_v31, 7 }
  0x15   :  { %10197 = vmatprep.subr.bf16.mxu1 %v10196_v3  ;;  %s11165_s5 = smov 80   ;;  %v11273_v34 = vand.u32 127, %v179_v31  ;;  %v11166_v44 = vmov -1e+09   ;;  %v8877_v46 = vld [vmem:[%s12090_s2] ss:$0 sm:$0xff] }
  0x16   :  { %10199 = vmatpush3.bf16.msra.mxu1 %v10196_v3  ;;  %v11271_v33 = vadd.s32 8, %v11268_v32  ;;  %v182_v37 = vcvt.s32.f32 %v11268_v32  ;;  %s11167_s2 = smov 56   ;;  %s11168_s8 = smov 72   ;;  %vm1574_vm6 = vcmask 523264   ;;  %vm3206_vm7 = vcmask 1044480  }
  0x17   :  { %10201 = vmatprep.subr.bf16.mxu1 %v10200_v6  ;;  %v186_v36 = vcvt.s32.f32 %v11273_v34  ;;  %s11169_s9 = smov 64   ;;  %s11170_s10 = smov 104   ;;  %vm3385_vm10 = vcmask 74752   ;;  %vm3381_vm11 = vcmask 80896   ;;  %vm3416_vm12 = vcmask 1041408  }
  0x18   :  { %v183_v35 = vcvt.s32.f32 %v11271_v33  ;;  %v187_v40 = vmul.f32 0.125, %v182_v37  ;;  %s11171_s11 = smov 48   ;;  %s11172_s12 = smov 40   ;;  %vm11173_vm13 = vmmov 1   ;;  %vm4436_vm15 = vcmask 254976  }
  0x19   :  { %v191_v39 = vmul.f32 0.125, %v186_v36  ;;  %vm11608_vm14 = vmpackc.low %vm3416_vm12, %vm11173_vm13 }
  0x1a   :  { %10203 = vmatpush3.bf16.msra.mxu1 %v10200_v6  ;;  %v188_v38 = vmul.f32 0.125, %v183_v35  ;;  %v189_v43 = vfloor.f32 %v187_v40 }
  0x1b   :  { %v11284_v42 = vfloor.f32 %v191_v39 }
  0x1c   :  { %v190_v41 = vfloor.f32 %v188_v38 }
  0x1d   :  { %9541 = vmatmul.mubr.msk.f32.vlgmr.msra.gmra.mrb[0].mxu1 %vm226_vm0, %v11216_v7  ;;  %vm193_vm4 = vcmp.eq.f32.partialorder %v189_v43, %v11284_v42 }
  0x1e   :  { %vm194_vm3 = vcmp.eq.f32.partialorder %v190_v41, %v11284_v42  ;;  %v195_v47 = vsel %vm193_vm4, 0.0, %v11166_v44 }
  0x1f   :  { %v196_v45 = vsel %vm194_vm3, 0.0, %v11166_v44  ;;  %v11295_v49 = vadd.f32 %v8877_v46, %v195_v47 }
  0x20   :  { %v11293_v48 = vadd.f32 %v8877_v46, %v196_v45 }
  0xf0   :  { %v9542_v9 = vpop.f32.mrb[0].mxu1 }
  0xf1   :  { %v11220_v10 = vadd.f32 %v9542_v9, %v8878_v8  ;;  %v299_v11 = vpop.f32.mrb[1].mxu1 }
  0xf2   :  { %v11222_v12 = vadd.f32 %v8878_v8, %v299_v11 }
  0xf4   :  { %508 = vrot.lane.b32.xlu1 %v11222_v12, %s11161_s29  ;;  %9547 = vmatprep.mubr.msk.f32.mxu1 %vm314_vm1, %v11222_v12  ;;  %v11230_v13 = vpack.i.bf16 %v11220_v10, %v11222_v12 }
  0xf6   :  { %10665 = vrot.lane.b32.xlu0 %v11230_v13, %s11162_s1 }
  0xf8   :  { %510 = vrot.lane.b32.xlu1 %v11220_v10, %s11161_s29 }
  0xfa   :  { %10670 = vrot.lane.b32.xlu0 %v11230_v13, %s11163_s30 }
  0xfc   :  { %870 = vrot.lane.b32.xlu1 %v11222_v12, %s11164_s4 }
  0xfe   :  { %10675 = vrot.lane.b32.xlu0 %v11230_v13, %s11165_s5 }
 0x102   :  { %872 = vrot.lane.b32.xlu0 %v11220_v10, %s11164_s4 }
 0x166   :  { %v509_v24 = vpop.permute.xlu1 %508 }
 0x168   :  { %v10666_v14 = vpop.permute.xlu0 %10665 }
 0x169   :  { %v10668_v15 = vunpack.i.h.bf16 %v10666_v14  ;;  %v10667_v16 = vunpack.i.l.bf16 %v10666_v14 }
 0x16a   :  { %v511_v28 = vpop.permute.xlu1 %510 }
 0x16b   :  { %v10204_v18 = vpack.c.bf16 %v10668_v15, %v10667_v16 }
 0x16c   :  { %v10671_v19 = vpop.permute.xlu0 %10670 }
 0x16d   :  { %v10673_v20 = vunpack.i.h.bf16 %v10671_v19  ;;  %v10672_v21 = vunpack.i.l.bf16 %v10671_v19  ;;  %10206 = vmatprep.subr.msk.bf16.mxu1 %vm11246_vm2, %v10204_v18 }
 0x16e   :  { %10209 = vmatpush3.bf16.xpose.msk.msra.mxu1 %vm11246_vm2, %v10204_v18  ;;  %v871_v29 = vpop.permute.xlu1 %870 }
 0x16f   :  { %v10214_v22 = vpack.c.bf16 %v10673_v20, %v10672_v21 }
 0x170   :  { %v10676_v23 = vpop.permute.xlu0 %10675 }
 0x171   :  { %v10678_v25 = vunpack.i.h.bf16 %v10676_v23  ;;  %v10677_v26 = vunpack.i.l.bf16 %v10676_v23  ;;  %10216 = vmatprep.subr.msk.bf16.mxu1 %vm11246_vm2, %v10214_v22 }
 0x173   :  { %v10224_v27 = vpack.c.bf16 %v10678_v25, %v10677_v26 }
 0x174   :  { %v873_v30 = vpop.permute.xlu0 %872 }
 0x175   :  { %9548 = vmatmul.mubr.msk.f32.vlgmr.msra.gmra.mrb[2].mxu1 %vm314_vm1, %v11220_v10 }
 0x176   :  { %10219 = vmatpush3.bf16.xpose.msk.msra.mxu1 %vm11246_vm2, %v10214_v22  ;;  %9561 = vmatprep.mubr.msk.f32.mxu1 %vm314_vm1, %v509_v24 }
 0x177   :  { %10226 = vmatprep.subr.msk.bf16.mxu1 %vm11246_vm2, %v10224_v27 }
 0x17d   :  { %9562 = vmatmul.mubr.msk.f32.vlgmr.msra.gmra.mrb[4].mxu1 %vm314_vm1, %v511_v28 }
 0x17e   :  { %10229 = vmatpush3.bf16.xpose.msk.msra.mxu1 %vm11246_vm2, %v10224_v27  ;;  %9585 = vmatprep.mubr.msk.f32.mxu1 %vm314_vm1, %v871_v29 }
 0x185   :  { %9586 = vmatmul.mubr.msk.f32.vlgmr.msra.gmra.mrb[6].mxu1 %vm314_vm1, %v873_v30 }
 0x248   :  { %v9549_v50 = vpop.f32.mrb[2].mxu1 }
 0x249   :  { %v395_v51 = vadd.f32 %v9549_v50, %v11293_v48  ;;  %v389_v52 = vpop.f32.mrb[3].mxu1 }
 0x24a   :  { %v390_v53 = vadd.f32 %v389_v52, %v11295_v49 }
 0x24b   :  { %v402_v54 = vsel %vm398_vm5, %v395_v51, -inf }
 0x24c   :  { %403 = vmax.xlane.f32.xlu0 %v402_v54  ;;  %v399_v55 = vsel %vm398_vm5, %v390_v53, -inf }
 0x24d   :  { %400 = vmax.xlane.f32.xlu1 %v399_v55 }
 0x250   :  { %v9563_v56 = vpop.f32.mrb[4].mxu1 }
 0x251   :  { %v596_v57 = vadd.f32 %v9563_v56, %v11293_v48  ;;  %v590_v58 = vpop.f32.mrb[5].mxu1 }
 0x252   :  { %v591_v59 = vadd.f32 %v590_v58, %v11295_v49 }
 0x253   :  { %v602_v60 = vsel %vm398_vm5, %v596_v57, -inf }
 0x254   :  { %603 = vmax.xlane.f32.xlu1 %v602_v60  ;;  %v599_v61 = vsel %vm398_vm5, %v591_v59, -inf }
 0x255   :  { %600 = vmax.xlane.f32.xlu0 %v599_v61 }
 0x258   :  { %v9587_v62 = vpop.f32.mrb[6].mxu1 }
 0x259   :  { %v952_v63 = vpop.f32.mrb[7].mxu1  ;;  %v958_v27 = vadd.f32 %v9587_v62, %v11293_v48 }
 0x25a   :  { %v953_v26 = vadd.f32 %v952_v63, %v11295_v49 }
 0x25b   :  { %v964_v29 = vsel %vm398_vm5, %v958_v27, -inf }
 0x25c   :  { %v961_v28 = vsel %vm398_vm5, %v953_v26, -inf }
 0x2d9   :  { %v404_v0 = vpop.xlane.xlu0 %403 }
 0x2da   :  { %v406_v1 = vsub.f32 %v395_v51, %v404_v0  ;;  %v401_v2 = vpop.xlane.xlu1 %400 }
 0x2db   :  { %v405_v3 = vsub.f32 %v390_v53, %v401_v2 }
 0x2dc   :  { %v409_v4 = vmul.f32 1.442695, %v406_v1 }
 0x2dd   :  { %v407_v6 = vmul.f32 1.442695, %v405_v3 }
 0x2de   :  { %10894 = vpow2.f32 %v409_v4 }
 0x2df   :  { %10896 = vpow2.f32 %v407_v6 }
 0x2e1   :  { %v604_v8 = vpop.xlane.xlu1 %603 }
 0x2e2   :  { %v606_v9 = vsub.f32 %v596_v57, %v604_v8  ;;  %v601_v11 = vpop.xlane.xlu0 %600 }
 0x2e3   :  { %v605_v14 = vsub.f32 %v591_v59, %v601_v11 }
 0x2e4   :  { %v609_v15 = vmul.f32 1.442695, %v606_v9 }
 0x2e5   :  { %v607_v16 = vmul.f32 1.442695, %v605_v14  ;;  %v129_v14 = vld [vmem:[#allocation2 + $0x328] sm:$0xff] }
 0x2e6   :  { %10898 = vpow2.f32 %v609_v15  ;;  %v128_v15 = vld [vmem:[#allocation2 + $0x320] sm:$0xff] }
 0x2e7   :  { %10900 = vpow2.f32 %v607_v16 }
 0x2e8   :  { %v10895_v18 = vpop.eup %10894 }
 0x2e9   :  { %v10897_v19 = vpop.eup %10896  ;;  %v414_v20 = vsel %vm398_vm5, %v10895_v18, 0.0 }
 0x2ea   :  { %415 = vadd.xlane.f32.xlu1 %v414_v20  ;;  %v411_v21 = vsel %vm398_vm5, %v10897_v19, 0.0 }
 0x2eb   :  { %412 = vadd.xlane.f32.xlu0 %v411_v21 }
 0x2f0   :  { %v11307_v22 = vpop.eup %10898 }
 0x2f1   :  { %v10901_v23 = vpop.eup %10900  ;;  %v614_v24 = vsel %vm398_vm5, %v11307_v22, 0.0 }
 0x2f2   :  { %615 = vadd.xlane.f32.xlu1 %v614_v24  ;;  %v611_v25 = vsel %vm398_vm5, %v10901_v23, 0.0 }
 0x2f3   :  { %612 = vadd.xlane.f32.xlu0 %v611_v25 }
 0x303   :  { %10685 = vrot.lane.b32.xlu1 %v11230_v13, %s11167_s2 }
 0x307   :  { %10690 = vrot.lane.b32.xlu1 %v11230_v13, %s11168_s8 }
 0x309   :  { %10680 = vrot.lane.b32.xlu0 %v11230_v13, %s11169_s9 }
 0x30b   :  { %1155 = vrot.lane.b32.xlu1 %v11220_v10, %s11170_s10 }
 0x30d   :  { %1153 = vrot.lane.b32.xlu0 %v11222_v12, %s11170_s10 }
 0x32c   :  { %962 = vmax.xlane.f32.xlu0 %v961_v28 }
 0x32f   :  { %965 = vmax.xlane.f32.xlu1 %v964_v29 }
 0x340   :  { %10695 = vrot.lane.b32.xlu1 %v11230_v13, %s11171_s11 }
 0x344   :  { %10700 = vrot.lane.b32.xlu1 %v11230_v13, %s11172_s12 }
 0x377   :  { %v416_v12 = vpop.xlane.xlu1 %415 }
 0x378   :  { %v413_v10 = vpop.xlane.xlu0 %412 }
 0x379   :  { %10902 = vrcp.f32 %v413_v10 }
 0x37a   :  { %10904 = vrcp.f32 %v416_v12 }
 0x37f   :  { %v616_v30 = vpop.xlane.xlu1 %615 }
 0x380   :  { %v613_v31 = vpop.xlane.xlu0 %612 }
 0x381   :  { %10906 = vrcp.f32 %v613_v31 }
 0x382   :  { %10908 = vrcp.f32 %v616_v30 }
 0x383   :  { %v10903_v38 = vpop.eup %10902  ;;  %v10686_v39 = vpop.permute.xlu1 %10685 }
 0x384   :  { %v10681_v40 = vpop.permute.xlu0 %10680  ;;  %v418_v41 = vmul.f32 %v10903_v38, %v10897_v19  ;;  %v10688_v43 = vunpack.i.h.bf16 %v10686_v39  ;;  %v10687_v45 = vunpack.i.l.bf16 %v10686_v39  ;;  %v10905_v51 = vpop.eup %10904  ;;  %v130_v39 = vld [vmem:[#allocation2 + $0x330] sm:$0xff] }
 0x385   :  { %v10683_v46 = vunpack.i.h.bf16 %v10681_v40  ;;  %v10682_v47 = vunpack.i.l.bf16 %v10681_v40  ;;  %v420_v58 = vmul.f32 %v10905_v51, %v10895_v18 }
 0x386   :  { %9554 = vmatprep.mubr.msk.f32.mxu0 %vm398_vm5, %v418_v41  ;;  %v10220_v55 = vpack.c.bf16 %v10688_v43, %v10687_v45 }
 0x387   :  { %v10691_v50 = vpop.permute.xlu1 %10690  ;;  %v10210_v13 = vpack.c.bf16 %v10683_v46, %v10682_v47 }
 0x388   :  { %v10693_v52 = vunpack.i.h.bf16 %v10691_v50  ;;  %v10692_v53 = vunpack.i.l.bf16 %v10691_v50  ;;  %v1154_v54 = vpop.permute.xlu0 %1153 }
 0x389   :  { %10211 = vmatprep.subr.bf16.mxu0 %v10210_v13  ;;  %9604 = vmatprep.mubr.msk.f32.mxu1 %vm314_vm1, %v1154_v54 }
 0x38a   :  { %v10234_v56 = vpack.c.bf16 %v10693_v52, %v10692_v53  ;;  %10213 = vmatpush3.bf16.msra.mxu0 %v10210_v13 }
 0x38b   :  { %v10907_v57 = vpop.eup %10906  ;;  %10221 = vmatprep.subr.bf16.mxu0 %v10220_v55  ;;  %v1156_v62 = vpop.permute.xlu1 %1155 }
 0x38c   :  { %v10909_v59 = vpop.eup %10908  ;;  %10236 = vmatprep.subr.msk.bf16.mxu1 %vm11246_vm2, %v10234_v56  ;;  %v618_v60 = vmul.f32 %v10907_v57, %v10901_v23 }
 0x38d   :  { %9555 = vmatmul.mubr.msk.f32.vlgmr.msra.gmra.mrb[0].mxu0 %vm398_vm5, %v420_v58  ;;  %10239 = vmatpush3.bf16.xpose.msk.msra.mxu1 %vm11246_vm2, %v10234_v56  ;;  %v620_v61 = vmul.f32 %v10909_v59, %v11307_v22 }
 0x38e   :  { %10223 = vmatpush3.bf16.msra.mxu0 %v10220_v55  ;;  %9568 = vmatprep.mubr.msk.f32.mxu0 %vm398_vm5, %v618_v60 }
 0x38f   :  { %9571 = vmatprep.subr.mxu0 %v129_v14 }
 0x391   :  { %9569 = vmatmul.mubr.msk.f32.vlgmr.msra.gmra.mrb[2].mxu0 %vm398_vm5, %v620_v61  ;;  %v131_v61 = vld [vmem:[#allocation2 + $0x338] sm:$0xff] }
 0x392   :  { %9572 = vmatpush3.msra.mxu0 %v129_v14 }
 0x393   :  { %9576 = vmatprep.subr.mxu0 %v128_v15 }
 0x394   :  { %9605 = vmatmul.mubr.msk.f32.vlgmr.msra.gmra.mrb[8].mxu1 %vm314_vm1, %v1156_v62 }
 0x3b9   :  { %v963_v63 = vpop.xlane.xlu0 %962 }
 0x3ba   :  { %v967_v0 = vsub.f32 %v953_v26, %v963_v63 }
 0x3bc   :  { %v969_v1 = vmul.f32 1.442695, %v967_v0  ;;  %v966_v2 = vpop.xlane.xlu1 %965 }
 0x3bd   :  { %v968_v3 = vsub.f32 %v958_v27, %v966_v2 }
 0x3be   :  { %10910 = vpow2.f32 %v969_v1 }
 0x3bf   :  { %v971_v4 = vmul.f32 1.442695, %v968_v3 }
 0x3c0   :  { %v10696_v18 = vpop.permute.xlu1 %10695 }
 0x3c1   :  { %10912 = vpow2.f32 %v971_v4  ;;  %v10698_v22 = vunpack.i.h.bf16 %v10696_v18  ;;  %v10697_v23 = vunpack.i.l.bf16 %v10696_v18 }
 0x3c3   :  { %v10230_v27 = vpack.c.bf16 %v10698_v22, %v10697_v23 }
 0x3c4   :  { %v10701_v31 = vpop.permute.xlu1 %10700 }
 0x3c5   :  { %v10703_v40 = vunpack.i.h.bf16 %v10701_v31  ;;  %v10702_v41 = vunpack.i.l.bf16 %v10701_v31  ;;  %v136_v31 = vld [vmem:[#allocation2 + $0x360] sm:$0xff] }
 0x3c7   :  { %v10240_v47 = vpack.c.bf16 %v10703_v40, %v10702_v41  ;;  %v139_v40 = vld [vmem:[#allocation2 + $0x378] sm:$0xff]  ;;  %v140_v41 = vld [vmem:[#allocation2 + $0x380] sm:$0xff] }
 0x3c8   :  { %v10911_v6 = vpop.eup %10910 }
 0x3c9   :  { %v973_v8 = vsel %vm398_vm5, %v10911_v6, 0.0 }
 0x3ca   :  { %974 = vadd.xlane.f32.xlu0 %v973_v8  ;;  %v8913_v8 = vld [vmem:[#allocation2 + $0x2f0] ss:$0 sm:$0xff] }
 0x3cb   :  { %v10913_v9 = vpop.eup %10912 }
 0x3cc   :  { %v976_v11 = vsel %vm398_vm5, %v10913_v9, 0.0 }
 0x3ce   :  { %977 = vadd.xlane.f32.xlu0 %v976_v11 }
 0x457   :  { %v975_v16 = vpop.xlane.xlu0 %974 }
 0x458   :  { %10914 = vrcp.f32 %v975_v16 }
 0x45b   :  { %v978_v20 = vpop.xlane.xlu0 %977 }
 0x45c   :  { %10916 = vrcp.f32 %v978_v20 }
 0x460   :  { %v9556_v19 = vpop.f32.mrb[0].mxu0 }
 0x461   :  { %v499_v21 = vpop.f32.mrb[1].mxu0 }
 0x462   :  { %v10915_v30 = vpop.eup %10914 }
 0x463   :  { %v980_v45 = vmul.f32 %v10915_v30, %v10911_v6 }
 0x464   :  { %v9570_v24 = vpop.f32.mrb[2].mxu0 }
 0x465   :  { %v699_v25 = vpop.f32.mrb[3].mxu0 }
 0x466   :  { %9573 = vmatprep.mubr.msk.f32.mxu0 %vm314_vm1, %v699_v25  ;;  %v10917_v38 = vpop.eup %10916 }
 0x467   :  { %9574 = vmatmul.mubr.msk.f32.vlgmr.msra.gmra.mrb[4].mxu0 %vm314_vm1, %v9570_v24  ;;  %v9606_v26 = vpop.f32.mrb[8].mxu1  ;;  %v982_v46 = vmul.f32 %v10917_v38, %v10913_v9 }
 0x468   :  { %9577 = vmatpush3.msra.mxu0 %v128_v15  ;;  %9578 = vmatprep.mubr.msk.f32.mxu0 %vm314_vm1, %v499_v21  ;;  %v1235_v28 = vpop.f32.mrb[9].mxu1  ;;  %v1241_v10 = vadd.f32 %v9606_v26, %v11293_v48 }
 0x469   :  { %10231 = vmatprep.subr.bf16.mxu0 %v10230_v27  ;;  %v1236_v29 = vadd.f32 %v1235_v28, %v11295_v49 }
 0x46a   :  { %v1247_v43 = vsel %vm398_vm5, %v1241_v10, -inf }
 0x46b   :  { %v1244_v12 = vsel %vm398_vm5, %v1236_v29, -inf }
 0x46c   :  { %1245 = vmax.xlane.f32.xlu0 %v1244_v12  ;;  %v135_v12 = vld [vmem:[#allocation2 + $0x358] sm:$0xff] }
 0x46d   :  { %v10248_v38 = vpack.c.bf16 %v136_v31, %v135_v12 }
 0x46f   :  { %9579 = vmatmul.mubr.msk.f32.vlgmr.msra.gmra.mrb[4].mxu0 %vm314_vm1, %v9556_v19 }
 0x470   :  { %10233 = vmatpush3.bf16.msra.mxu0 %v10230_v27  ;;  %1248 = vmax.xlane.f32.xlu0 %v1247_v43 }
 0x471   :  { %9592 = vmatprep.mubr.msk.f32.mxu0 %vm398_vm5, %v980_v45  ;;  %9595 = vmatprep.subr.mxu0 %v130_v39  ;;  %v141_v45 = vld [vmem:[#allocation2 + $0x388] sm:$0xff] }
 0x473   :  { %9593 = vmatmul.mubr.msk.f32.vlgmr.msra.gmra.mrb[6].mxu0 %vm398_vm5, %v982_v46  ;;  %v10256_v46 = vpack.c.bf16 %v141_v45, %v140_v41  ;;  %v153_v41 = vld [vmem:[#allocation2 + $0x3e8] sm:$0xff] }
 0x474   :  { %9596 = vmatpush3.msra.mxu0 %v130_v39  ;;  %v138_v39 = vld [vmem:[#allocation2 + $0x370] sm:$0xff] }
 0x475   :  { %10241 = vmatprep.subr.bf16.mxu0 %v10240_v47  ;;  %v10252_v43 = vpack.c.bf16 %v139_v40, %v138_v39  ;;  %v152_v40 = vld [vmem:[#allocation2 + $0x3e0] sm:$0xff] }
 0x476   :  { %v10268_v45 = vpack.c.bf16 %v153_v41, %v152_v40 }
 0x4f9   :  { %v1246_v50 = vpop.xlane.xlu0 %1245 }
 0x4fa   :  { %v1250_v13 = vsub.f32 %v1236_v29, %v1246_v50  ;;  %v143_v50 = vld [vmem:[#allocation2 + $0x398] sm:$0xff] }
 0x4fc   :  { %v1252_v51 = vmul.f32 1.442695, %v1250_v13 }
 0x4fd   :  { %v1249_v52 = vpop.xlane.xlu0 %1248 }
 0x4fe   :  { %10918 = vpow2.f32 %v1252_v51  ;;  %v1251_v53 = vsub.f32 %v1241_v10, %v1249_v52  ;;  %v134_v10 = vld [vmem:[#allocation2 + $0x350] sm:$0xff] }
 0x500   :  { %v1254_v54 = vmul.f32 1.442695, %v1251_v53 }
 0x502   :  { %10920 = vpow2.f32 %v1254_v54 }
 0x508   :  { %v10919_v55 = vpop.eup %10918 }
 0x509   :  { %v1256_v56 = vsel %vm398_vm5, %v10919_v55, 0.0 }
 0x50a   :  { %1257 = vadd.xlane.f32.xlu0 %v1256_v56 }
 0x50c   :  { %v10921_v57 = vpop.eup %10920 }
 0x50d   :  { %v1259_v58 = vsel %vm398_vm5, %v10921_v57, 0.0 }
 0x50e   :  { %1260 = vadd.xlane.f32.xlu0 %v1259_v58  ;;  %v8914_v58 = vld [vmem:[#allocation2 + $0x3b8] ss:$0 sm:$0xff] }
 0x546   :  { %v9594_v59 = vpop.f32.mrb[6].mxu0 }
 0x547   :  { %v1061_v60 = vpop.f32.mrb[7].mxu0 }
 0x548   :  { %9597 = vmatprep.mubr.msk.f32.mxu0 %vm314_vm1, %v1061_v60  ;;  %v8915_v60 = vld [vmem:[#allocation2 + $0x3b0] ss:$0 sm:$0xff] }
 0x549   :  { %9598 = vmatmul.mubr.msk.f32.vlgmr.msra.gmra.mrb[4].mxu0 %vm314_vm1, %v9594_v59 }
 0x54a   :  { %10243 = vmatpush3.bf16.msra.mxu0 %v10240_v47  ;;  %v142_v47 = vld [vmem:[#allocation2 + $0x390] sm:$0xff] }
 0x54b   :  { %9614 = vmatprep.subr.mxu0 %v131_v61  ;;  %v10260_v13 = vpack.c.bf16 %v143_v50, %v142_v47 }
 0x597   :  { %v1258_v62 = vpop.xlane.xlu0 %1257 }
 0x598   :  { %10922 = vrcp.f32 %v1258_v62 }
 0x59b   :  { %v1261_v63 = vpop.xlane.xlu0 %1260 }
 0x59c   :  { %10924 = vrcp.f32 %v1261_v63 }
 0x5a2   :  { %v10923_v0 = vpop.eup %10922 }
 0x5a3   :  { %v1263_v1 = vmul.f32 %v10923_v0, %v10919_v55 }
 0x5a5   :  { %9611 = vmatprep.mubr.msk.f32.mxu0 %vm398_vm5, %v1263_v1 }
 0x5a6   :  { %v10925_v2 = vpop.eup %10924 }
 0x5a7   :  { %v1265_v3 = vmul.f32 %v10925_v2, %v10921_v57 }
 0x5a9   :  { %9612 = vmatmul.mubr.msk.f32.vlgmr.msra.gmra.mrb[8].mxu0 %vm398_vm5, %v1265_v3  ;;  %v144_v3 = vld [vmem:[#allocation2 + $0x3a0] sm:$0xff] }
 0x5aa   :  { %9615 = vmatpush3.msra.mxu0 %v131_v61 }
 0x5ab   :  { %10253 = vmatprep.subr.bf16.mxu0 %v10252_v43 }
 0x67c   :  { %v9613_v4 = vpop.f32.mrb[8].mxu0 }
 0x67d   :  { %v1344_v6 = vpop.f32.mrb[9].mxu0 }
 0x67e   :  { %9616 = vmatprep.mubr.msk.f32.mxu0 %vm314_vm1, %v1344_v6 }
 0x67f   :  { %9617 = vmatmul.mubr.msk.f32.vlgmr.msra.gmra.mrb[4].mxu0 %vm314_vm1, %v9613_v4  ;;  %v145_v4 = vld [vmem:[#allocation2 + $0x3a8] sm:$0xff] }
 0x680   :  { %10255 = vmatpush3.bf16.msra.mxu0 %v10252_v43  ;;  %v10264_v6 = vpack.c.bf16 %v145_v4, %v144_v3  ;;  %v154_v43 = vld [vmem:[#allocation2 + $0x3f0] sm:$0xff] }
 0x681   :  { %10257 = vmatprep.subr.bf16.mxu0 %v10256_v46 }
 0x684   :  { %10259 = vmatpush3.bf16.msra.mxu0 %v10256_v46  ;;  %v155_v46 = vld [vmem:[#allocation2 + $0x3f8] sm:$0xff] }
 0x685   :  { %10261 = vmatprep.subr.bf16.mxu0 %v10260_v13  ;;  %v10272_v47 = vpack.c.bf16 %v155_v46, %v154_v43 }
 0x688   :  { %10263 = vmatpush3.bf16.msra.mxu0 %v10260_v13 }
 0x689   :  { %10265 = vmatprep.subr.bf16.mxu0 %v10264_v6 }
 0x68c   :  { %10267 = vmatpush3.bf16.msra.mxu0 %v10264_v6 }
 0x752   :  { %v9618_v9 = vpop.f32.mrb[4].mxu0 }
 0x753   :  { %v1441_v11 = vadd.f32 %v9618_v9, %v8913_v8  ;;  %v1425_v14 = vpop.f32.mrb[5].mxu0 }
 0x754   :  { %v1440_v15 = vadd.f32 %v8913_v8, %v1425_v14  ;;  %v8916_v8 = vld [vmem:[#allocation2 + $0x340] ss:$0 sm:$0xff] }
 0x755   :  { %v1443_v16 = vadd.f32 %v1441_v11, %v11216_v7 }
 0x756   :  { %v1442_v18 = vadd.f32 %v1440_v15, %v11209_v5  ;;  %v133_v5 = vld [vmem:[#allocation2 + $0x348] sm:$0xff] }
 0x757   :  { %v1447_v19 = vsel %vm226_vm0, %v1443_v16, 0.0  ;;  %v10244_v30 = vpack.c.bf16 %v134_v10, %v133_v5 }
 0x758   :  { %1448 = vadd.xlane.f32.xlu1 %v1447_v19  ;;  %v1444_v20 = vsel %vm226_vm0, %v1442_v18, 0.0  ;;  %v8919_v19 = vld [vmem:[#allocation2 + $0x368] ss:$0 sm:$0xff] }
 0x759   :  { %1445 = vadd.xlane.f32.xlu0 %v1444_v20  ;;  %10245 = vmatprep.subr.bf16.mxu1 %v10244_v30 }
 0x75a   :  { %10247 = vmatpush3.bf16.msra.mxu1 %v10244_v30 }
 0x75b   :  { %10249 = vmatprep.subr.bf16.mxu1 %v10248_v38 }
 0x75e   :  { %10251 = vmatpush3.bf16.msra.mxu1 %v10248_v38 }
 0x75f   :  { %10269 = vmatprep.subr.bf16.mxu1 %v10268_v45 }
 0x7e5   :  { %v1449_v21 = vpop.xlane.xlu1 %1448 }
 0x7e6   :  { %v1452_v22 = vmul.f32 0.03125, %v1449_v21  ;;  %v1446_v23 = vpop.xlane.xlu0 %1445 }
 0x7e7   :  { %v1451_v24 = vmul.f32 0.03125, %v1446_v23 }
 0x7e8   :  { %v1454_v25 = vsub.f32 %v1443_v16, %v1452_v22 }
 0x7e9   :  { %v1453_v26 = vsub.f32 %v1442_v18, %v1451_v24 }
 0x7ea   :  { %v1456_v29 = vmul.f32 %v1454_v25, %v1454_v25 }
 0x7eb   :  { %v1455_v27 = vmul.f32 %v1453_v26, %v1453_v26 }
 0x7ec   :  { %v1460_v7 = vsel %vm226_vm0, %v1456_v29, 0.0 }
 0x7ed   :  { %v1457_v28 = vsel %vm226_vm0, %v1455_v27, 0.0 }
 0x7ee   :  { %1458 = vadd.xlane.f32.xlu0 %v1457_v28 }
 0x7f2   :  { %1461 = vadd.xlane.f32.xlu0 %v1460_v7 }
 0x87b   :  { %v1459_v51 = vpop.xlane.xlu0 %1458 }
 0x87c   :  { %v1463_v52 = vmul.f32 0.03125, %v1459_v51 }
 0x87e   :  { %v1465_v53 = vadd.f32 1e-05, %v1463_v52 }
 0x87f   :  { %v1462_v54 = vpop.xlane.xlu0 %1461 }
 0x880   :  { %10926 = vrsqrt.f32 %v1465_v53  ;;  %v1464_v55 = vmul.f32 0.03125, %v1462_v54 }
 0x882   :  { %v1466_v56 = vadd.f32 1e-05, %v1464_v55 }
 0x884   :  { %10928 = vrsqrt.f32 %v1466_v56  ;;  %v8922_v56 = vld [vmem:[#allocation2 + $0x3c8] ss:$0 sm:$0xff] }
 0x88a   :  { %v10927_v57 = vpop.eup %10926 }
 0x88b   :  { %v1469_v59 = vmul.f32 %v10927_v57, %v1453_v26 }
 0x88d   :  { %v1475_v61 = vmul.f32 %v8914_v58, %v1469_v59 }
 0x88e   :  { %v10929_v62 = vpop.eup %10928 }
 0x88f   :  { %v1470_v63 = vmul.f32 %v10929_v62, %v1454_v25  ;;  %v1481_v0 = vadd.f32 %v8915_v60, %v1475_v61 }
 0x891   :  { %v1476_v1 = vmul.f32 %v8914_v58, %v1470_v63  ;;  %9627 = vmatprep.mubr.msk.f32.mxu1 %vm226_vm0, %v1481_v0  ;;  %v8923_v58 = vld [vmem:[#allocation2 + $0x3c0] ss:$0 sm:$0xff] }
 0x893   :  { %v1482_v2 = vadd.f32 %v8915_v60, %v1476_v1  ;;  %v8924_v1 = vld [vmem:[#allocation2 + $0x3d8] ss:$0 sm:$0xff] }
 0x895   :  { %9628 = vmatmul.mubr.msk.f32.vlgmr.msra.gmra.mrb[10].mxu1 %vm226_vm0, %v1482_v2 }
 0x896   :  { %10271 = vmatpush3.bf16.msra.mxu1 %v10268_v45 }
 0x897   :  { %10273 = vmatprep.subr.bf16.mxu1 %v10272_v47 }
 0x89a   :  { %10275 = vmatpush3.bf16.msra.mxu1 %v10272_v47 }
 0x968   :  { %v9629_v9 = vpop.f32.mrb[10].mxu1 }
 0x969   :  { %v1565_v11 = vadd.f32 %v9629_v9, %v8916_v8  ;;  %v1559_v14 = vpop.f32.mrb[11].mxu1 }
 0x96a   :  { %v1560_v15 = vadd.f32 %v8916_v8, %v1559_v14 }
 0x96b   :  { %v1569_v18 = vmax.f32 %v1565_v11, 0.0 }
 0x96c   :  { %v1568_v16 = vmax.f32 %v1560_v15, 0.0 }
 0x96e   :  { %9646 = vmatprep.mubr.msk.f32.mxu0 %vm1574_vm6, %v1568_v16 }
 0x96f   :  { %9647 = vmatmul.mubr.msk.f32.vlgmr.msra.gmra.mrb[10].mxu0 %vm1574_vm6, %v1569_v18 }
 0xa42   :  { %v9648_v20 = vpop.f32.mrb[10].mxu0 }
 0xa43   :  { %v1647_v21 = vpop.f32.mrb[11].mxu0  ;;  %v1653_v22 = vadd.f32 %v9648_v20, %v8919_v19 }
 0xa44   :  { %v1648_v23 = vadd.f32 %v8919_v19, %v1647_v21 }
 0xa45   :  { %v1657_v26 = vadd.f32 %v1653_v22, %v1482_v2 }
 0xa46   :  { %v1656_v24 = vadd.f32 %v1648_v23, %v1481_v0 }
 0xa47   :  { %v1661_v27 = vsel %vm226_vm0, %v1657_v26, 0.0 }
 0xa48   :  { %v1658_v25 = vsel %vm226_vm0, %v1656_v24, 0.0 }
 0xa49   :  { %1659 = vadd.xlane.f32.xlu0 %v1658_v25 }
 0xa4d   :  { %1662 = vadd.xlane.f32.xlu0 %v1661_v27 }
 0xad6   :  { %v1660_v28 = vpop.xlane.xlu0 %1659 }
 0xad7   :  { %v1664_v29 = vmul.f32 0.03125, %v1660_v28 }
 0xad9   :  { %v1666_v7 = vsub.f32 %v1656_v24, %v1664_v29 }
 0xada   :  { %v1663_v5 = vpop.xlane.xlu0 %1662 }
 0xadb   :  { %v1665_v10 = vmul.f32 0.03125, %v1663_v5  ;;  %v1668_v12 = vmul.f32 %v1666_v7, %v1666_v7 }
 0xadd   :  { %v1667_v30 = vsub.f32 %v1657_v26, %v1665_v10  ;;  %v1670_v31 = vsel %vm226_vm0, %v1668_v12, 0.0 }
 0xade   :  { %1671 = vadd.xlane.f32.xlu0 %v1670_v31 }
 0xadf   :  { %v1669_v38 = vmul.f32 %v1667_v30, %v1667_v30 }
 0xae1   :  { %v1673_v39 = vsel %vm226_vm0, %v1669_v38, 0.0 }
 0xae2   :  { %1674 = vadd.xlane.f32.xlu0 %v1673_v39 }
 0xb6b   :  { %v1672_v50 = vpop.xlane.xlu0 %1671 }
 0xb6c   :  { %v1676_v13 = vmul.f32 0.03125, %v1672_v50 }
 0xb6e   :  { %v1678_v51 = vadd.f32 1e-05, %v1676_v13 }
 0xb6f   :  { %v1675_v52 = vpop.xlane.xlu0 %1674 }
 0xb70   :  { %10930 = vrsqrt.f32 %v1678_v51  ;;  %v1677_v53 = vmul.f32 0.03125, %v1675_v52 }
 0xb72   :  { %v1679_v54 = vadd.f32 1e-05, %v1677_v53 }
 0xb74   :  { %10932 = vrsqrt.f32 %v1679_v54 }
 0xb7a   :  { %v10931_v55 = vpop.eup %10930 }
 0xb7b   :  { %v1682_v57 = vmul.f32 %v10931_v55, %v1666_v7 }
 0xb7d   :  { %v1688_v59 = vmul.f32 %v8922_v56, %v1682_v57 }
 0xb7e   :  { %v10933_v60 = vpop.eup %10932 }
 0xb7f   :  { %v1683_v61 = vmul.f32 %v10933_v60, %v1667_v30  ;;  %v11375_v62 = vadd.f32 %v8923_v58, %v1688_v59 }
 0xb81   :  { %v1689_v63 = vmul.f32 %v8922_v56, %v1683_v61  ;;  %9657 = vmatprep.mubr.msk.f32.mxu1 %vm226_vm0, %v11375_v62 }
 0xb83   :  { %v11379_v0 = vadd.f32 %v8923_v58, %v1689_v63 }
 0xb85   :  { %9658 = vmatmul.mubr.msk.f32.vlgmr.msra.gmra.mrb[12].mxu1 %vm226_vm0, %v11379_v0 }
 0xc58   :  { %v9659_v2 = vpop.f32.mrb[12].mxu1 }
 0xc59   :  { %v11383_v3 = vadd.f32 %v9659_v2, %v8924_v1  ;;  %v1772_v4 = vpop.f32.mrb[13].mxu1 }
 0xc5a   :  { %v11385_v6 = vadd.f32 %v8924_v1, %v1772_v4 }
 0xc5c   :  { %9664 = vmatprep.mubr.msk.f32.mxu1 %vm314_vm1, %v11385_v6  ;;  %v11391_v8 = vpack.i.bf16 %v11383_v3, %v11385_v6 }
 0xc5e   :  { %10710 = vrot.lane.b32.xlu1 %v11391_v8, %s11163_s30  ;;  %10705 = vrot.lane.b32.xlu0 %v11391_v8, %s11162_s1 }
 0xc62   :  { %10715 = vrot.lane.b32.xlu1 %v11391_v8, %s11165_s5  ;;  %1979 = vrot.lane.b32.xlu0 %v11385_v6, %s11161_s29 }
 0xc66   :  { %2343 = vrot.lane.b32.xlu1 %v11383_v3, %s11164_s4  ;;  %1981 = vrot.lane.b32.xlu0 %v11383_v3, %s11161_s29 }
 0xc6a   :  { %2341 = vrot.lane.b32.xlu0 %v11385_v6, %s11164_s4 }
 0xcd0   :  { %v10711_v9 = vpop.permute.xlu1 %10710  ;;  %v10706_v11 = vpop.permute.xlu0 %10705 }
 0xcd1   :  { %v10713_v14 = vunpack.i.h.bf16 %v10711_v9  ;;  %v10712_v15 = vunpack.i.l.bf16 %v10711_v9  ;;  %v10708_v16 = vunpack.i.h.bf16 %v10706_v11  ;;  %v10707_v18 = vunpack.i.l.bf16 %v10706_v11 }
 0xcd3   :  { %v10276_v19 = vpack.c.bf16 %v10708_v16, %v10707_v18  ;;  %v10286_v20 = vpack.c.bf16 %v10713_v14, %v10712_v15 }
 0xcd4   :  { %v10716_v21 = vpop.permute.xlu1 %10715  ;;  %v1980_v24 = vpop.permute.xlu0 %1979 }
 0xcd5   :  { %10278 = vmatprep.subr.msk.bf16.mxu1 %vm11246_vm2, %v10276_v19  ;;  %v10718_v22 = vunpack.i.h.bf16 %v10716_v21  ;;  %v10717_v23 = vunpack.i.l.bf16 %v10716_v21 }
 0xcd6   :  { %10281 = vmatpush3.bf16.xpose.msk.msra.mxu1 %vm11246_vm2, %v10276_v19 }
 0xcd7   :  { %10288 = vmatprep.subr.msk.bf16.mxu1 %vm11246_vm2, %v10286_v20  ;;  %v10296_v25 = vpack.c.bf16 %v10718_v22, %v10717_v23 }
 0xcd8   :  { %v1982_v26 = vpop.permute.xlu0 %1981  ;;  %v2344_v28 = vpop.permute.xlu1 %2343 }
 0xcdc   :  { %v2342_v27 = vpop.permute.xlu0 %2341 }
 0xcdd   :  { %9665 = vmatmul.mubr.msk.f32.vlgmr.msra.gmra.mrb[14].mxu1 %vm314_vm1, %v11383_v3 }
 0xcde   :  { %10291 = vmatpush3.bf16.xpose.msk.msra.mxu1 %vm11246_vm2, %v10286_v20  ;;  %9678 = vmatprep.mubr.msk.f32.mxu1 %vm314_vm1, %v1980_v24 }
 0xcdf   :  { %10298 = vmatprep.subr.msk.bf16.mxu1 %vm11246_vm2, %v10296_v25 }
 0xce5   :  { %9679 = vmatmul.mubr.msk.f32.vlgmr.msra.gmra.mrb[16].mxu1 %vm314_vm1, %v1982_v26 }
 0xce6   :  { %10301 = vmatpush3.bf16.xpose.msk.msra.mxu1 %vm11246_vm2, %v10296_v25  ;;  %9702 = vmatprep.mubr.msk.f32.mxu1 %vm314_vm1, %v2342_v27 }
 0xced   :  { %9703 = vmatmul.mubr.msk.f32.vlgmr.msra.gmra.mrb[18].mxu1 %vm314_vm1, %v2344_v28 }
 0xdb0   :  { %v9666_v29 = vpop.f32.mrb[14].mxu1 }
 0xdb1   :  { %v1867_v7 = vadd.f32 %v9666_v29, %v11293_v48  ;;  %v1861_v5 = vpop.f32.mrb[15].mxu1 }
 0xdb2   :  { %v1862_v10 = vadd.f32 %v1861_v5, %v11295_v49 }
 0xdb3   :  { %v1873_v12 = vsel %vm398_vm5, %v1867_v7, -inf }
 0xdb4   :  { %1874 = vmax.xlane.f32.xlu1 %v1873_v12  ;;  %v1870_v30 = vsel %vm398_vm5, %v1862_v10, -inf }
 0xdb5   :  { %1871 = vmax.xlane.f32.xlu0 %v1870_v30 }
 0xdb8   :  { %v9680_v31 = vpop.f32.mrb[16].mxu1 }
 0xdb9   :  { %v2061_v38 = vpop.f32.mrb[17].mxu1  ;;  %v2067_v40 = vadd.f32 %v9680_v31, %v11293_v48 }
 0xdba   :  { %v2062_v39 = vadd.f32 %v2061_v38, %v11295_v49 }
 0xdbb   :  { %v2073_v45 = vsel %vm398_vm5, %v2067_v40, -inf }
 0xdbc   :  { %v2070_v41 = vsel %vm398_vm5, %v2062_v39, -inf }
 0xdbd   :  { %2071 = vmax.xlane.f32.xlu0 %v2070_v41 }
 0xdc0   :  { %v9704_v43 = vpop.f32.mrb[18].mxu1 }
 0xdc1   :  { %v2423_v46 = vpop.f32.mrb[19].mxu1  ;;  %2074 = vmax.xlane.f32.xlu0 %v2073_v45  ;;  %v2429_v14 = vadd.f32 %v9704_v43, %v11293_v48 }
 0xdc2   :  { %v2424_v15 = vadd.f32 %v2423_v46, %v11295_v49 }
 0xdc3   :  { %v2435_v18 = vsel %vm398_vm5, %v2429_v14, -inf }
 0xdc4   :  { %v2432_v16 = vsel %vm398_vm5, %v2424_v15, -inf }
 0xe41   :  { %v1875_v47 = vpop.xlane.xlu1 %1874 }
 0xe42   :  { %v1877_v50 = vsub.f32 %v1867_v7, %v1875_v47  ;;  %v1872_v13 = vpop.xlane.xlu0 %1871 }
 0xe43   :  { %v1876_v51 = vsub.f32 %v1862_v10, %v1872_v13 }
 0xe44   :  { %v1880_v52 = vmul.f32 1.442695, %v1877_v50 }
 0xe45   :  { %v1878_v53 = vmul.f32 1.442695, %v1876_v51 }
 0xe46   :  { %10934 = vpow2.f32 %v1880_v52 }
 0xe47   :  { %10936 = vpow2.f32 %v1878_v53 }
 0xe4a   :  { %v2072_v54 = vpop.xlane.xlu0 %2071 }
 0xe4b   :  { %v2076_v55 = vsub.f32 %v2062_v39, %v2072_v54 }
 0xe4d   :  { %v2078_v56 = vmul.f32 1.442695, %v2076_v55 }
 0xe4e   :  { %v2075_v57 = vpop.xlane.xlu0 %2074 }
 0xe4f   :  { %10938 = vpow2.f32 %v2078_v56  ;;  %v2077_v58 = vsub.f32 %v2067_v40, %v2075_v57 }
 0xe50   :  { %v10935_v59 = vpop.eup %10934 }
 0xe51   :  { %v10937_v60 = vpop.eup %10936  ;;  %v2080_v61 = vmul.f32 1.442695, %v2077_v58  ;;  %v1885_v63 = vsel %vm398_vm5, %v10935_v59, 0.0  ;;  %v157_v58 = vld [vmem:[#allocation2 + $0x408] sm:$0xff] }
 0xe52   :  { %1886 = vadd.xlane.f32.xlu0 %v1885_v63  ;;  %v1882_v1 = vsel %vm398_vm5, %v10937_v60, 0.0 }
 0xe53   :  { %10940 = vpow2.f32 %v2080_v61  ;;  %1883 = vadd.xlane.f32.xlu1 %v1882_v1 }
 0xe59   :  { %v10939_v2 = vpop.eup %10938 }
 0xe5a   :  { %v2082_v4 = vsel %vm398_vm5, %v10939_v2, 0.0 }
 0xe5b   :  { %2083 = vadd.xlane.f32.xlu1 %v2082_v4 }
 0xe5d   :  { %v10941_v9 = vpop.eup %10940 }
 0xe5e   :  { %v2085_v11 = vsel %vm398_vm5, %v10941_v9, 0.0 }
 0xe5f   :  { %2086 = vadd.xlane.f32.xlu0 %v2085_v11 }
 0xe6c   :  { %10720 = vrot.lane.b32.xlu1 %v11391_v8, %s11169_s9 }
 0xe70   :  { %10730 = vrot.lane.b32.xlu1 %v11391_v8, %s11168_s8 }
 0xe74   :  { %2624 = vrot.lane.b32.xlu1 %v11385_v6, %s11170_s10 }
 0xe75   :  { %10725 = vrot.lane.b32.xlu0 %v11391_v8, %s11167_s2 }
 0xe79   :  { %2626 = vrot.lane.b32.xlu0 %v11383_v3, %s11170_s10 }
 0xe98   :  { %2433 = vmax.xlane.f32.xlu1 %v2432_v16  ;;  %2436 = vmax.xlane.f32.xlu0 %v2435_v18 }
 0xedf   :  { %v1887_v20 = vpop.xlane.xlu0 %1886 }
 0xee0   :  { %v1884_v19 = vpop.xlane.xlu1 %1883 }
 0xee1   :  { %10942 = vrcp.f32 %v1884_v19 }
 0xee2   :  { %10944 = vrcp.f32 %v1887_v20 }
 0xee8   :  { %v2084_v6 = vpop.xlane.xlu1 %2083 }
 0xee9   :  { %10946 = vrcp.f32 %v2084_v6 }
 0xeeb   :  { %v10943_v21 = vpop.eup %10942 }
 0xeec   :  { %v10721_v22 = vpop.permute.xlu1 %10720  ;;  %v2087_v23 = vpop.xlane.xlu0 %2086  ;;  %v1889_v3 = vmul.f32 %v10943_v21, %v10937_v60 }
 0xeed   :  { %v10723_v24 = vunpack.i.h.bf16 %v10721_v22  ;;  %v10722_v25 = vunpack.i.l.bf16 %v10721_v22  ;;  %10948 = vrcp.f32 %v2087_v23  ;;  %v10945_v27 = vpop.eup %10944 }
 0xeee   :  { %9671 = vmatprep.mubr.msk.f32.mxu0 %vm398_vm5, %v1889_v3  ;;  %v1891_v38 = vmul.f32 %v10945_v27, %v10935_v59  ;;  %v156_v59 = vld [vmem:[#allocation2 + $0x400] sm:$0xff] }
 0xeef   :  { %v10282_v26 = vpack.c.bf16 %v10723_v24, %v10722_v25  ;;  %v158_v25 = vld [vmem:[#allocation2 + $0x410] sm:$0xff] }
 0xef0   :  { %v10731_v28 = vpop.permute.xlu1 %10730  ;;  %v10726_v29 = vpop.permute.xlu0 %10725 }
 0xef1   :  { %v10733_v7 = vunpack.i.h.bf16 %v10731_v28  ;;  %v10732_v5 = vunpack.i.l.bf16 %v10731_v28  ;;  %v10728_v10 = vunpack.i.h.bf16 %v10726_v29  ;;  %v10727_v12 = vunpack.i.l.bf16 %v10726_v29  ;;  %10283 = vmatprep.subr.bf16.mxu0 %v10282_v26 }
 0xef2   :  { %10285 = vmatpush3.bf16.msra.mxu0 %v10282_v26 }
 0xef3   :  { %v10947_v30 = vpop.eup %10946  ;;  %v10306_v31 = vpack.c.bf16 %v10733_v7, %v10732_v5  ;;  %v10292_v39 = vpack.c.bf16 %v10728_v10, %v10727_v12 }
 0xef4   :  { %v2625_v40 = vpop.permute.xlu1 %2624  ;;  %v2089_v41 = vmul.f32 %v10947_v30, %v10939_v2  ;;  %v2627_v46 = vpop.permute.xlu0 %2626 }
 0xef5   :  { %9672 = vmatmul.mubr.msk.f32.vlgmr.msra.gmra.mrb[12].mxu0 %vm398_vm5, %v1891_v38  ;;  %10293 = vmatprep.subr.bf16.mxu0 %v10292_v39 }
 0xef6   :  { %10308 = vmatprep.subr.msk.bf16.mxu1 %vm11246_vm2, %v10306_v31  ;;  %9721 = vmatprep.mubr.msk.f32.mxu1 %vm314_vm1, %v2625_v40 }
 0xef7   :  { %v10949_v43 = vpop.eup %10948  ;;  %10295 = vmatpush3.bf16.msra.mxu0 %v10292_v39  ;;  %9685 = vmatprep.mubr.msk.f32.mxu0 %vm398_vm5, %v2089_v41 }
 0xef8   :  { %10311 = vmatpush3.bf16.xpose.msk.msra.mxu1 %vm11246_vm2, %v10306_v31  ;;  %v2091_v45 = vmul.f32 %v10949_v43, %v10941_v9  ;;  %9688 = vmatprep.subr.mxu0 %v157_v58 }
 0xefa   :  { %9686 = vmatmul.mubr.msk.f32.vlgmr.msra.gmra.mrb[14].mxu0 %vm398_vm5, %v2091_v45 }
 0xefb   :  { %9689 = vmatpush3.msra.mxu0 %v157_v58 }
 0xefc   :  { %9693 = vmatprep.subr.mxu0 %v156_v59 }
 0xeff   :  { %9722 = vmatmul.mubr.msk.f32.vlgmr.msra.gmra.mrb[20].mxu1 %vm314_vm1, %v2627_v46  ;;  %v159_v46 = vld [vmem:[#allocation2 + $0x418] sm:$0xff] }
 0xf25   :  { %v2434_v47 = vpop.xlane.xlu1 %2433  ;;  %v2437_v50 = vpop.xlane.xlu0 %2436 }
 0xf26   :  { %v2438_v13 = vsub.f32 %v2424_v15, %v2434_v47  ;;  %v2439_v51 = vsub.f32 %v2429_v14, %v2437_v50 }
 0xf28   :  { %v2440_v52 = vmul.f32 1.442695, %v2438_v13  ;;  %v2442_v53 = vmul.f32 1.442695, %v2439_v51 }
 0xf2a   :  { %10950 = vpow2.f32 %v2440_v52 }
 0xf2b   :  { %10952 = vpow2.f32 %v2442_v53  ;;  %v8959_v53 = vld [vmem:[#allocation2 + $0x3d0] ss:$0 sm:$0xff] }
 0xf34   :  { %v10951_v54 = vpop.eup %10950 }
 0xf35   :  { %v10953_v55 = vpop.eup %10952  ;;  %v2444_v56 = vsel %vm398_vm5, %v10951_v54, 0.0 }
 0xf36   :  { %2445 = vadd.xlane.f32.xlu0 %v2444_v56  ;;  %v2447_v57 = vsel %vm398_vm5, %v10953_v55, 0.0 }
 0xf37   :  { %2448 = vadd.xlane.f32.xlu1 %v2447_v57 }
 0xf4c   :  { %10735 = vrot.lane.b32.xlu0 %v11391_v8, %s11171_s11 }
 0xfc3   :  { %v2446_v60 = vpop.xlane.xlu0 %2445 }
 0xfc4   :  { %v2449_v2 = vpop.xlane.xlu1 %2448  ;;  %10954 = vrcp.f32 %v2446_v60 }
 0xfc5   :  { %10956 = vrcp.f32 %v2449_v2 }
 0xfc7   :  { %v10736_v63 = vpop.permute.xlu0 %10735 }
 0xfc8   :  { %v9673_v61 = vpop.f32.mrb[12].mxu0  ;;  %v10738_v4 = vunpack.i.h.bf16 %v10736_v63  ;;  %v10737_v9 = vunpack.i.l.bf16 %v10736_v63 }
 0xfc9   :  { %v1970_v1 = vpop.f32.mrb[13].mxu0 }
 0xfca   :  { %v10302_v15 = vpack.c.bf16 %v10738_v4, %v10737_v9 }
 0xfcd   :  { %v9687_v11 = vpop.f32.mrb[14].mxu0 }
 0xfce   :  { %v2170_v14 = vpop.f32.mrb[15].mxu0  ;;  %v10955_v19 = vpop.eup %10954 }
 0xfcf   :  { %9690 = vmatprep.mubr.msk.f32.mxu0 %vm314_vm1, %v2170_v14  ;;  %v10957_v22 = vpop.eup %10956  ;;  %v2451_v23 = vmul.f32 %v10955_v19, %v10951_v54  ;;  %v163_v19 = vld [vmem:[#allocation2 + $0x438] sm:$0xff] }
 0xfd0   :  { %9691 = vmatmul.mubr.msk.f32.vlgmr.msra.gmra.mrb[16].mxu0 %vm314_vm1, %v9687_v11  ;;  %v2453_v24 = vmul.f32 %v10957_v22, %v10953_v55  ;;  %v67_v22 = vld [vmem:[#allocation2 + $0x138] sm:$0xff] }
 0xfd1   :  { %9694 = vmatpush3.msra.mxu0 %v156_v59  ;;  %9695 = vmatprep.mubr.msk.f32.mxu0 %vm314_vm1, %v1970_v1 }
 0xfd2   :  { %v9723_v16 = vpop.f32.mrb[20].mxu1  ;;  %10303 = vmatprep.subr.bf16.mxu0 %v10302_v15 }
 0xfd3   :  { %v2706_v18 = vpop.f32.mrb[21].mxu1  ;;  %v2712_v6 = vadd.f32 %v9723_v16, %v11293_v48 }
 0xfd4   :  { %v2707_v20 = vadd.f32 %v2706_v18, %v11295_v49  ;;  %v162_v18 = vld [vmem:[#allocation2 + $0x430] sm:$0xff] }
 0xfd5   :  { %v2718_v3 = vsel %vm398_vm5, %v2712_v6, -inf }
 0xfd6   :  { %v2715_v21 = vsel %vm398_vm5, %v2707_v20, -inf }
 0xfd7   :  { %2716 = vmax.xlane.f32.xlu1 %v2715_v21 }
 0xfd8   :  { %9696 = vmatmul.mubr.msk.f32.vlgmr.msra.gmra.mrb[16].mxu0 %vm314_vm1, %v9673_v61 }
 0xfd9   :  { %10305 = vmatpush3.bf16.msra.mxu0 %v10302_v15  ;;  %9709 = vmatprep.mubr.msk.f32.mxu0 %vm398_vm5, %v2451_v23  ;;  %v68_v23 = vld [vmem:[#allocation2 + $0x140] sm:$0xff] }
 0xfda   :  { %9712 = vmatprep.subr.mxu0 %v158_v25 }
 0xfdb   :  { %2719 = vmax.xlane.f32.xlu1 %v2718_v3  ;;  %v10340_v3 = vpack.c.bf16 %v68_v23, %v67_v22 }
 0xfdc   :  { %9710 = vmatmul.mubr.msk.f32.vlgmr.msra.gmra.mrb[18].mxu0 %vm398_vm5, %v2453_v24  ;;  %v166_v24 = vld [vmem:[#allocation2 + $0x450] sm:$0xff] }
 0xfdd   :  { %9713 = vmatpush3.msra.mxu0 %v158_v25  ;;  %v167_v25 = vld [vmem:[#allocation2 + $0x458] sm:$0xff] }
0x1064   :  { %v2717_v48 = vpop.xlane.xlu1 %2716 }
0x1065   :  { %v2721_v49 = vsub.f32 %v2707_v20, %v2717_v48  ;;  %v168_v48 = vld [vmem:[#allocation2 + $0x460] sm:$0xff] }
0x1067   :  { %v2723_v28 = vmul.f32 1.442695, %v2721_v49  ;;  %v10324_v49 = vpack.c.bf16 %v167_v25, %v166_v24 }
0x1068   :  { %v2720_v26 = vpop.xlane.xlu1 %2719 }
0x1069   :  { %v2722_v27 = vsub.f32 %v2712_v6, %v2720_v26  ;;  %v164_v6 = vld [vmem:[#allocation2 + $0x440] sm:$0xff]  ;;  %v169_v26 = vld [vmem:[#allocation2 + $0x468] sm:$0xff] }
0x106a   :  { %v10320_v21 = vpack.c.bf16 %v164_v6, %v163_v19 }
0x106b   :  { %v2725_v29 = vmul.f32 1.442695, %v2722_v27  ;;  %v10328_v27 = vpack.c.bf16 %v169_v26, %v168_v48 }
0x106d   :  { %10958 = vpow2.f32 %v2725_v29  ;;  %v171_v29 = vld [vmem:[#allocation2 + $0x478] sm:$0xff] }
0x106e   :  { %10960 = vpow2.f32 %v2723_v28  ;;  %v170_v28 = vld [vmem:[#allocation2 + $0x470] sm:$0xff] }
0x1077   :  { %v10959_v7 = vpop.eup %10958 }
0x1078   :  { %v2730_v5 = vsel %vm398_vm5, %v10959_v7, 0.0  ;;  %v10961_v10 = vpop.eup %10960 }
0x1079   :  { %2731 = vadd.xlane.f32.xlu1 %v2730_v5  ;;  %v2727_v12 = vsel %vm398_vm5, %v10961_v10, 0.0 }
0x107d   :  { %2728 = vadd.xlane.f32.xlu1 %v2727_v12 }
0x108e   :  { %10740 = vrot.lane.b32.xlu1 %v11391_v8, %s11172_s12 }
0x10af   :  { %v9711_v30 = vpop.f32.mrb[18].mxu0 }
0x10b0   :  { %v2532_v31 = vpop.f32.mrb[19].mxu0 }
0x10b1   :  { %9714 = vmatprep.mubr.msk.f32.mxu0 %vm314_vm1, %v2532_v31 }
0x10b2   :  { %9715 = vmatmul.mubr.msk.f32.vlgmr.msra.gmra.mrb[16].mxu0 %vm314_vm1, %v9711_v30 }
0x1106   :  { %v2732_v38 = vpop.xlane.xlu1 %2731 }
0x1107   :  { %10962 = vrcp.f32 %v2732_v38 }
0x110a   :  { %v2729_v39 = vpop.xlane.xlu1 %2728 }
0x110b   :  { %10964 = vrcp.f32 %v2729_v39 }
0x110e   :  { %v10741_v40 = vpop.permute.xlu1 %10740 }
0x110f   :  { %v10743_v41 = vunpack.i.h.bf16 %v10741_v40  ;;  %v10742_v43 = vunpack.i.l.bf16 %v10741_v40  ;;  %v8960_v40 = vld [vmem:[#allocation2 + $0x498] ss:$0 sm:$0xff] }
0x1111   :  { %v10312_v45 = vpack.c.bf16 %v10743_v41, %v10742_v43  ;;  %v10963_v47 = vpop.eup %10962  ;;  %v8961_v43 = vld [vmem:[#allocation2 + $0x490] ss:$0 sm:$0xff] }
0x1112   :  { %v2736_v13 = vmul.f32 %v10963_v47, %v10959_v7  ;;  %v10332_v7 = vpack.c.bf16 %v171_v29, %v170_v28 }
0x1113   :  { %10313 = vmatprep.subr.bf16.mxu0 %v10312_v45 }
0x1114   :  { %10315 = vmatpush3.bf16.msra.mxu0 %v10312_v45  ;;  %v178_v45 = vld [vmem:[#allocation2 + $0x4b0] sm:$0x1f] }
0x1115   :  { %v10965_v50 = vpop.eup %10964  ;;  %9731 = vmatprep.subr.mxu0 %v159_v46 }
0x1116   :  { %v2734_v8 = vmul.f32 %v10965_v50, %v10961_v10 }
0x1118   :  { %9728 = vmatprep.mubr.msk.f32.mxu0 %vm398_vm5, %v2734_v8 }
0x1119   :  { %9729 = vmatmul.mubr.msk.f32.vlgmr.msra.gmra.mrb[20].mxu0 %vm398_vm5, %v2736_v13  ;;  %v11493_v13 = vrot.slane %v178_v45, 3 }
0x111a   :  { %9732 = vmatpush3.msra.mxu0 %v159_v46 }
0x111b   :  { %10325 = vmatprep.subr.bf16.mxu0 %v10324_v49 }
0x11ec   :  { %v9730_v51 = vpop.f32.mrb[20].mxu0 }
0x11ed   :  { %v2815_v52 = vpop.f32.mrb[21].mxu0 }
0x11ee   :  { %9733 = vmatprep.mubr.msk.f32.mxu0 %vm314_vm1, %v2815_v52  ;;  %v70_v52 = vld [vmem:[#allocation2 + $0x150] sm:$0xff] }
0x11ef   :  { %9734 = vmatmul.mubr.msk.f32.vlgmr.msra.gmra.mrb[16].mxu0 %vm314_vm1, %v9730_v51  ;;  %v69_v51 = vld [vmem:[#allocation2 + $0x148] sm:$0xff] }
0x11f0   :  { %10327 = vmatpush3.bf16.msra.mxu0 %v10324_v49 }
0x11f1   :  { %10329 = vmatprep.subr.bf16.mxu0 %v10328_v27 }
0x11f4   :  { %10331 = vmatpush3.bf16.msra.mxu0 %v10328_v27 }
0x11f5   :  { %10333 = vmatprep.subr.bf16.mxu0 %v10332_v7 }
0x11f8   :  { %10335 = vmatpush3.bf16.msra.mxu0 %v10332_v7  ;;  %v11552_v7 = vld [vmem:[#allocation2 + $0x448] ss:$0 sm:$0xff] }
0x12c2   :  { %v9735_v54 = vpop.f32.mrb[16].mxu0 }
0x12c3   :  { %v2912_v55 = vadd.f32 %v9735_v54, %v8959_v53  ;;  %v2896_v56 = vpop.f32.mrb[17].mxu0 }
0x12c4   :  { %v2911_v57 = vadd.f32 %v8959_v53, %v2896_v56  ;;  %v11500_v56 = vsel %vm3206_vm7, %v178_v45, %v11493_v13  ;;  %vm4732_vm7 = vcmask 123904  }
0x12c5   :  { %v2914_v58 = vadd.f32 %v2912_v55, %v11379_v0  ;;  %v10344_v55 = vpack.c.bf16 %v70_v52, %v69_v51 }
0x12c6   :  { %v2913_v59 = vadd.f32 %v2911_v57, %v11375_v62  ;;  %v161_v62 = vld [vmem:[#allocation2 + $0x428] sm:$0xff]  ;;  %v172_v57 = vld [vmem:[#allocation2 + $0x480] sm:$0xff] }
0x12c7   :  { %v2918_v60 = vsel %vm226_vm0, %v2914_v58, 0.0  ;;  %v10316_v20 = vpack.c.bf16 %v162_v18, %v161_v62 }
0x12c8   :  { %2919 = vadd.xlane.f32.xlu1 %v2918_v60  ;;  %v2915_v61 = vsel %vm226_vm0, %v2913_v59, 0.0  ;;  %v8962_v60 = vld [vmem:[#allocation2 + $0x420] ss:$0 sm:$0xff] }
0x12c9   :  { %2916 = vadd.xlane.f32.xlu0 %v2915_v61  ;;  %10317 = vmatprep.subr.bf16.mxu1 %v10316_v20 }
0x12ca   :  { %10319 = vmatpush3.bf16.msra.mxu1 %v10316_v20 }
0x12cb   :  { %10321 = vmatprep.subr.bf16.mxu1 %v10320_v21 }
0x12ce   :  { %10323 = vmatpush3.bf16.msra.mxu1 %v10320_v21 }
0x12cf   :  { %10341 = vmatprep.subr.bf16.mxu1 %v10340_v3 }
0x1355   :  { %v2920_v63 = vpop.xlane.xlu1 %2919 }
0x1356   :  { %v2922_v1 = vmul.f32 0.03125, %v2920_v63  ;;  %v2917_v2 = vpop.xlane.xlu0 %2916 }
0x1357   :  { %v2921_v4 = vmul.f32 0.03125, %v2917_v2 }
0x1358   :  { %v2924_v9 = vsub.f32 %v2914_v58, %v2922_v1  ;;  %v173_v58 = vld [vmem:[#allocation2 + $0x488] sm:$0xff] }
0x1359   :  { %v2923_v11 = vsub.f32 %v2913_v59, %v2921_v4  ;;  %v10336_v59 = vpack.c.bf16 %v173_v58, %v172_v57 }
0x135a   :  { %v2926_v16 = vmul.f32 %v2924_v9, %v2924_v9 }
0x135b   :  { %v2925_v14 = vmul.f32 %v2923_v11, %v2923_v11  ;;  %10337 = vmatprep.subr.bf16.mxu0 %v10336_v59 }
0x135c   :  { %v2930_v0 = vsel %vm226_vm0, %v2926_v16, 0.0  ;;  %10339 = vmatpush3.bf16.msra.mxu0 %v10336_v59 }
0x135d   :  { %v2927_v15 = vsel %vm226_vm0, %v2925_v14, 0.0 }
0x135e   :  { %2928 = vadd.xlane.f32.xlu0 %v2927_v15 }
0x1362   :  { %2931 = vadd.xlane.f32.xlu0 %v2930_v0 }
0x13eb   :  { %v2929_v5 = vpop.xlane.xlu0 %2928 }
0x13ec   :  { %v2933_v10 = vmul.f32 0.03125, %v2929_v5 }
0x13ee   :  { %v2935_v12 = vadd.f32 1e-05, %v2933_v10 }
0x13ef   :  { %v2932_v30 = vpop.xlane.xlu0 %2931 }
0x13f0   :  { %10966 = vrsqrt.f32 %v2935_v12  ;;  %v2934_v31 = vmul.f32 0.03125, %v2932_v30  ;;  %v11561_v30 = vmul.f32 0.2, %v183_v35 }
0x13f2   :  { %v2936_v38 = vadd.f32 1e-05, %v2934_v31  ;;  %v210_v31 = vmul.f32 0.2, %v186_v36 }
0x13f4   :  { %10968 = vrsqrt.f32 %v2936_v38  ;;  %v11567_v38 = vmul.f32 0.2, %v182_v37 }
0x13fa   :  { %v10967_v39 = vpop.eup %10966 }
0x13fb   :  { %v2939_v41 = vmul.f32 %v10967_v39, %v2923_v11  ;;  %v8972_v11 = vld [vmem:[#allocation2 + $0x130] ss:$0 sm:$0xff]  ;;  %v209_v39 = vfloor.f32 %v11561_v30 }
0x13fd   :  { %v2945_v46 = vmul.f32 %v8960_v40, %v2939_v41  ;;  %v208_v41 = vfloor.f32 %v11567_v38  ;;  %vm217_vm3 = vcmp.eq.f32.partialorder %v209_v39, %v11284_v42 }
0x13fe   :  { %v10969_v47 = vpop.eup %10968 }
0x13ff   :  { %v2940_v50 = vmul.f32 %v10969_v47, %v2924_v9  ;;  %v11491_v8 = vadd.f32 %v8961_v43, %v2945_v46  ;;  %vm216_vm4 = vcmp.eq.f32.partialorder %v208_v41, %v11284_v42 }
0x1401   :  { %v2946_v53 = vmul.f32 %v8960_v40, %v2940_v50  ;;  %9744 = vmatprep.mubr.msk.f32.mxu1 %vm226_vm0, %v11491_v8  ;;  %v211_v40 = vfloor.f32 %v210_v31 }
0x1403   :  { %v11497_v54 = vadd.f32 %v8961_v43, %v2946_v53  ;;  %vm213_vm8 = vcmp.eq.f32.partialorder %v209_v39, %v211_v40  ;;  %vm212_vm9 = vcmp.eq.f32.partialorder %v208_v41, %v211_v40 }
0x1404   :  { %v11576_v33 = vsel %vm213_vm8, 0.0, %v11166_v44  ;;  %v11579_v34 = vsel %vm212_vm9, 0.0, %v11166_v44 }
0x1405   :  { %9745 = vmatmul.mubr.msk.f32.vlgmr.msra.gmra.mrb[22].mxu1 %vm226_vm0, %v11497_v54 }
0x1406   :  { %10343 = vmatpush3.bf16.msra.mxu1 %v10340_v3  ;;  %9774 = vmatprep.mubr.msk.f32.mxu1 %vm226_vm0, %v11500_v56 }
0x1407   :  { %10345 = vmatprep.subr.bf16.mxu1 %v10344_v55 }
0x140a   :  { %10347 = vmatpush3.bf16.msra.mxu1 %v10344_v55 }
0x140d   :  { %9775 = vmatmul.mubr.msk.f32.vlgmr.msra.gmra.mrb[24].mxu1 %vm226_vm0, %v11493_v13 }
0x14d8   :  { %v9746_v61 = vpop.f32.mrb[22].mxu1 }
0x14d9   :  { %v3035_v63 = vadd.f32 %v9746_v61, %v8962_v60  ;;  %v3029_v1 = vpop.f32.mrb[23].mxu1 }
0x14da   :  { %v3030_v2 = vadd.f32 %v8962_v60, %v3029_v1 }
0x14db   :  { %v3039_v9 = vmax.f32 %v3035_v63, 0.0 }
0x14dc   :  { %v3038_v4 = vmax.f32 %v3030_v2, 0.0 }
0x14de   :  { %9763 = vmatprep.mubr.msk.f32.mxu0 %vm1574_vm6, %v3038_v4 }
0x14df   :  { %9764 = vmatmul.mubr.msk.f32.vlgmr.msra.gmra.mrb[22].mxu0 %vm1574_vm6, %v3039_v9 }
0x14e0   :  { %v9776_v14 = vpop.f32.mrb[24].mxu1 }
0x14e1   :  { %v11510_v15 = vadd.f32 %v9776_v14, %v8972_v11  ;;  %v3283_v16 = vpop.f32.mrb[25].mxu1 }
0x14e2   :  { %v11512_v0 = vadd.f32 %v8972_v11, %v3283_v16 }
0x14e4   :  { %9781 = vmatprep.mubr.msk.f32.mxu1 %vm314_vm1, %v11512_v0  ;;  %v11518_v62 = vpack.i.bf16 %v11510_v15, %v11512_v0 }
0x14e6   :  { %10750 = vrot.lane.b32.xlu1 %v11518_v62, %s11163_s30  ;;  %10745 = vrot.lane.b32.xlu0 %v11518_v62, %s11162_s1 }
0x14ea   :  { %10755 = vrot.lane.b32.xlu1 %v11518_v62, %s11165_s5  ;;  %3494 = vrot.lane.b32.xlu0 %v11512_v0, %s11161_s29 }
0x14ee   :  { %3859 = vrot.lane.b32.xlu1 %v11510_v15, %s11164_s4  ;;  %3496 = vrot.lane.b32.xlu0 %v11510_v15, %s11161_s29 }
0x14f2   :  { %3857 = vrot.lane.b32.xlu0 %v11512_v0, %s11164_s4 }
0x1558   :  { %v10751_v18 = vpop.permute.xlu1 %10750  ;;  %v10746_v19 = vpop.permute.xlu0 %10745 }
0x1559   :  { %v10753_v20 = vunpack.i.h.bf16 %v10751_v18  ;;  %v10752_v6 = vunpack.i.l.bf16 %v10751_v18  ;;  %v10748_v21 = vunpack.i.h.bf16 %v10746_v19  ;;  %v10747_v22 = vunpack.i.l.bf16 %v10746_v19 }
0x155b   :  { %v10348_v23 = vpack.c.bf16 %v10748_v21, %v10747_v22  ;;  %v10360_v3 = vpack.c.bf16 %v10753_v20, %v10752_v6 }
0x155c   :  { %v10756_v24 = vpop.permute.xlu1 %10755  ;;  %v3495_v49 = vpop.permute.xlu0 %3494 }
0x155d   :  { %10350 = vmatprep.subr.msk.bf16.mxu1 %vm11246_vm2, %v10348_v23  ;;  %v10758_v25 = vunpack.i.h.bf16 %v10756_v24  ;;  %v10757_v48 = vunpack.i.l.bf16 %v10756_v24 }
0x155e   :  { %10353 = vmatpush3.bf16.xpose.msk.msra.mxu1 %vm11246_vm2, %v10348_v23 }
0x155f   :  { %10362 = vmatprep.subr.msk.bf16.mxu1 %vm11246_vm2, %v10360_v3  ;;  %v10372_v26 = vpack.c.bf16 %v10758_v25, %v10757_v48 }
0x1560   :  { %v3497_v27 = vpop.permute.xlu0 %3496  ;;  %v3860_v29 = vpop.permute.xlu1 %3859 }
0x1564   :  { %v3858_v28 = vpop.permute.xlu0 %3857 }
0x1565   :  { %9782 = vmatmul.mubr.msk.f32.vlgmr.msra.gmra.mrb[26].mxu1 %vm314_vm1, %v11510_v15 }
0x1566   :  { %10365 = vmatpush3.bf16.xpose.msk.msra.mxu1 %vm11246_vm2, %v10360_v3  ;;  %9795 = vmatprep.mubr.msk.f32.mxu1 %vm314_vm1, %v3495_v49 }
0x1567   :  { %10374 = vmatprep.subr.msk.bf16.mxu1 %vm11246_vm2, %v10372_v26 }
0x156d   :  { %9796 = vmatmul.mubr.msk.f32.vlgmr.msra.gmra.mrb[28].mxu1 %vm314_vm1, %v3497_v27 }
0x156e   :  { %10377 = vmatpush3.bf16.xpose.msk.msra.mxu1 %vm11246_vm2, %v10372_v26  ;;  %9819 = vmatprep.mubr.msk.f32.mxu1 %vm314_vm1, %v3858_v28 }
0x1575   :  { %9820 = vmatmul.mubr.msk.f32.vlgmr.msra.gmra.mrb[30].mxu1 %vm314_vm1, %v3860_v29 }
0x15b2   :  { %v9765_v5 = vpop.f32.mrb[22].mxu0 }
0x15b3   :  { %v11555_v10 = vadd.f32 %v9765_v5, %v11552_v7  ;;  %v11557_v12 = vpop.f32.mrb[23].mxu0 }
0x1638   :  { %v9783_v32 = vpop.f32.mrb[26].mxu1 }
0x1639   :  { %v3378_v35 = vadd.f32 %v9783_v32, %v11576_v33  ;;  %v3372_v36 = vpop.f32.mrb[27].mxu1  ;;  %v82_v32 = vld [vmem:[#allocation2 + $0x1b0] sm:$0xff] }
0x163a   :  { %v3373_v37 = vadd.f32 %v3372_v36, %v11579_v34 }
0x163b   :  { %v3386_v43 = vsel %vm3385_vm10, %v3378_v35, -inf }
0x163c   :  { %3387 = vmax.xlane.f32.xlu1 %v3386_v43  ;;  %v3382_v45 = vsel %vm3381_vm11, %v3373_v37, -inf }
0x163d   :  { %3383 = vmax.xlane.f32.xlu0 %v3382_v45 }
0x1640   :  { %v9797_v46 = vpop.f32.mrb[28].mxu1 }
0x1641   :  { %v3576_v47 = vpop.f32.mrb[29].mxu1  ;;  %v3582_v51 = vadd.f32 %v9797_v46, %v11576_v33 }
0x1642   :  { %v3577_v50 = vadd.f32 %v3576_v47, %v11579_v34 }
0x1643   :  { %v3588_v55 = vsel %vm3385_vm10, %v3582_v51, -inf }
0x1644   :  { %v3585_v52 = vsel %vm3381_vm11, %v3577_v50, -inf }
0x1645   :  { %3586 = vmax.xlane.f32.xlu0 %v3585_v52 }
0x1648   :  { %v9821_v53 = vpop.f32.mrb[30].mxu1 }
0x1649   :  { %v3939_v57 = vpop.f32.mrb[31].mxu1  ;;  %3589 = vmax.xlane.f32.xlu0 %v3588_v55  ;;  %v3945_v24 = vadd.f32 %v9821_v53, %v11576_v33 }
0x164a   :  { %v3940_v25 = vadd.f32 %v3939_v57, %v11579_v34 }
0x164b   :  { %v3951_v49 = vsel %vm3385_vm10, %v3945_v24, -inf }
0x164c   :  { %v3948_v48 = vsel %vm3381_vm11, %v3940_v25, -inf }
0x16c9   :  { %v3388_v58 = vpop.xlane.xlu1 %3387 }
0x16ca   :  { %v3390_v59 = vsub.f32 %v3378_v35, %v3388_v58  ;;  %v3384_v60 = vpop.xlane.xlu0 %3383 }
0x16cb   :  { %v3389_v61 = vsub.f32 %v3373_v37, %v3384_v60 }
0x16cc   :  { %v3393_v63 = vmul.f32 1.442695, %v3390_v59 }
0x16cd   :  { %v3391_v1 = vmul.f32 1.442695, %v3389_v61 }
0x16ce   :  { %10970 = vpow2.f32 %v3393_v63 }
0x16cf   :  { %10972 = vpow2.f32 %v3391_v1 }
0x16d2   :  { %v3587_v2 = vpop.xlane.xlu0 %3586 }
0x16d3   :  { %v3591_v4 = vsub.f32 %v3577_v50, %v3587_v2 }
0x16d5   :  { %v3593_v9 = vmul.f32 1.442695, %v3591_v4 }
0x16d6   :  { %v3590_v11 = vpop.xlane.xlu0 %3589 }
0x16d7   :  { %10974 = vpow2.f32 %v3593_v9  ;;  %v3592_v14 = vsub.f32 %v3582_v51, %v3590_v11 }
0x16d8   :  { %v10971_v16 = vpop.eup %10970 }
0x16d9   :  { %v10973_v18 = vpop.eup %10972  ;;  %v3595_v19 = vmul.f32 1.442695, %v3592_v14  ;;  %v3398_v20 = vsel %vm3385_vm10, %v10971_v16, 0.0 }
0x16da   :  { %3399 = vadd.xlane.f32.xlu0 %v3398_v20  ;;  %v3395_v6 = vsel %vm3381_vm11, %v10973_v18, 0.0  ;;  %v72_v20 = vld [vmem:[#allocation2 + $0x160] sm:$0xff] }
0x16db   :  { %10976 = vpow2.f32 %v3595_v19  ;;  %3396 = vadd.xlane.f32.xlu1 %v3395_v6  ;;  %v71_v6 = vld [vmem:[#allocation2 + $0x158] sm:$0xff] }
0x16e1   :  { %v10975_v21 = vpop.eup %10974 }
0x16e2   :  { %v3597_v22 = vsel %vm3381_vm11, %v10975_v21, 0.0 }
0x16e3   :  { %3598 = vadd.xlane.f32.xlu1 %v3597_v22 }
0x16e5   :  { %v10977_v23 = vpop.eup %10976 }
0x16e6   :  { %v3600_v3 = vsel %vm3385_vm10, %v10977_v23, 0.0 }
0x16e7   :  { %3601 = vadd.xlane.f32.xlu0 %v3600_v3 }
0x16f4   :  { %10760 = vrot.lane.b32.xlu1 %v11518_v62, %s11169_s9 }
0x16f8   :  { %10770 = vrot.lane.b32.xlu1 %v11518_v62, %s11168_s8 }
0x16fc   :  { %4141 = vrot.lane.b32.xlu1 %v11512_v0, %s11170_s10 }
0x16fd   :  { %10765 = vrot.lane.b32.xlu0 %v11518_v62, %s11167_s2 }
0x1701   :  { %4143 = vrot.lane.b32.xlu0 %v11510_v15, %s11170_s10 }
0x1720   :  { %3949 = vmax.xlane.f32.xlu1 %v3948_v48  ;;  %3952 = vmax.xlane.f32.xlu0 %v3951_v49 }
0x1767   :  { %v3400_v27 = vpop.xlane.xlu0 %3399 }
0x1768   :  { %v3397_v26 = vpop.xlane.xlu1 %3396 }
0x1769   :  { %10978 = vrcp.f32 %v3397_v26 }
0x176a   :  { %10980 = vrcp.f32 %v3400_v27 }
0x1770   :  { %v3599_v0 = vpop.xlane.xlu1 %3598 }
0x1771   :  { %10982 = vrcp.f32 %v3599_v0 }
0x1773   :  { %v10979_v28 = vpop.eup %10978 }
0x1774   :  { %v10761_v29 = vpop.permute.xlu1 %10760  ;;  %v3602_v15 = vpop.xlane.xlu0 %3601  ;;  %v3402_v5 = vmul.f32 %v10979_v28, %v10973_v18 }
0x1775   :  { %v10763_v31 = vunpack.i.h.bf16 %v10761_v29  ;;  %v10762_v40 = vunpack.i.l.bf16 %v10761_v29  ;;  %10984 = vrcp.f32 %v3602_v15  ;;  %v10981_v36 = vpop.eup %10980 }
0x1776   :  { %9788 = vmatprep.mubr.msk.f32.mxu0 %vm3381_vm11, %v3402_v5  ;;  %v3404_v55 = vmul.f32 %v10981_v36, %v10971_v16 }
0x1777   :  { %v10354_v35 = vpack.c.bf16 %v10763_v31, %v10762_v40 }
0x1778   :  { %v10771_v37 = vpop.permute.xlu1 %10770  ;;  %v10766_v43 = vpop.permute.xlu0 %10765 }
0x1779   :  { %v10773_v45 = vunpack.i.h.bf16 %v10771_v37  ;;  %v10772_v46 = vunpack.i.l.bf16 %v10771_v37  ;;  %v10768_v47 = vunpack.i.h.bf16 %v10766_v43  ;;  %v10767_v50 = vunpack.i.l.bf16 %v10766_v43  ;;  %10356 = vmatprep.subr.msk.bf16.mxu0 %vm11608_vm14, %v10354_v35 }
0x177a   :  { %10359 = vmatpush3.bf16.msk.msra.mxu0 %vm11608_vm14, %v10354_v35 }
0x177b   :  { %v10983_v51 = vpop.eup %10982  ;;  %v10384_v52 = vpack.c.bf16 %v10773_v45, %v10772_v46  ;;  %v10366_v53 = vpack.c.bf16 %v10768_v47, %v10767_v50 }
0x177c   :  { %v4142_v57 = vpop.permute.xlu1 %4141  ;;  %v3604_v58 = vmul.f32 %v10983_v51, %v10975_v21  ;;  %v4144_v61 = vpop.permute.xlu0 %4143  ;;  %v3117_v21 = vadd.f32 %v11552_v7, %v11557_v12  ;;  %v73_v51 = vld [vmem:[#allocation2 + $0x168] sm:$0xff] }
0x177d   :  { %9789 = vmatmul.mubr.msk.f32.vlgmr.msra.gmra.mrb[24].mxu0 %vm3381_vm11, %v3404_v55  ;;  %10368 = vmatprep.subr.msk.bf16.mxu0 %vm11608_vm14, %v10366_v53 }
0x177e   :  { %10386 = vmatprep.subr.msk.bf16.mxu1 %vm11246_vm2, %v10384_v52  ;;  %9838 = vmatprep.mubr.msk.f32.mxu1 %vm314_vm1, %v4142_v57  ;;  %v3125_v22 = vadd.f32 %v3117_v21, %v11491_v8 }
0x177f   :  { %v10985_v59 = vpop.eup %10984  ;;  %10371 = vmatpush3.bf16.msk.msra.mxu0 %vm11608_vm14, %v10366_v53  ;;  %9802 = vmatprep.mubr.msk.f32.mxu0 %vm3381_vm11, %v3604_v58 }
0x1780   :  { %10389 = vmatpush3.bf16.xpose.msk.msra.mxu1 %vm11246_vm2, %v10384_v52  ;;  %v3606_v60 = vmul.f32 %v10985_v59, %v10977_v23  ;;  %9805 = vmatprep.subr.mxu0 %v72_v20  ;;  %v3127_v23 = vsel %vm226_vm0, %v3125_v22, 0.0 }
0x1782   :  { %9803 = vmatmul.mubr.msk.f32.vlgmr.msra.gmra.mrb[26].mxu0 %vm3381_vm11, %v3606_v60 }
0x1783   :  { %9806 = vmatpush3.msra.mxu0 %v72_v20 }
0x1784   :  { %9810 = vmatprep.subr.mxu0 %v71_v6 }
0x1787   :  { %9839 = vmatmul.mubr.msk.f32.vlgmr.msra.gmra.mrb[32].mxu1 %vm314_vm1, %v4144_v61 }
0x17ad   :  { %v3950_v63 = vpop.xlane.xlu1 %3949  ;;  %v3953_v1 = vpop.xlane.xlu0 %3952 }
0x17ae   :  { %v3954_v2 = vsub.f32 %v3940_v25, %v3950_v63  ;;  %v3955_v4 = vsub.f32 %v3945_v24, %v3953_v1 }
0x17b0   :  { %v3956_v9 = vmul.f32 1.442695, %v3954_v2  ;;  %v3958_v11 = vmul.f32 1.442695, %v3955_v4  ;;  %v3126_v2 = vadd.f32 %v11555_v10, %v11497_v54 }
0x17b2   :  { %10986 = vpow2.f32 %v3956_v9 }
0x17b3   :  { %10988 = vpow2.f32 %v3958_v11  ;;  %v3130_v11 = vsel %vm226_vm0, %v3126_v2, 0.0 }
0x17bc   :  { %v10987_v14 = vpop.eup %10986 }
0x17bd   :  { %v10989_v16 = vpop.eup %10988  ;;  %v3960_v18 = vsel %vm3381_vm11, %v10987_v14, 0.0 }
0x17be   :  { %3961 = vadd.xlane.f32.xlu0 %v3960_v18  ;;  %v3963_v19 = vsel %vm3385_vm10, %v10989_v16, 0.0 }
0x17bf   :  { %3964 = vadd.xlane.f32.xlu1 %v3963_v19 }
0x17d4   :  { %10775 = vrot.lane.b32.xlu0 %v11518_v62, %s11171_s11 }
0x17f3   :  { %3128 = vadd.xlane.f32.xlu0 %v3127_v23 }
0x184b   :  { %v3962_v3 = vpop.xlane.xlu0 %3961 }
0x184c   :  { %v3965_v49 = vpop.xlane.xlu1 %3964  ;;  %10990 = vrcp.f32 %v3962_v3 }
0x184d   :  { %10992 = vrcp.f32 %v3965_v49  ;;  %v8968_v49 = vld [vmem:[#allocation2 + $0x4a8] ss:$0 sm:$0xff] }
0x184f   :  { %v10776_v25 = vpop.permute.xlu0 %10775 }
0x1850   :  { %v9790_v24 = vpop.f32.mrb[24].mxu0  ;;  %v10778_v26 = vunpack.i.h.bf16 %v10776_v25  ;;  %v10777_v27 = vunpack.i.l.bf16 %v10776_v25 }
0x1851   :  { %v3485_v48 = vpop.f32.mrb[25].mxu0 }
0x1852   :  { %v10378_v29 = vpack.c.bf16 %v10778_v26, %v10777_v27 }
0x1855   :  { %v9804_v0 = vpop.f32.mrb[26].mxu0 }
0x1856   :  { %v3686_v28 = vpop.f32.mrb[27].mxu0  ;;  %v10991_v12 = vpop.eup %10990 }
0x1857   :  { %9807 = vmatprep.mubr.msk.f32.mxu0 %vm314_vm1, %v3686_v28  ;;  %v10993_v40 = vpop.eup %10992  ;;  %v3967_v35 = vmul.f32 %v10991_v12, %v10987_v14  ;;  %v8969_v28 = vld [vmem:[#allocation2 + $0x4a0] ss:$0 sm:$0xff] }
0x1858   :  { %9808 = vmatmul.mubr.msk.f32.vlgmr.msra.gmra.mrb[28].mxu0 %vm314_vm1, %v9804_v0  ;;  %v3969_v37 = vmul.f32 %v10993_v40, %v10989_v16 }
0x1859   :  { %9811 = vmatpush3.msra.mxu0 %v71_v6  ;;  %9812 = vmatprep.mubr.msk.f32.mxu0 %vm314_vm1, %v3485_v48 }
0x185a   :  { %v9840_v8 = vpop.f32.mrb[32].mxu1  ;;  %10380 = vmatprep.subr.msk.bf16.mxu0 %vm11608_vm14, %v10378_v29 }
0x185b   :  { %v4223_v7 = vpop.f32.mrb[33].mxu1  ;;  %v4229_v5 = vadd.f32 %v9840_v8, %v11576_v33 }
0x185c   :  { %v4224_v15 = vadd.f32 %v4223_v7, %v11579_v34 }
0x185d   :  { %v4235_v36 = vsel %vm3385_vm10, %v4229_v5, -inf }
0x185e   :  { %v4232_v31 = vsel %vm3381_vm11, %v4224_v15, -inf }
0x185f   :  { %4233 = vmax.xlane.f32.xlu1 %v4232_v31 }
0x1860   :  { %9813 = vmatmul.mubr.msk.f32.vlgmr.msra.gmra.mrb[28].mxu0 %vm314_vm1, %v9790_v24 }
0x1861   :  { %10383 = vmatpush3.bf16.msk.msra.mxu0 %vm11608_vm14, %v10378_v29  ;;  %9826 = vmatprep.mubr.msk.f32.mxu0 %vm3381_vm11, %v3967_v35 }
0x1862   :  { %9829 = vmatprep.subr.mxu0 %v73_v51 }
0x1863   :  { %4236 = vmax.xlane.f32.xlu1 %v4235_v36 }
0x1864   :  { %9827 = vmatmul.mubr.msk.f32.vlgmr.msra.gmra.mrb[30].mxu0 %vm3381_vm11, %v3969_v37 }
0x1865   :  { %9830 = vmatpush3.msra.mxu0 %v73_v51 }
0x1880   :  { %v3129_v43 = vpop.xlane.xlu0 %3128 }
0x1881   :  { %v3133_v45 = vmul.f32 0.03125, %v3129_v43 }
0x1883   :  { %v3135_v46 = vsub.f32 %v3125_v22, %v3133_v45 }
0x1885   :  { %v3137_v47 = vmul.f32 %v3135_v46, %v3135_v46 }
0x1887   :  { %v3139_v50 = vsel %vm226_vm0, %v3137_v47, 0.0 }
0x1888   :  { %3140 = vadd.xlane.f32.xlu0 %v3139_v50 }
0x18ec   :  { %v4234_v52 = vpop.xlane.xlu1 %4233 }
0x18ed   :  { %v4238_v53 = vsub.f32 %v4224_v15, %v4234_v52  ;;  %v74_v15 = vld [vmem:[#allocation2 + $0x170] sm:$0xff] }
0x18ef   :  { %v4240_v58 = vmul.f32 1.442695, %v4238_v53 }
0x18f0   :  { %v4237_v55 = vpop.xlane.xlu1 %4236 }
0x18f1   :  { %v4239_v57 = vsub.f32 %v4229_v5, %v4237_v55  ;;  %v9011_v55 = vld [vmem:[#allocation2 + $0x128] ss:$0 sm:$0xff] }
0x18f3   :  { %v4242_v59 = vmul.f32 1.442695, %v4239_v57 }
0x18f5   :  { %10994 = vpow2.f32 %v4242_v59 }
0x18f6   :  { %10996 = vpow2.f32 %v4240_v58 }
0x18ff   :  { %v10995_v60 = vpop.eup %10994 }
0x1900   :  { %v4247_v61 = vsel %vm3385_vm10, %v10995_v60, 0.0  ;;  %v10997_v63 = vpop.eup %10996 }
0x1901   :  { %4248 = vadd.xlane.f32.xlu1 %v4247_v61  ;;  %v4244_v1 = vsel %vm3381_vm11, %v10997_v63, 0.0 }
0x1905   :  { %4245 = vadd.xlane.f32.xlu1 %v4244_v1 }
0x1915   :  { %v3141_v22 = vpop.xlane.xlu0 %3140 }
0x1916   :  { %10780 = vrot.lane.b32.xlu1 %v11518_v62, %s11172_s12  ;;  %v3145_v23 = vmul.f32 0.03125, %v3141_v22 }
0x1918   :  { %v3147_v3 = vadd.f32 1e-05, %v3145_v23 }
0x1937   :  { %v9828_v4 = vpop.f32.mrb[30].mxu0 }
0x1938   :  { %v4049_v9 = vpop.f32.mrb[31].mxu0 }
0x1939   :  { %9831 = vmatprep.mubr.msk.f32.mxu0 %vm314_vm1, %v4049_v9 }
0x193a   :  { %3131 = vadd.xlane.f32.xlu1 %v3130_v11  ;;  %9832 = vmatmul.mubr.msk.f32.vlgmr.msra.gmra.mrb[28].mxu0 %vm314_vm1, %v9828_v4 }
0x198e   :  { %v4249_v14 = vpop.xlane.xlu1 %4248 }
0x198f   :  { %10998 = vrcp.f32 %v4249_v14 }
0x1992   :  { %v4246_v16 = vpop.xlane.xlu1 %4245 }
0x1993   :  { %11000 = vrcp.f32 %v4246_v16 }
0x1994   :  { %11002 = vrsqrt.f32 %v3147_v3 }
0x1996   :  { %v10781_v18 = vpop.permute.xlu1 %10780 }
0x1997   :  { %v10783_v19 = vunpack.i.h.bf16 %v10781_v18  ;;  %v10782_v20 = vunpack.i.l.bf16 %v10781_v18 }
0x1999   :  { %v10390_v62 = vpack.c.bf16 %v10783_v19, %v10782_v20  ;;  %v10999_v54 = vpop.eup %10998  ;;  %v32_v19 = vld [vmem:[#allocation2 + $0x20] sm:$0xff]  ;;  %v33_v20 = vld [vmem:[#allocation2 + $0x28] sm:$0xff] }
0x199a   :  { %v4253_v21 = vmul.f32 %v10999_v54, %v10995_v60  ;;  %v35_v54 = vld [vmem:[#allocation2 + $0x38] sm:$0xff] }
0x199b   :  { %10392 = vmatprep.subr.msk.bf16.mxu0 %vm11608_vm14, %v10390_v62 }
0x199c   :  { %10395 = vmatpush3.bf16.msk.msra.mxu0 %vm11608_vm14, %v10390_v62  ;;  %v34_v62 = vld [vmem:[#allocation2 + $0x30] sm:$0xff] }
0x199d   :  { %v11001_v10 = vpop.eup %11000  ;;  %9848 = vmatprep.subr.mxu0 %v74_v15 }
0x199e   :  { %v4251_v6 = vmul.f32 %v11001_v10, %v10997_v63  ;;  %v11003_v24 = vpop.eup %11002 }
0x199f   :  { %v3151_v25 = vmul.f32 %v11003_v24, %v3135_v46 }
0x19a0   :  { %9845 = vmatprep.mubr.msk.f32.mxu0 %vm3381_vm11, %v4251_v6 }
0x19a1   :  { %9846 = vmatmul.mubr.msk.f32.vlgmr.msra.gmra.mrb[32].mxu0 %vm3381_vm11, %v4253_v21  ;;  %v3157_v0 = vmul.f32 %v8968_v49, %v3151_v25 }
0x19a2   :  { %9849 = vmatpush3.msra.mxu0 %v74_v15 }
0x19a3   :  { %v3163_v7 = vadd.f32 %v8969_v28, %v3157_v0 }
0x19a5   :  { %v3165_v12 = vsel %vm226_vm0, %v3163_v7, 0.0 }
0x19c7   :  { %v3132_v48 = vpop.xlane.xlu1 %3131 }
0x19c8   :  { %v3134_v26 = vmul.f32 0.03125, %v3132_v48 }
0x19ca   :  { %v3136_v27 = vsub.f32 %v3126_v2, %v3134_v26 }
0x19cc   :  { %v3138_v29 = vmul.f32 %v3136_v27, %v3136_v27 }
0x19ce   :  { %v3142_v8 = vsel %vm226_vm0, %v3138_v29, 0.0 }
0x19cf   :  { %3143 = vadd.xlane.f32.xlu0 %v3142_v8 }
0x19d3   :  { %3166 = vadd.xlane.f32.xlu0 %v3165_v12  ;;  %v8970_v12 = vld [vmem:[#allocation2 + $0x2e8] ss:$0 sm:$0xff] }
0x1a5c   :  { %v3144_v5 = vpop.xlane.xlu0 %3143 }
0x1a5d   :  { %v3146_v31 = vmul.f32 0.03125, %v3144_v5 }
0x1a5f   :  { %v3148_v40 = vadd.f32 1e-05, %v3146_v31 }
0x1a60   :  { %v3167_v50 = vpop.xlane.xlu0 %3166 }
0x1a61   :  { %11004 = vrsqrt.f32 %v3148_v40  ;;  %v3171_v53 = vmul.f32 0.03125, %v3167_v50  ;;  %v8971_v40 = vld [vmem:[#allocation2 + $0x2e0] ss:$0 sm:$0xff] }
0x1a63   :  { %v3173_v61 = vsub.f32 %v3163_v7, %v3171_v53 }
0x1a65   :  { %v3175_v14 = vmul.f32 %v3173_v61, %v3173_v61 }
0x1a67   :  { %v3177_v18 = vsel %vm226_vm0, %v3175_v14, 0.0 }
0x1a6b   :  { %v11005_v35 = vpop.eup %11004 }
0x1a6c   :  { %v3152_v36 = vmul.f32 %v11005_v35, %v3136_v27 }
0x1a6e   :  { %v3158_v37 = vmul.f32 %v8968_v49, %v3152_v36 }
0x1a70   :  { %v3164_v43 = vadd.f32 %v8969_v28, %v3158_v37 }
0x1a72   :  { %v3168_v45 = vsel %vm226_vm0, %v3164_v43, 0.0 }
0x1a73   :  { %3169 = vadd.xlane.f32.xlu0 %v3168_v45  ;;  %v37_v45 = vld [vmem:[#allocation2 + $0x48] sm:$0xff] }
0x1a74   :  { %v9847_v46 = vpop.f32.mrb[32].mxu0 }
0x1a75   :  { %v4333_v47 = vpop.f32.mrb[33].mxu0 }
0x1a76   :  { %9850 = vmatprep.mubr.msk.f32.mxu0 %vm314_vm1, %v4333_v47  ;;  %v39_v47 = vld [vmem:[#allocation2 + $0x58] sm:$0xff] }
0x1a77   :  { %9851 = vmatmul.mubr.msk.f32.vlgmr.msra.gmra.mrb[28].mxu0 %vm314_vm1, %v9847_v46  ;;  %v38_v46 = vld [vmem:[#allocation2 + $0x50] sm:$0xff] }
0x1a78   :  { %v10396_v50 = vpack.c.bf16 %v38_v46, %v37_v45 }
0x1a7a   :  { %10397 = vmatprep.subr.bf16.mxu1 %v10396_v50 }
0x1a7b   :  { %10399 = vmatpush3.bf16.msra.mxu1 %v10396_v50 }
0x1b00   :  { %v3170_v51 = vpop.xlane.xlu0 %3169 }
0x1b01   :  { %v3172_v52 = vmul.f32 0.03125, %v3170_v51  ;;  %v40_v51 = vld [vmem:[#allocation2 + $0x60] sm:$0xff] }
0x1b03   :  { %v3174_v58 = vsub.f32 %v3164_v43, %v3172_v52  ;;  %v10400_v52 = vpack.c.bf16 %v40_v51, %v39_v47 }
0x1b05   :  { %v3176_v9 = vmul.f32 %v3174_v58, %v3174_v58  ;;  %10401 = vmatprep.subr.bf16.mxu1 %v10400_v52 }
0x1b06   :  { %10403 = vmatpush3.bf16.msra.mxu1 %v10400_v52 }
0x1b07   :  { %v3180_v16 = vsel %vm226_vm0, %v3176_v9, 0.0  ;;  %v9013_v9 = vld [vmem:[#allocation2 + $0xf8] ss:$0 sm:$0xff] }
0x1b4a   :  { %v9852_v57 = vpop.f32.mrb[28].mxu0 }
0x1b4b   :  { %v4430_v59 = vadd.f32 %v9852_v57, %v9011_v55  ;;  %v4414_v60 = vpop.f32.mrb[29].mxu0 }
0x1b4c   :  { %v4429_v63 = vadd.f32 %v9011_v55, %v4414_v60 }
0x1b4d   :  { %v4432_v1 = vadd.f32 %v4430_v59, %v11493_v13  ;;  %v10404_v13 = vpack.c.bf16 %v33_v20, %v32_v19  ;;  %v9017_v19 = vld [vmem:[#allocation2 + $0x18] ss:$0 sm:$0xff] }
0x1b4e   :  { %v4431_v2 = vadd.f32 %v4429_v63, %v11500_v56  ;;  %v10408_v56 = vpack.c.bf16 %v35_v54, %v34_v62  ;;  %v9012_v63 = vld [vmem:[#allocation2 + $0x100] ss:$0 sm:$0xff] }
0x1b4f   :  { %v4437_v4 = vsel %vm4436_vm15, %v4432_v1, 0.0  ;;  %10405 = vmatprep.subr.bf16.mxu0 %v10404_v13 }
0x1b50   :  { %4438 = vadd.xlane.f32.xlu1 %v4437_v4  ;;  %v4433_v11 = vsel %vm226_vm0, %v4431_v2, 0.0  ;;  %10407 = vmatpush3.bf16.msra.mxu0 %v10404_v13 }
0x1b51   :  { %4434 = vadd.xlane.f32.xlu0 %v4433_v11  ;;  %10409 = vmatprep.subr.bf16.mxu0 %v10408_v56 }
0x1b54   :  { %3181 = vadd.xlane.f32.xlu1 %v3180_v16  ;;  %10411 = vmatpush3.bf16.msra.mxu0 %v10408_v56 }
0x1b55   :  { %3178 = vadd.xlane.f32.xlu0 %v3177_v18 }
0x1bdd   :  { %v4439_v10 = vpop.xlane.xlu1 %4438 }
0x1bde   :  { %v4441_v6 = vmul.f32 0.03125, %v4439_v10  ;;  %v4435_v21 = vpop.xlane.xlu0 %4434 }
0x1bdf   :  { %v4440_v22 = vmul.f32 0.03125, %v4435_v21 }
0x1be0   :  { %v4443_v23 = vsub.f32 %v4432_v1, %v4441_v6 }
0x1be1   :  { %v4442_v3 = vsub.f32 %v4431_v2, %v4440_v22  ;;  %v3182_v24 = vpop.xlane.xlu1 %3181 }
0x1be2   :  { %v3184_v25 = vmul.f32 0.03125, %v3182_v24  ;;  %v3179_v48 = vpop.xlane.xlu0 %3178  ;;  %v4445_v49 = vmul.f32 %v4443_v23, %v4443_v23  ;;  %v9014_v24 = vld [vmem:[#allocation2 + $0x40] ss:$0 sm:$0xff] }
0x1be3   :  { %v3183_v26 = vmul.f32 0.03125, %v3179_v48  ;;  %v4444_v27 = vmul.f32 %v4442_v3, %v4442_v3 }
0x1be4   :  { %v3186_v0 = vadd.f32 1e-05, %v3184_v25  ;;  %v4449_v28 = vsel %vm4436_vm15, %v4445_v49, 0.0 }
0x1be5   :  { %v3185_v29 = vadd.f32 1e-05, %v3183_v26  ;;  %4450 = vadd.xlane.f32.xlu1 %v4449_v28  ;;  %v4446_v8 = vsel %vm226_vm0, %v4444_v27, 0.0 }
0x1be6   :  { %11006 = vrsqrt.f32 %v3186_v0  ;;  %4447 = vadd.xlane.f32.xlu0 %v4446_v8 }
0x1be7   :  { %11008 = vrsqrt.f32 %v3185_v29 }
0x1bf0   :  { %v11007_v7 = vpop.eup %11006 }
0x1bf1   :  { %v11009_v15 = vpop.eup %11008  ;;  %v3190_v5 = vmul.f32 %v11007_v7, %v3174_v58 }
0x1bf2   :  { %v3189_v31 = vmul.f32 %v11009_v15, %v3173_v61  ;;  %v11741_v15 = vsel %vm217_vm3, 0.0, %v11166_v44 }
0x1bf3   :  { %v3196_v35 = vmul.f32 %v8970_v12, %v3190_v5  ;;  %v11744_v5 = vsel %vm216_vm4, 0.0, %v11166_v44 }
0x1bf4   :  { %v3195_v36 = vmul.f32 %v8970_v12, %v3189_v31 }
0x1bf5   :  { %v11682_v43 = vadd.f32 %v8971_v40, %v3196_v35 }
0x1bf6   :  { %v11680_v37 = vadd.f32 %v8971_v40, %v3195_v36 }
0x1bf8   :  { %9872 = vmatprep.mubr.msk.f32.mxu0 %vm226_vm0, %v11680_v37 }
0x1bf9   :  { %9873 = vmatmul.mubr.msk.f32.vlgmr.msra.gmra.mrb[34].mxu0 %vm226_vm0, %v11682_v43 }
0x1c72   :  { %v4451_v53 = vpop.xlane.xlu1 %4450 }
0x1c73   :  { %v4453_v55 = vmul.f32 0.03125, %v4451_v53  ;;  %v4448_v57 = vpop.xlane.xlu0 %4447 }
0x1c74   :  { %v4452_v58 = vmul.f32 0.03125, %v4448_v57 }
0x1c75   :  { %v4455_v59 = vadd.f32 1e-05, %v4453_v55 }
0x1c76   :  { %v4454_v60 = vadd.f32 1e-05, %v4452_v58 }
0x1c77   :  { %11010 = vrsqrt.f32 %v4455_v59 }
0x1c78   :  { %11012 = vrsqrt.f32 %v4454_v60 }
0x1c81   :  { %v11011_v61 = vpop.eup %11010 }
0x1c82   :  { %v11013_v1 = vpop.eup %11012  ;;  %v4459_v2 = vmul.f32 %v11011_v61, %v4443_v23 }
0x1c83   :  { %v4458_v4 = vmul.f32 %v11013_v1, %v4442_v3 }
0x1c84   :  { %v4465_v11 = vmul.f32 %v9012_v63, %v4459_v2 }
0x1c85   :  { %v4464_v14 = vmul.f32 %v9012_v63, %v4458_v4 }
0x1c86   :  { %v11690_v18 = vadd.f32 %v9013_v9, %v4465_v11 }
0x1c87   :  { %v11688_v16 = vadd.f32 %v9013_v9, %v4464_v14 }
0x1c89   :  { %9861 = vmatprep.mubr.msk.f32.mxu1 %vm226_vm0, %v11688_v16 }
0x1c8a   :  { %9862 = vmatmul.mubr.msk.f32.vlgmr.msra.gmra.mrb[34].mxu1 %vm226_vm0, %v11690_v18 }
0x1ccc   :  { %v9874_v20 = vpop.f32.mrb[34].mxu0 }
0x1ccd   :  { %v4639_v62 = vadd.f32 %v9874_v20, %v9017_v19  ;;  %v4633_v13 = vpop.f32.mrb[35].mxu0 }
0x1cce   :  { %v4634_v54 = vadd.f32 %v9017_v19, %v4633_v13 }
0x1cd0   :  { %v11696_v56 = vpack.i.bf16 %v4639_v62, %v4634_v54  ;;  %v10412_v10 = vpack.c.bf16 %v4639_v62, %v4634_v54 }
0x1cd2   :  { %10785 = vrot.lane.b32.xlu0 %v11696_v56, %s11161_s29  ;;  %10414 = vmatprep.subr.msk.bf16.mxu1 %vm11246_vm2, %v10412_v10 }
0x1cd3   :  { %10417 = vmatpush3.bf16.xpose.msk.msra.mxu1 %vm11246_vm2, %v10412_v10 }
0x1cd6   :  { %10790 = vrot.lane.b32.xlu0 %v11696_v56, %s11164_s4 }
0x1d44   :  { %v10786_v6 = vpop.permute.xlu0 %10785 }
0x1d45   :  { %v10788_v21 = vunpack.i.h.bf16 %v10786_v6  ;;  %v10787_v22 = vunpack.i.l.bf16 %v10786_v6 }
0x1d47   :  { %v10422_v23 = vpack.c.bf16 %v10788_v21, %v10787_v22 }
0x1d48   :  { %v10791_v3 = vpop.permute.xlu0 %10790 }
0x1d49   :  { %10424 = vmatprep.subr.msk.bf16.mxu1 %vm11246_vm2, %v10422_v23  ;;  %v10793_v48 = vunpack.i.h.bf16 %v10791_v3  ;;  %v10792_v49 = vunpack.i.l.bf16 %v10791_v3 }
0x1d4b   :  { %v10432_v28 = vpack.c.bf16 %v10793_v48, %v10792_v49 }
0x1d5d   :  { %v9863_v25 = vpop.f32.mrb[34].mxu1 }
0x1d5e   :  { %v11708_v26 = vadd.f32 %v9863_v25, %v9014_v24  ;;  %v4548_v27 = vpop.f32.mrb[35].mxu1 }
0x1d5f   :  { %v11710_v0 = vadd.f32 %v9014_v24, %v4548_v27 }
0x1d60   :  { %5203 = vrot.lane.b32.xlu0 %v11708_v26, %s11164_s4 }
0x1d61   :  { %4839 = vrot.lane.b32.xlu1 %v11710_v0, %s11161_s29  ;;  %9879 = vmatprep.mubr.msk.f32.mxu1 %vm314_vm1, %v11710_v0 }
0x1d62   :  { %9880 = vmatmul.mubr.msk.f32.vlgmr.msra.gmra.mrb[36].mxu1 %vm314_vm1, %v11708_v26 }
0x1d63   :  { %10427 = vmatpush3.bf16.xpose.msk.msra.mxu1 %vm11246_vm2, %v10422_v23 }
0x1d64   :  { %10434 = vmatprep.subr.msk.bf16.mxu1 %vm11246_vm2, %v10432_v28 }
0x1d65   :  { %4841 = vrot.lane.b32.xlu1 %v11708_v26, %s11161_s29 }
0x1d69   :  { %5201 = vrot.lane.b32.xlu1 %v11710_v0, %s11164_s4 }
0x1dd2   :  { %v5204_v12 = vpop.permute.xlu0 %5203 }
0x1dd3   :  { %v4840_v29 = vpop.permute.xlu1 %4839 }
0x1dd4   :  { %9893 = vmatprep.mubr.msk.f32.mxu1 %vm314_vm1, %v4840_v29 }
0x1dd7   :  { %v4842_v8 = vpop.permute.xlu1 %4841 }
0x1dd8   :  { %9894 = vmatmul.mubr.msk.f32.vlgmr.msra.gmra.mrb[38].mxu1 %vm314_vm1, %v4842_v8 }
0x1dd9   :  { %10437 = vmatpush3.bf16.xpose.msk.msra.mxu1 %vm11246_vm2, %v10432_v28 }
0x1ddb   :  { %v5202_v7 = vpop.permute.xlu1 %5201 }
0x1ddc   :  { %9917 = vmatprep.mubr.msk.f32.mxu1 %vm314_vm1, %v5202_v7 }
0x1de0   :  { %9918 = vmatmul.mubr.msk.f32.vlgmr.msra.gmra.mrb[40].mxu1 %vm314_vm1, %v5204_v12 }
0x1e35   :  { %v9881_v31 = vpop.f32.mrb[36].mxu1 }
0x1e36   :  { %v4726_v40 = vadd.f32 %v9881_v31, %v11741_v15  ;;  %v4720_v35 = vpop.f32.mrb[37].mxu1 }
0x1e37   :  { %v4721_v36 = vadd.f32 %v4720_v35, %v11744_v5 }
0x1e38   :  { %v4733_v30 = vsel %vm4732_vm7, %v4726_v40, -inf }
0x1e39   :  { %4734 = vmax.xlane.f32.xlu0 %v4733_v30  ;;  %v4729_v39 = vsel %vm398_vm5, %v4721_v36, -inf }
0x1e3a   :  { %4730 = vmax.xlane.f32.xlu1 %v4729_v39 }
0x1eab   :  { %v9895_v42 = vpop.f32.mrb[38].mxu1 }
0x1eac   :  { %v4927_v38 = vadd.f32 %v9895_v42, %v11741_v15  ;;  %v4921_v41 = vpop.f32.mrb[39].mxu1 }
0x1ead   :  { %v4922_v44 = vadd.f32 %v4921_v41, %v11744_v5 }
0x1eae   :  { %v4933_v45 = vsel %vm4732_vm7, %v4927_v38, -inf }
0x1eaf   :  { %4934 = vmax.xlane.f32.xlu1 %v4933_v45  ;;  %v4930_v46 = vsel %vm398_vm5, %v4922_v44, -inf }
0x1eb0   :  { %4931 = vmax.xlane.f32.xlu0 %v4930_v46 }
0x1eb3   :  { %v9919_v47 = vpop.f32.mrb[40].mxu1 }
0x1eb4   :  { %v5283_v50 = vpop.f32.mrb[41].mxu1  ;;  %v5289_v22 = vadd.f32 %v9919_v47, %v11741_v15 }
0x1eb5   :  { %v5284_v21 = vadd.f32 %v5283_v50, %v11744_v5 }
0x1eb6   :  { %v5295_v3 = vsel %vm4732_vm7, %v5289_v22, -inf }
0x1eb7   :  { %v5292_v23 = vsel %vm398_vm5, %v5284_v21, -inf }
0x1ec6   :  { %v4735_v51 = vpop.xlane.xlu0 %4734 }
0x1ec7   :  { %v4737_v52 = vsub.f32 %v4726_v40, %v4735_v51  ;;  %v4731_v53 = vpop.xlane.xlu1 %4730 }
0x1ec8   :  { %v4736_v55 = vsub.f32 %v4721_v36, %v4731_v53 }
0x1ec9   :  { %v4740_v57 = vmul.f32 1.442695, %v4737_v52 }
0x1eca   :  { %v4738_v58 = vmul.f32 1.442695, %v4736_v55 }
0x1ecb   :  { %11014 = vpow2.f32 %v4740_v57 }
0x1ecc   :  { %11016 = vpow2.f32 %v4738_v58 }
0x1ed5   :  { %v11015_v59 = vpop.eup %11014 }
0x1ed6   :  { %v11017_v60 = vpop.eup %11016  ;;  %v4745_v61 = vsel %vm4732_vm7, %v11015_v59, 0.0 }
0x1ed7   :  { %4746 = vadd.xlane.f32.xlu1 %v4745_v61  ;;  %v4742_v63 = vsel %vm398_vm5, %v11017_v60, 0.0 }
0x1ed8   :  { %4743 = vadd.xlane.f32.xlu0 %v4742_v63 }
0x1f3c   :  { %v4935_v1 = vpop.xlane.xlu1 %4934 }
0x1f3d   :  { %v4937_v2 = vsub.f32 %v4927_v38, %v4935_v1  ;;  %v4932_v4 = vpop.xlane.xlu0 %4931 }
0x1f3e   :  { %v4936_v9 = vsub.f32 %v4922_v44, %v4932_v4 }
0x1f3f   :  { %v4940_v11 = vmul.f32 1.442695, %v4937_v2 }
0x1f40   :  { %v4938_v14 = vmul.f32 1.442695, %v4936_v9 }
0x1f41   :  { %11018 = vpow2.f32 %v4940_v11 }
0x1f42   :  { %11020 = vpow2.f32 %v4938_v14 }
0x1f4b   :  { %v11019_v19 = vpop.eup %11018 }
0x1f4c   :  { %v11021_v20 = vpop.eup %11020  ;;  %v4945_v62 = vsel %vm4732_vm7, %v11019_v19, 0.0 }
0x1f4d   :  { %4946 = vadd.xlane.f32.xlu1 %v4945_v62  ;;  %v4942_v13 = vsel %vm398_vm5, %v11021_v20, 0.0 }
0x1f4e   :  { %4943 = vadd.xlane.f32.xlu0 %v4942_v13 }
0x1f5e   :  { %10800 = vrot.lane.b32.xlu1 %v11696_v56, %s11163_s30 }
0x1f62   :  { %10805 = vrot.lane.b32.xlu1 %v11696_v56, %s11170_s10 }
0x1f64   :  { %10795 = vrot.lane.b32.xlu0 %v11696_v56, %s11162_s1  ;;  %v4747_v24 = vpop.xlane.xlu1 %4746 }
0x1f65   :  { %v4744_v54 = vpop.xlane.xlu0 %4743 }
0x1f66   :  { %11022 = vrcp.f32 %v4744_v54  ;;  %5486 = vrot.lane.b32.xlu1 %v11708_v26, %s11170_s10 }
0x1f67   :  { %11024 = vrcp.f32 %v4747_v24 }
0x1f68   :  { %5484 = vrot.lane.b32.xlu0 %v11710_v0, %s11170_s10 }
0x1f70   :  { %v11023_v10 = vpop.eup %11022 }
0x1f71   :  { %v4749_v6 = vmul.f32 %v11023_v10, %v11017_v60  ;;  %v11025_v12 = vpop.eup %11024  ;;  %v41_v60 = vld [vmem:[#allocation2 + $0x68] sm:$0xff] }
0x1f72   :  { %v4751_v39 = vmul.f32 %v11025_v12, %v11015_v59  ;;  %v42_v59 = vld [vmem:[#allocation2 + $0x70] sm:$0xff] }
0x1f73   :  { %9886 = vmatprep.mubr.msk.f32.mxu0 %vm398_vm5, %v4749_v6 }
0x1f87   :  { %5293 = vmax.xlane.f32.xlu0 %v5292_v23 }
0x1f8a   :  { %5296 = vmax.xlane.f32.xlu1 %v5295_v3  ;;  %v43_v3 = vld [vmem:[#allocation2 + $0x78] sm:$0xff] }
0x1f9b   :  { %10810 = vrot.lane.b32.xlu1 %v11696_v56, %s11165_s5 }
0x1f9f   :  { %10815 = vrot.lane.b32.xlu1 %v11696_v56, %s11168_s8 }
0x1fda   :  { %v4947_v25 = vpop.xlane.xlu1 %4946 }
0x1fdb   :  { %v4944_v48 = vpop.xlane.xlu0 %4943 }
0x1fdc   :  { %11026 = vrcp.f32 %v4944_v48 }
0x1fdd   :  { %11028 = vrcp.f32 %v4947_v25 }
0x1fde   :  { %v10801_v49 = vpop.permute.xlu1 %10800 }
0x1fdf   :  { %v10796_v26 = vpop.permute.xlu0 %10795  ;;  %v10803_v27 = vunpack.i.h.bf16 %v10801_v49  ;;  %v10802_v0 = vunpack.i.l.bf16 %v10801_v49 }
0x1fe0   :  { %v10798_v28 = vunpack.i.h.bf16 %v10796_v26  ;;  %v10797_v29 = vunpack.i.l.bf16 %v10796_v26 }
0x1fe1   :  { %v10428_v36 = vpack.c.bf16 %v10803_v27, %v10802_v0 }
0x1fe2   :  { %v10806_v8 = vpop.permute.xlu1 %10805  ;;  %v10418_v7 = vpack.c.bf16 %v10798_v28, %v10797_v29 }
0x1fe3   :  { %v10808_v31 = vunpack.i.h.bf16 %v10806_v8  ;;  %v10807_v40 = vunpack.i.l.bf16 %v10806_v8  ;;  %v5485_v35 = vpop.permute.xlu0 %5484 }
0x1fe4   :  { %10419 = vmatprep.subr.bf16.mxu0 %v10418_v7  ;;  %9936 = vmatprep.mubr.msk.f32.mxu1 %vm314_vm1, %v5485_v35 }
0x1fe5   :  { %v10442_v56 = vpack.c.bf16 %v10808_v31, %v10807_v40  ;;  %10421 = vmatpush3.bf16.msra.mxu0 %v10418_v7 }
0x1fe6   :  { %v11027_v30 = vpop.eup %11026  ;;  %10429 = vmatprep.subr.bf16.mxu0 %v10428_v36  ;;  %v5487_v44 = vpop.permute.xlu1 %5486 }
0x1fe7   :  { %v11029_v42 = vpop.eup %11028  ;;  %10444 = vmatprep.subr.msk.bf16.mxu1 %vm11246_vm2, %v10442_v56  ;;  %v4949_v38 = vmul.f32 %v11027_v30, %v11021_v20 }
0x1fe8   :  { %9887 = vmatmul.mubr.msk.f32.vlgmr.msra.gmra.mrb[36].mxu0 %vm398_vm5, %v4751_v39  ;;  %10447 = vmatpush3.bf16.xpose.msk.msra.mxu1 %vm11246_vm2, %v10442_v56  ;;  %v4951_v41 = vmul.f32 %v11029_v42, %v11019_v19  ;;  %v44_v39 = vld [vmem:[#allocation2 + $0x80] sm:$0xff] }
0x1fe9   :  { %10431 = vmatpush3.bf16.msra.mxu0 %v10428_v36  ;;  %9900 = vmatprep.mubr.msk.f32.mxu0 %vm398_vm5, %v4949_v38 }
0x1fea   :  { %9903 = vmatprep.subr.mxu0 %v42_v59 }
0x1fec   :  { %9901 = vmatmul.mubr.msk.f32.vlgmr.msra.gmra.mrb[38].mxu0 %vm398_vm5, %v4951_v41 }
0x1fed   :  { %9904 = vmatpush3.msra.mxu0 %v42_v59 }
0x1fee   :  { %9908 = vmatprep.subr.mxu0 %v41_v60 }
0x1fef   :  { %9937 = vmatmul.mubr.msk.f32.vlgmr.msra.gmra.mrb[42].mxu1 %vm314_vm1, %v5487_v44 }
0x2014   :  { %v5294_v45 = vpop.xlane.xlu0 %5293 }
0x2015   :  { %v5298_v46 = vsub.f32 %v5284_v21, %v5294_v45 }
0x2017   :  { %v5300_v47 = vmul.f32 1.442695, %v5298_v46  ;;  %v5297_v50 = vpop.xlane.xlu1 %5296 }
0x2018   :  { %v5299_v51 = vsub.f32 %v5289_v22, %v5297_v50 }
0x2019   :  { %11030 = vpow2.f32 %v5300_v47 }
0x201a   :  { %v5302_v52 = vmul.f32 1.442695, %v5299_v51  ;;  %v9052_v51 = vld [vmem:[#allocation2 + $0x10] ss:$0 sm:$0xff] }
0x201b   :  { %v10811_v63 = vpop.permute.xlu1 %10810 }
0x201c   :  { %11032 = vpow2.f32 %v5302_v52  ;;  %v10813_v9 = vunpack.i.h.bf16 %v10811_v63  ;;  %v10812_v11 = vunpack.i.l.bf16 %v10811_v63 }
0x201e   :  { %v10438_v20 = vpack.c.bf16 %v10813_v9, %v10812_v11 }
0x201f   :  { %v10816_v22 = vpop.permute.xlu1 %10815 }
0x2020   :  { %v10818_v24 = vunpack.i.h.bf16 %v10816_v22  ;;  %v10817_v25 = vunpack.i.l.bf16 %v10816_v22  ;;  %v52_v22 = vld [vmem:[#allocation2 + $0xc0] sm:$0xff] }
0x2022   :  { %v10448_v27 = vpack.c.bf16 %v10818_v24, %v10817_v25  ;;  %v54_v24 = vld [vmem:[#allocation2 + $0xd0] sm:$0xff] }
0x2023   :  { %v11031_v53 = vpop.eup %11030 }
0x2024   :  { %v5304_v55 = vsel %vm398_vm5, %v11031_v53, 0.0 }
0x2025   :  { %5305 = vadd.xlane.f32.xlu0 %v5304_v55 }
0x2026   :  { %v11033_v57 = vpop.eup %11032 }
0x2027   :  { %v5307_v58 = vsel %vm4732_vm7, %v11033_v57, 0.0 }
0x2029   :  { %5308 = vadd.xlane.f32.xlu0 %v5307_v58 }
0x20b2   :  { %v5306_v61 = vpop.xlane.xlu0 %5305 }
0x20b3   :  { %11034 = vrcp.f32 %v5306_v61 }
0x20b6   :  { %v5309_v2 = vpop.xlane.xlu0 %5308 }
0x20b7   :  { %11036 = vrcp.f32 %v5309_v2 }
0x20bb   :  { %v9888_v1 = vpop.f32.mrb[36].mxu0 }
0x20bc   :  { %v4830_v4 = vpop.f32.mrb[37].mxu0 }
0x20bd   :  { %v11035_v21 = vpop.eup %11034 }
0x20be   :  { %v5311_v49 = vmul.f32 %v11035_v21, %v11031_v53  ;;  %v51_v21 = vld [vmem:[#allocation2 + $0xb8] sm:$0xff] }
0x20bf   :  { %v9902_v14 = vpop.f32.mrb[38].mxu0 }
0x20c0   :  { %v5030_v19 = vpop.f32.mrb[39].mxu0 }
0x20c1   :  { %9905 = vmatprep.mubr.msk.f32.mxu0 %vm314_vm1, %v5030_v19  ;;  %v11037_v23 = vpop.eup %11036 }
0x20c2   :  { %9906 = vmatmul.mubr.msk.f32.vlgmr.msra.gmra.mrb[40].mxu0 %vm314_vm1, %v9902_v14  ;;  %v9938_v62 = vpop.f32.mrb[42].mxu1  ;;  %v5313_v26 = vmul.f32 %v11037_v23, %v11033_v57  ;;  %v53_v23 = vld [vmem:[#allocation2 + $0xc8] sm:$0xff] }
0x20c3   :  { %9909 = vmatpush3.msra.mxu0 %v41_v60  ;;  %9910 = vmatprep.mubr.msk.f32.mxu0 %vm314_vm1, %v4830_v4  ;;  %v5566_v13 = vpop.f32.mrb[43].mxu1  ;;  %v5572_v10 = vadd.f32 %v9938_v62, %v11741_v15  ;;  %v47_v62 = vld [vmem:[#allocation2 + $0x98] sm:$0xff]  ;;  %v10464_v25 = vpack.c.bf16 %v54_v24, %v53_v23 }
0x20c4   :  { %10439 = vmatprep.subr.bf16.mxu0 %v10438_v20  ;;  %v5567_v54 = vadd.f32 %v5566_v13, %v11744_v5  ;;  %v115_v23 = vld [vmem:[#allocation2 + $0x2b8] sm:$0xff] }
0x20c5   :  { %v5578_v48 = vsel %vm4732_vm7, %v5572_v10, -inf }
0x20c6   :  { %v5575_v6 = vsel %vm398_vm5, %v5567_v54, -inf }
0x20c7   :  { %5576 = vmax.xlane.f32.xlu0 %v5575_v6 }
0x20ca   :  { %9911 = vmatmul.mubr.msk.f32.vlgmr.msra.gmra.mrb[40].mxu0 %vm314_vm1, %v9888_v1 }
0x20cb   :  { %10441 = vmatpush3.bf16.msra.mxu0 %v10438_v20  ;;  %5579 = vmax.xlane.f32.xlu0 %v5578_v48  ;;  %v55_v48 = vld [vmem:[#allocation2 + $0xd8] sm:$0xff] }
0x20cc   :  { %9924 = vmatprep.mubr.msk.f32.mxu0 %vm398_vm5, %v5311_v49  ;;  %9927 = vmatprep.subr.mxu0 %v43_v3  ;;  %v56_v49 = vld [vmem:[#allocation2 + $0xe0] sm:$0xff] }
0x20ce   :  { %9925 = vmatmul.mubr.msk.f32.vlgmr.msra.gmra.mrb[42].mxu0 %vm398_vm5, %v5313_v26  ;;  %v10468_v26 = vpack.c.bf16 %v56_v49, %v55_v48 }
0x20cf   :  { %9928 = vmatpush3.msra.mxu0 %v43_v3  ;;  %v10460_v3 = vpack.c.bf16 %v52_v22, %v51_v21  ;;  %v114_v22 = vld [vmem:[#allocation2 + $0x2b0] sm:$0xff] }
0x20d0   :  { %10449 = vmatprep.subr.bf16.mxu0 %v10448_v27 }
0x2154   :  { %v5577_v0 = vpop.xlane.xlu0 %5576 }
0x2155   :  { %v5581_v28 = vsub.f32 %v5567_v54, %v5577_v0  ;;  %v48_v54 = vld [vmem:[#allocation2 + $0xa0] sm:$0xff] }
0x2157   :  { %v5583_v29 = vmul.f32 1.442695, %v5581_v28 }
0x2158   :  { %v5580_v8 = vpop.xlane.xlu0 %5579 }
0x2159   :  { %11038 = vpow2.f32 %v5583_v29  ;;  %v5582_v7 = vsub.f32 %v5572_v10, %v5580_v8  ;;  %v49_v10 = vld [vmem:[#allocation2 + $0xa8] sm:$0xff] }
0x215a   :  { %v10456_v6 = vpack.c.bf16 %v49_v10, %v48_v54  ;;  %v112_v10 = vld [vmem:[#allocation2 + $0x2a0] sm:$0xff] }
0x215b   :  { %v5585_v12 = vmul.f32 1.442695, %v5582_v7 }
0x215d   :  { %11040 = vpow2.f32 %v5585_v12 }
0x2163   :  { %v11039_v31 = vpop.eup %11038 }
0x2164   :  { %v5587_v40 = vsel %vm398_vm5, %v11039_v31, 0.0 }
0x2165   :  { %5588 = vadd.xlane.f32.xlu0 %v5587_v40 }
0x2167   :  { %v11041_v35 = vpop.eup %11040 }
0x2168   :  { %v5590_v36 = vsel %vm4732_vm7, %v11041_v35, 0.0 }
0x2169   :  { %5591 = vadd.xlane.f32.xlu0 %v5590_v36 }
0x21a1   :  { %v9926_v56 = vpop.f32.mrb[42].mxu0 }
0x21a2   :  { %v5392_v30 = vpop.f32.mrb[43].mxu0 }
0x21a3   :  { %9929 = vmatprep.mubr.msk.f32.mxu0 %vm314_vm1, %v5392_v30 }
0x21a4   :  { %9930 = vmatmul.mubr.msk.f32.vlgmr.msra.gmra.mrb[40].mxu0 %vm314_vm1, %v9926_v56 }
0x21a5   :  { %10451 = vmatpush3.bf16.msra.mxu0 %v10448_v27 }
0x21a6   :  { %9946 = vmatprep.subr.mxu0 %v44_v39 }
0x21f2   :  { %v5589_v42 = vpop.xlane.xlu0 %5588 }
0x21f3   :  { %11042 = vrcp.f32 %v5589_v42 }
0x21f6   :  { %v5592_v38 = vpop.xlane.xlu0 %5591 }
0x21f7   :  { %11044 = vrcp.f32 %v5592_v38 }
0x21fd   :  { %v11043_v41 = vpop.eup %11042 }
0x21fe   :  { %v5594_v44 = vmul.f32 %v11043_v41, %v11039_v31  ;;  %v9053_v31 = vld [vmem:[#allocation2 + $0x110] ss:$0 sm:$0xff]  ;;  %v57_v41 = vld [vmem:[#allocation2 + $0xe8] sm:$0xff] }
0x2200   :  { %9943 = vmatprep.mubr.msk.f32.mxu0 %vm398_vm5, %v5594_v44  ;;  %v58_v44 = vld [vmem:[#allocation2 + $0xf0] sm:$0xff] }
0x2201   :  { %v11045_v45 = vpop.eup %11044 }
0x2202   :  { %v5596_v46 = vmul.f32 %v11045_v45, %v11041_v35  ;;  %v9054_v35 = vld [vmem:[#allocation2 + $0x108] ss:$0 sm:$0xff]  ;;  %v10472_v45 = vpack.c.bf16 %v58_v44, %v57_v41 }
0x2204   :  { %9944 = vmatmul.mubr.msk.f32.vlgmr.msra.gmra.mrb[44].mxu0 %vm398_vm5, %v5596_v46  ;;  %v9055_v46 = vld [vmem:[#allocation2 + $0x88] ss:$0 sm:$0xff] }
0x2205   :  { %9947 = vmatpush3.msra.mxu0 %v44_v39 }
0x2206   :  { %10461 = vmatprep.subr.bf16.mxu0 %v10460_v3 }
0x22d7   :  { %v9945_v47 = vpop.f32.mrb[44].mxu0 }
0x22d8   :  { %v5675_v50 = vpop.f32.mrb[45].mxu0 }
0x22d9   :  { %9948 = vmatprep.mubr.msk.f32.mxu0 %vm314_vm1, %v5675_v50 }
0x22da   :  { %9949 = vmatmul.mubr.msk.f32.vlgmr.msra.gmra.mrb[40].mxu0 %vm314_vm1, %v9945_v47 }
0x22db   :  { %10463 = vmatpush3.bf16.msra.mxu0 %v10460_v3  ;;  %v10480_v3 = vpack.c.bf16 %v115_v23, %v114_v22 }
0x22dc   :  { %10465 = vmatprep.subr.bf16.mxu0 %v10464_v25 }
0x22df   :  { %10467 = vmatpush3.bf16.msra.mxu0 %v10464_v25 }
0x22e0   :  { %10469 = vmatprep.subr.bf16.mxu0 %v10468_v26 }
0x22e3   :  { %10471 = vmatpush3.bf16.msra.mxu0 %v10468_v26 }
0x22e4   :  { %10473 = vmatprep.subr.bf16.mxu0 %v10472_v45 }
0x22e7   :  { %10475 = vmatpush3.bf16.msra.mxu0 %v10472_v45 }
0x23ad   :  { %v9950_v52 = vpop.f32.mrb[40].mxu0 }
0x23ae   :  { %v5772_v53 = vadd.f32 %v9950_v52, %v9052_v51  ;;  %v5756_v55 = vpop.f32.mrb[41].mxu0 }
0x23af   :  { %v5771_v57 = vadd.f32 %v9052_v51, %v5756_v55 }
0x23b0   :  { %v5774_v58 = vadd.f32 %v5772_v53, %v11690_v18 }
0x23b1   :  { %v5773_v59 = vadd.f32 %v5771_v57, %v11688_v16  ;;  %v46_v16 = vld [vmem:[#allocation2 + $0x90] sm:$0xff] }
0x23b2   :  { %v5778_v60 = vsel %vm4436_vm15, %v5774_v58, 0.0  ;;  %v10452_v13 = vpack.c.bf16 %v47_v62, %v46_v16  ;;  %v9058_v57 = vld [vmem:[#allocation2 + $0xb0] ss:$0 sm:$0xff] }
0x23b3   :  { %5779 = vadd.xlane.f32.xlu1 %v5778_v60  ;;  %v5775_v61 = vsel %vm226_vm0, %v5773_v59, 0.0 }
0x23b4   :  { %5776 = vadd.xlane.f32.xlu0 %v5775_v61  ;;  %10453 = vmatprep.subr.bf16.mxu1 %v10452_v13 }
0x23b5   :  { %10455 = vmatpush3.bf16.msra.mxu1 %v10452_v13 }
0x23b6   :  { %10457 = vmatprep.subr.bf16.mxu1 %v10456_v6 }
0x23b9   :  { %10459 = vmatpush3.bf16.msra.mxu1 %v10456_v6  ;;  %v113_v6 = vld [vmem:[#allocation2 + $0x2a8] sm:$0xff] }
0x23ba   :  { %v10476_v21 = vpack.c.bf16 %v113_v6, %v112_v10 }
0x23bc   :  { %10477 = vmatprep.subr.bf16.mxu1 %v10476_v21 }
0x2440   :  { %v5780_v63 = vpop.xlane.xlu1 %5779 }
0x2441   :  { %v5782_v1 = vmul.f32 0.03125, %v5780_v63  ;;  %v5777_v2 = vpop.xlane.xlu0 %5776 }
0x2442   :  { %v5781_v4 = vmul.f32 0.03125, %v5777_v2 }
0x2443   :  { %v5784_v9 = vsub.f32 %v5774_v58, %v5782_v1 }
0x2444   :  { %v5783_v11 = vsub.f32 %v5773_v59, %v5781_v4 }
0x2445   :  { %v5786_v20 = vmul.f32 %v5784_v9, %v5784_v9 }
0x2446   :  { %v5785_v14 = vmul.f32 %v5783_v11, %v5783_v11 }
0x2447   :  { %v5790_v18 = vsel %vm4436_vm15, %v5786_v20, 0.0 }
0x2448   :  { %v5787_v19 = vsel %vm226_vm0, %v5785_v14, 0.0 }
0x2449   :  { %5788 = vadd.xlane.f32.xlu0 %v5787_v19 }
0x244d   :  { %5791 = vadd.xlane.f32.xlu0 %v5790_v18 }
0x24d6   :  { %v5789_v27 = vpop.xlane.xlu0 %5788 }
0x24d7   :  { %v5793_v0 = vmul.f32 0.03125, %v5789_v27 }
0x24d9   :  { %v5795_v28 = vadd.f32 1e-05, %v5793_v0 }
0x24da   :  { %v5792_v29 = vpop.xlane.xlu0 %5791 }
0x24db   :  { %11046 = vrsqrt.f32 %v5795_v28  ;;  %v5794_v8 = vmul.f32 0.03125, %v5792_v29  ;;  %v9061_v28 = vld [vmem:[#allocation2 + $0x120] ss:$0 sm:$0xff] }
0x24dd   :  { %v5796_v7 = vadd.f32 1e-05, %v5794_v8  ;;  %v9062_v8 = vld [vmem:[#allocation2 + $0x118] ss:$0 sm:$0xff] }
0x24df   :  { %11048 = vrsqrt.f32 %v5796_v7 }
0x24e5   :  { %v11047_v12 = vpop.eup %11046 }
0x24e6   :  { %v5799_v40 = vmul.f32 %v11047_v12, %v5783_v11 }
0x24e8   :  { %v5805_v36 = vmul.f32 %v9053_v31, %v5799_v40 }
0x24e9   :  { %v11049_v56 = vpop.eup %11048 }
0x24ea   :  { %v5800_v30 = vmul.f32 %v11049_v56, %v5784_v9  ;;  %v5811_v39 = vadd.f32 %v9054_v35, %v5805_v36  ;;  %v9063_v56 = vld [vmem:[#allocation2 + $0x298] ss:$0 sm:$0xff] }
0x24ec   :  { %v5806_v42 = vmul.f32 %v9053_v31, %v5800_v30  ;;  %9959 = vmatprep.mubr.msk.f32.mxu1 %vm226_vm0, %v5811_v39 }
0x24ee   :  { %v5812_v38 = vadd.f32 %v9054_v35, %v5806_v42 }
0x24f0   :  { %9960 = vmatmul.mubr.msk.f32.vlgmr.msra.gmra.mrb[44].mxu1 %vm226_vm0, %v5812_v38 }
0x24f1   :  { %10479 = vmatpush3.bf16.msra.mxu1 %v10476_v21 }
0x24f2   :  { %10481 = vmatprep.subr.bf16.mxu1 %v10480_v3 }
0x24f5   :  { %10483 = vmatpush3.bf16.msra.mxu1 %v10480_v3 }
0x25c3   :  { %v9961_v47 = vpop.f32.mrb[44].mxu1 }
0x25c4   :  { %v5895_v50 = vadd.f32 %v9961_v47, %v9055_v46  ;;  %v5889_v51 = vpop.f32.mrb[45].mxu1 }
0x25c5   :  { %v5890_v52 = vadd.f32 %v9055_v46, %v5889_v51 }
0x25c6   :  { %v5899_v55 = vmax.f32 %v5895_v50, 0.0 }
0x25c7   :  { %v5898_v53 = vmax.f32 %v5890_v52, 0.0 }
0x25c9   :  { %9978 = vmatprep.mubr.msk.f32.mxu0 %vm1574_vm6, %v5898_v53 }
0x25ca   :  { %9979 = vmatmul.mubr.msk.f32.vlgmr.msra.gmra.mrb[46].mxu0 %vm1574_vm6, %v5899_v55 }
0x269d   :  { %v9980_v58 = vpop.f32.mrb[46].mxu0 }
0x269e   :  { %v5976_v59 = vpop.f32.mrb[47].mxu0  ;;  %v5982_v60 = vadd.f32 %v9980_v58, %v9058_v57 }
0x269f   :  { %v5977_v61 = vadd.f32 %v9058_v57, %v5976_v59 }
0x26a0   :  { %v5986_v1 = vadd.f32 %v5982_v60, %v5812_v38 }
0x26a1   :  { %v5985_v63 = vadd.f32 %v5977_v61, %v5811_v39 }
0x26a2   :  { %v5990_v4 = vsel %vm4436_vm15, %v5986_v1, 0.0 }
0x26a3   :  { %v5987_v2 = vsel %vm226_vm0, %v5985_v63, 0.0 }
0x26a4   :  { %5988 = vadd.xlane.f32.xlu0 %v5987_v2 }
0x26a8   :  { %5991 = vadd.xlane.f32.xlu0 %v5990_v4 }
0x2731   :  { %v5989_v9 = vpop.xlane.xlu0 %5988 }
0x2732   :  { %v5993_v11 = vmul.f32 0.03125, %v5989_v9 }
0x2734   :  { %v5995_v14 = vsub.f32 %v5985_v63, %v5993_v11 }
0x2735   :  { %v5992_v19 = vpop.xlane.xlu0 %5991 }
0x2736   :  { %v5994_v20 = vmul.f32 0.03125, %v5992_v19  ;;  %v5997_v18 = vmul.f32 %v5995_v14, %v5995_v14 }
0x2738   :  { %v5996_v16 = vsub.f32 %v5986_v1, %v5994_v20  ;;  %v5999_v62 = vsel %vm226_vm0, %v5997_v18, 0.0 }
0x2739   :  { %6000 = vadd.xlane.f32.xlu0 %v5999_v62 }
0x273a   :  { %v5998_v13 = vmul.f32 %v5996_v16, %v5996_v16 }
0x273c   :  { %v6002_v54 = vsel %vm4436_vm15, %v5998_v13, 0.0 }
0x273d   :  { %6003 = vadd.xlane.f32.xlu0 %v6002_v54 }
0x27c6   :  { %v6001_v24 = vpop.xlane.xlu0 %6000 }
0x27c7   :  { %v6005_v25 = vmul.f32 0.03125, %v6001_v24 }
0x27c9   :  { %v6007_v48 = vadd.f32 1e-05, %v6005_v25 }
0x27ca   :  { %v6004_v49 = vpop.xlane.xlu0 %6003 }
0x27cb   :  { %11050 = vrsqrt.f32 %v6007_v48  ;;  %v6006_v26 = vmul.f32 0.03125, %v6004_v49 }
0x27cd   :  { %v6008_v27 = vadd.f32 1e-05, %v6006_v26 }
0x27cf   :  { %11052 = vrsqrt.f32 %v6008_v27 }
0x27d5   :  { %v11051_v0 = vpop.eup %11050 }
0x27d6   :  { %v6011_v29 = vmul.f32 %v11051_v0, %v5995_v14 }
0x27d8   :  { %v6017_v7 = vmul.f32 %v9061_v28, %v6011_v29 }
0x27d9   :  { %v11053_v12 = vpop.eup %11052 }
0x27da   :  { %v6012_v31 = vmul.f32 %v11053_v12, %v5996_v16  ;;  %v11820_v40 = vadd.f32 %v9062_v8, %v6017_v7 }
0x27dc   :  { %v6018_v35 = vmul.f32 %v9061_v28, %v6012_v31  ;;  %9989 = vmatprep.mubr.msk.f32.mxu1 %vm226_vm0, %v11820_v40 }
0x27de   :  { %v11824_v36 = vadd.f32 %v9062_v8, %v6018_v35 }
0x27e0   :  { %9990 = vmatmul.mubr.msk.f32.vlgmr.msra.gmra.mrb[46].mxu1 %vm226_vm0, %v11824_v36 }
0x28b3   :  { %v9991_v30 = vpop.f32.mrb[46].mxu1 }
0x28b4   :  { %v11828_v39 = vadd.f32 %v9991_v30, %v9063_v56  ;;  %v6101_v42 = vpop.f32.mrb[47].mxu1 }
0x28b5   :  { %v11830_v38 = vadd.f32 %v9063_v56, %v6101_v42 }
0x28b7   :  { %9996 = vmatprep.mubr.msk.f32.mxu1 %vm314_vm1, %v11830_v38  ;;  %v11836_v41 = vpack.i.bf16 %v11828_v39, %v11830_v38 }
0x28b9   :  { %10825 = vrot.lane.b32.xlu1 %v11836_v41, %s11163_s30  ;;  %10820 = vrot.lane.b32.xlu0 %v11836_v41, %s11162_s1 }
0x28bd   :  { %10830 = vrot.lane.b32.xlu1 %v11836_v41, %s11165_s5  ;;  %6309 = vrot.lane.b32.xlu0 %v11830_v38, %s11161_s29 }
0x28c1   :  { %6674 = vrot.lane.b32.xlu1 %v11828_v39, %s11164_s4  ;;  %6311 = vrot.lane.b32.xlu0 %v11828_v39, %s11161_s29 }
0x28c5   :  { %6672 = vrot.lane.b32.xlu0 %v11830_v38, %s11164_s4 }
0x292b   :  { %v10826_v44 = vpop.permute.xlu1 %10825  ;;  %v10821_v45 = vpop.permute.xlu0 %10820 }
0x292c   :  { %v10828_v46 = vunpack.i.h.bf16 %v10826_v44  ;;  %v10827_v47 = vunpack.i.l.bf16 %v10826_v44  ;;  %v10823_v50 = vunpack.i.h.bf16 %v10821_v45  ;;  %v10822_v51 = vunpack.i.l.bf16 %v10821_v45 }
0x292e   :  { %v10484_v52 = vpack.c.bf16 %v10823_v50, %v10822_v51  ;;  %v10496_v53 = vpack.c.bf16 %v10828_v46, %v10827_v47 }
0x292f   :  { %v10831_v55 = vpop.permute.xlu1 %10830  ;;  %v6310_v59 = vpop.permute.xlu0 %6309 }
0x2930   :  { %10486 = vmatprep.subr.msk.bf16.mxu1 %vm11246_vm2, %v10484_v52  ;;  %v10833_v57 = vunpack.i.h.bf16 %v10831_v55  ;;  %v10832_v58 = vunpack.i.l.bf16 %v10831_v55 }
0x2931   :  { %10489 = vmatpush3.bf16.xpose.msk.msra.mxu1 %vm11246_vm2, %v10484_v52 }
0x2932   :  { %10498 = vmatprep.subr.msk.bf16.mxu1 %vm11246_vm2, %v10496_v53  ;;  %v10508_v60 = vpack.c.bf16 %v10833_v57, %v10832_v58 }
0x2933   :  { %v6312_v61 = vpop.permute.xlu0 %6311  ;;  %v6675_v1 = vpop.permute.xlu1 %6674 }
0x2937   :  { %v6673_v63 = vpop.permute.xlu0 %6672 }
0x2938   :  { %9997 = vmatmul.mubr.msk.f32.vlgmr.msra.gmra.mrb[48].mxu1 %vm314_vm1, %v11828_v39 }
0x2939   :  { %10501 = vmatpush3.bf16.xpose.msk.msra.mxu1 %vm11246_vm2, %v10496_v53  ;;  %10010 = vmatprep.mubr.msk.f32.mxu1 %vm314_vm1, %v6310_v59 }
0x293a   :  { %10510 = vmatprep.subr.msk.bf16.mxu1 %vm11246_vm2, %v10508_v60 }
0x2940   :  { %10011 = vmatmul.mubr.msk.f32.vlgmr.msra.gmra.mrb[50].mxu1 %vm314_vm1, %v6312_v61 }
0x2941   :  { %10513 = vmatpush3.bf16.xpose.msk.msra.mxu1 %vm11246_vm2, %v10508_v60  ;;  %10034 = vmatprep.mubr.msk.f32.mxu1 %vm314_vm1, %v6673_v63 }
0x2948   :  { %10035 = vmatmul.mubr.msk.f32.vlgmr.msra.gmra.mrb[52].mxu1 %vm314_vm1, %v6675_v1 }
0x2a0b   :  { %v9998_v2 = vpop.f32.mrb[48].mxu1 }
0x2a0c   :  { %v6196_v4 = vadd.f32 %v9998_v2, %v11576_v33  ;;  %v6190_v9 = vpop.f32.mrb[49].mxu1 }
0x2a0d   :  { %v6191_v11 = vadd.f32 %v6190_v9, %v11579_v34 }
0x2a0e   :  { %v6202_v14 = vsel %vm3385_vm10, %v6196_v4, -inf }
0x2a0f   :  { %6203 = vmax.xlane.f32.xlu1 %v6202_v14  ;;  %v6199_v19 = vsel %vm3381_vm11, %v6191_v11, -inf }
0x2a10   :  { %6200 = vmax.xlane.f32.xlu0 %v6199_v19 }
0x2a13   :  { %v10012_v20 = vpop.f32.mrb[50].mxu1 }
0x2a14   :  { %v6391_v18 = vpop.f32.mrb[51].mxu1  ;;  %v6397_v62 = vadd.f32 %v10012_v20, %v11576_v33 }
0x2a15   :  { %v6392_v16 = vadd.f32 %v6391_v18, %v11579_v34 }
0x2a16   :  { %v6403_v10 = vsel %vm3385_vm10, %v6397_v62, -inf }
0x2a17   :  { %v6400_v13 = vsel %vm3381_vm11, %v6392_v16, -inf }
0x2a18   :  { %6401 = vmax.xlane.f32.xlu0 %v6400_v13 }
0x2a1b   :  { %v10036_v54 = vpop.f32.mrb[52].mxu1 }
0x2a1c   :  { %v6754_v6 = vpop.f32.mrb[53].mxu1  ;;  %6404 = vmax.xlane.f32.xlu0 %v6403_v10  ;;  %v6760_v42 = vadd.f32 %v10036_v54, %v11576_v33 }
0x2a1d   :  { %v6755_v44 = vadd.f32 %v6754_v6, %v11579_v34 }
0x2a1e   :  { %v6766_v46 = vsel %vm3385_vm10, %v6760_v42, -inf }
0x2a1f   :  { %v6763_v45 = vsel %vm3381_vm11, %v6755_v44, -inf }
0x2a9c   :  { %v6204_v21 = vpop.xlane.xlu1 %6203 }
0x2a9d   :  { %v6206_v22 = vsub.f32 %v6196_v4, %v6204_v21  ;;  %v6201_v23 = vpop.xlane.xlu0 %6200 }
0x2a9e   :  { %v6205_v3 = vsub.f32 %v6191_v11, %v6201_v23 }
0x2a9f   :  { %v6209_v24 = vmul.f32 1.442695, %v6206_v22 }
0x2aa0   :  { %v6207_v25 = vmul.f32 1.442695, %v6205_v3 }
0x2aa1   :  { %11054 = vpow2.f32 %v6209_v24 }
0x2aa2   :  { %11056 = vpow2.f32 %v6207_v25 }
0x2aa5   :  { %v6402_v48 = vpop.xlane.xlu0 %6401 }
0x2aa6   :  { %v6406_v49 = vsub.f32 %v6392_v16, %v6402_v48 }
0x2aa8   :  { %v6408_v26 = vmul.f32 1.442695, %v6406_v49  ;;  %v117_v49 = vld [vmem:[#allocation2 + $0x2c8] sm:$0xff] }
0x2aa9   :  { %v6405_v27 = vpop.xlane.xlu0 %6404 }
0x2aaa   :  { %11058 = vpow2.f32 %v6408_v26  ;;  %v6407_v0 = vsub.f32 %v6397_v62, %v6405_v27  ;;  %v116_v26 = vld [vmem:[#allocation2 + $0x2c0] sm:$0xff] }
0x2aab   :  { %v11055_v28 = vpop.eup %11054 }
0x2aac   :  { %v11057_v29 = vpop.eup %11056  ;;  %v6410_v8 = vmul.f32 1.442695, %v6407_v0  ;;  %v6214_v7 = vsel %vm3385_vm10, %v11055_v28, 0.0 }
0x2aad   :  { %6215 = vadd.xlane.f32.xlu0 %v6214_v7  ;;  %v6211_v12 = vsel %vm3381_vm11, %v11057_v29, 0.0 }
0x2aae   :  { %11060 = vpow2.f32 %v6410_v8  ;;  %6212 = vadd.xlane.f32.xlu1 %v6211_v12 }
0x2ab4   :  { %v11059_v31 = vpop.eup %11058 }
0x2ab5   :  { %v6412_v35 = vsel %vm3381_vm11, %v11059_v31, 0.0 }
0x2ab6   :  { %6413 = vadd.xlane.f32.xlu1 %v6412_v35 }
0x2ab8   :  { %v11061_v56 = vpop.eup %11060 }
0x2ab9   :  { %v6415_v30 = vsel %vm3385_vm10, %v11061_v56, 0.0 }
0x2aba   :  { %6416 = vadd.xlane.f32.xlu0 %v6415_v30 }
0x2ac7   :  { %10835 = vrot.lane.b32.xlu1 %v11836_v41, %s11169_s9 }
0x2acb   :  { %10845 = vrot.lane.b32.xlu1 %v11836_v41, %s11168_s8 }
0x2acf   :  { %6956 = vrot.lane.b32.xlu1 %v11830_v38, %s11170_s10 }
0x2ad0   :  { %10840 = vrot.lane.b32.xlu0 %v11836_v41, %s11167_s2 }
0x2ad4   :  { %6958 = vrot.lane.b32.xlu0 %v11828_v39, %s11170_s10 }
0x2af3   :  { %6764 = vmax.xlane.f32.xlu1 %v6763_v45  ;;  %6767 = vmax.xlane.f32.xlu0 %v6766_v46 }
0x2b3a   :  { %v6216_v50 = vpop.xlane.xlu0 %6215 }
0x2b3b   :  { %v6213_v47 = vpop.xlane.xlu1 %6212 }
0x2b3c   :  { %11062 = vrcp.f32 %v6213_v47 }
0x2b3d   :  { %11064 = vrcp.f32 %v6216_v50 }
0x2b43   :  { %v6414_v38 = vpop.xlane.xlu1 %6413 }
0x2b44   :  { %11066 = vrcp.f32 %v6414_v38 }
0x2b46   :  { %v11063_v51 = vpop.eup %11062 }
0x2b47   :  { %v10836_v52 = vpop.permute.xlu1 %10835  ;;  %v6417_v53 = vpop.xlane.xlu0 %6416  ;;  %v6218_v39 = vmul.f32 %v11063_v51, %v11057_v29 }
0x2b48   :  { %v10838_v55 = vunpack.i.h.bf16 %v10836_v52  ;;  %v10837_v57 = vunpack.i.l.bf16 %v10836_v52  ;;  %11068 = vrcp.f32 %v6417_v53  ;;  %v11065_v59 = vpop.eup %11064 }
0x2b49   :  { %10003 = vmatprep.mubr.msk.f32.mxu0 %vm3381_vm11, %v6218_v39  ;;  %v6220_v11 = vmul.f32 %v11065_v59, %v11055_v28 }
0x2b4a   :  { %v10490_v58 = vpack.c.bf16 %v10838_v55, %v10837_v57 }
0x2b4b   :  { %v10846_v60 = vpop.permute.xlu1 %10845  ;;  %v10841_v61 = vpop.permute.xlu0 %10840 }
0x2b4c   :  { %v10848_v63 = vunpack.i.h.bf16 %v10846_v60  ;;  %v10847_v1 = vunpack.i.l.bf16 %v10846_v60  ;;  %v10843_v2 = vunpack.i.h.bf16 %v10841_v61  ;;  %v10842_v4 = vunpack.i.l.bf16 %v10841_v61  ;;  %10492 = vmatprep.subr.msk.bf16.mxu0 %vm11608_vm14, %v10490_v58 }
0x2b4d   :  { %10495 = vmatpush3.bf16.msk.msra.mxu0 %vm11608_vm14, %v10490_v58 }
0x2b4e   :  { %v11067_v9 = vpop.eup %11066  ;;  %v10520_v14 = vpack.c.bf16 %v10848_v63, %v10847_v1  ;;  %v10502_v19 = vpack.c.bf16 %v10843_v2, %v10842_v4 }
0x2b4f   :  { %v6957_v20 = vpop.permute.xlu1 %6956  ;;  %v6419_v18 = vmul.f32 %v11067_v9, %v11059_v31  ;;  %v6959_v13 = vpop.permute.xlu0 %6958 }
0x2b50   :  { %10004 = vmatmul.mubr.msk.f32.vlgmr.msra.gmra.mrb[48].mxu0 %vm3381_vm11, %v6220_v11  ;;  %10504 = vmatprep.subr.msk.bf16.mxu0 %vm11608_vm14, %v10502_v19 }
0x2b51   :  { %10522 = vmatprep.subr.msk.bf16.mxu1 %vm11246_vm2, %v10520_v14  ;;  %10053 = vmatprep.mubr.msk.f32.mxu1 %vm314_vm1, %v6957_v20 }
0x2b52   :  { %v11069_v16 = vpop.eup %11068  ;;  %10507 = vmatpush3.bf16.msk.msra.mxu0 %vm11608_vm14, %v10502_v19  ;;  %10017 = vmatprep.mubr.msk.f32.mxu0 %vm3381_vm11, %v6419_v18  ;;  %v119_v18 = vld [vmem:[#allocation2 + $0x2d8] sm:$0xff] }
0x2b53   :  { %v6421_v62 = vmul.f32 %v11069_v16, %v11061_v56  ;;  %10525 = vmatpush3.bf16.xpose.msk.msra.mxu1 %vm11246_vm2, %v10520_v14  ;;  %10020 = vmatprep.subr.mxu0 %v117_v49 }
0x2b55   :  { %10018 = vmatmul.mubr.msk.f32.vlgmr.msra.gmra.mrb[50].mxu0 %vm3381_vm11, %v6421_v62 }
0x2b56   :  { %10021 = vmatpush3.msra.mxu0 %v117_v49  ;;  %v84_v49 = vld [vmem:[#allocation2 + $0x1c0] sm:$0xff] }
0x2b57   :  { %10025 = vmatprep.subr.mxu0 %v116_v26 }
0x2b5a   :  { %10054 = vmatmul.mubr.msk.f32.vlgmr.msra.gmra.mrb[54].mxu1 %vm314_vm1, %v6959_v13 }
0x2b80   :  { %v6765_v54 = vpop.xlane.xlu1 %6764  ;;  %v6768_v10 = vpop.xlane.xlu0 %6767 }
0x2b81   :  { %v6769_v6 = vsub.f32 %v6755_v44, %v6765_v54  ;;  %v6770_v21 = vsub.f32 %v6760_v42, %v6768_v10  ;;  %v77_v54 = vld [vmem:[#allocation2 + $0x188] sm:$0xff]  ;;  %v78_v10 = vld [vmem:[#allocation2 + $0x190] sm:$0xff] }
0x2b83   :  { %v6771_v22 = vmul.f32 1.442695, %v6769_v6  ;;  %v6773_v23 = vmul.f32 1.442695, %v6770_v21  ;;  %v10540_v6 = vpack.c.bf16 %v78_v10, %v77_v54  ;;  %v79_v21 = vld [vmem:[#allocation2 + $0x198] sm:$0xff] }
0x2b85   :  { %11070 = vpow2.f32 %v6771_v22  ;;  %v80_v22 = vld [vmem:[#allocation2 + $0x1a0] sm:$0xff] }
0x2b86   :  { %11072 = vpow2.f32 %v6773_v23 }
0x2b8f   :  { %v11071_v3 = vpop.eup %11070 }
0x2b90   :  { %v11073_v24 = vpop.eup %11072  ;;  %v6775_v25 = vsel %vm3381_vm11, %v11071_v3, 0.0 }
0x2b91   :  { %6776 = vadd.xlane.f32.xlu0 %v6775_v25  ;;  %v6778_v48 = vsel %vm3385_vm10, %v11073_v24, 0.0  ;;  %v83_v25 = vld [vmem:[#allocation2 + $0x1b8] sm:$0xff] }
0x2b92   :  { %6779 = vadd.xlane.f32.xlu1 %v6778_v48  ;;  %v10532_v48 = vpack.c.bf16 %v83_v25, %v82_v32 }
0x2b94   :  { %10533 = vmatprep.subr.bf16.mxu1 %v10532_v48 }
0x2b95   :  { %10535 = vmatpush3.bf16.msra.mxu1 %v10532_v48 }
0x2ba7   :  { %10850 = vrot.lane.b32.xlu0 %v11836_v41, %s11171_s11 }
0x2c1e   :  { %v6777_v27 = vpop.xlane.xlu0 %6776 }
0x2c1f   :  { %v6780_v8 = vpop.xlane.xlu1 %6779  ;;  %11074 = vrcp.f32 %v6777_v27 }
0x2c20   :  { %11076 = vrcp.f32 %v6780_v8 }
0x2c22   :  { %v10851_v28 = vpop.permute.xlu0 %10850 }
0x2c23   :  { %v10005_v0 = vpop.f32.mrb[48].mxu0  ;;  %v10853_v7 = vunpack.i.h.bf16 %v10851_v28  ;;  %v10852_v12 = vunpack.i.l.bf16 %v10851_v28 }
0x2c24   :  { %v6300_v29 = vpop.f32.mrb[49].mxu0 }
0x2c25   :  { %v10514_v56 = vpack.c.bf16 %v10853_v7, %v10852_v12 }
0x2c28   :  { %v10019_v31 = vpop.f32.mrb[50].mxu0 }
0x2c29   :  { %v6501_v35 = vpop.f32.mrb[51].mxu0  ;;  %v11075_v44 = vpop.eup %11074 }
0x2c2a   :  { %10022 = vmatprep.mubr.msk.f32.mxu0 %vm314_vm1, %v6501_v35  ;;  %v11077_v50 = vpop.eup %11076  ;;  %v6782_v38 = vmul.f32 %v11075_v44, %v11071_v3 }
0x2c2b   :  { %10023 = vmatmul.mubr.msk.f32.vlgmr.msra.gmra.mrb[52].mxu0 %vm314_vm1, %v10019_v31  ;;  %v6784_v51 = vmul.f32 %v11077_v50, %v11073_v24  ;;  %v10544_v24 = vpack.c.bf16 %v80_v22, %v79_v21  ;;  %v9108_v31 = vld [vmem:[#allocation2 + $0x180] ss:$0 sm:$0xff] }
0x2c2c   :  { %10026 = vmatpush3.msra.mxu0 %v116_v26  ;;  %10027 = vmatprep.mubr.msk.f32.mxu0 %vm314_vm1, %v6300_v29  ;;  %v85_v26 = vld [vmem:[#allocation2 + $0x1c8] sm:$0xff] }
0x2c2d   :  { %v10055_v30 = vpop.f32.mrb[54].mxu1  ;;  %10516 = vmatprep.subr.msk.bf16.mxu0 %vm11608_vm14, %v10514_v56  ;;  %v10536_v27 = vpack.c.bf16 %v85_v26, %v84_v49 }
0x2c2e   :  { %v7038_v42 = vpop.f32.mrb[55].mxu1  ;;  %v7044_v46 = vadd.f32 %v10055_v30, %v11576_v33 }
0x2c2f   :  { %v7039_v45 = vadd.f32 %v7038_v42, %v11579_v34  ;;  %v118_v34 = vld [vmem:[#allocation2 + $0x2d0] sm:$0xff]  ;;  %10537 = vmatprep.subr.bf16.mxu1 %v10536_v27 }
0x2c30   :  { %v7050_v52 = vsel %vm3385_vm10, %v7044_v46, -inf  ;;  %10539 = vmatpush3.bf16.msra.mxu1 %v10536_v27 }
0x2c31   :  { %v7047_v47 = vsel %vm3381_vm11, %v7039_v45, -inf }
0x2c32   :  { %7048 = vmax.xlane.f32.xlu1 %v7047_v47 }
0x2c33   :  { %10028 = vmatmul.mubr.msk.f32.vlgmr.msra.gmra.mrb[52].mxu0 %vm314_vm1, %v10005_v0  ;;  %v9102_v0 = vld [vmem:[#allocation2 + $0x290] ss:$0 sm:$0xff] }
0x2c34   :  { %10519 = vmatpush3.bf16.msk.msra.mxu0 %vm11608_vm14, %v10514_v56  ;;  %10041 = vmatprep.mubr.msk.f32.mxu0 %vm3381_vm11, %v6782_v38 }
0x2c35   :  { %10044 = vmatprep.subr.mxu0 %v118_v34 }
0x2c36   :  { %7051 = vmax.xlane.f32.xlu1 %v7050_v52 }
0x2c37   :  { %10042 = vmatmul.mubr.msk.f32.vlgmr.msra.gmra.mrb[54].mxu0 %vm3381_vm11, %v6784_v51 }
0x2c38   :  { %10045 = vmatpush3.msra.mxu0 %v118_v34 }
0x2cbf   :  { %v7049_v33 = vpop.xlane.xlu1 %7048 }
0x2cc0   :  { %v7053_v53 = vsub.f32 %v7039_v45, %v7049_v33 }
0x2cc2   :  { %v7055_v57 = vmul.f32 1.442695, %v7053_v53 }
0x2cc3   :  { %v7052_v39 = vpop.xlane.xlu1 %7051 }
0x2cc4   :  { %v7054_v55 = vsub.f32 %v7044_v46, %v7052_v39 }
0x2cc6   :  { %v7057_v58 = vmul.f32 1.442695, %v7054_v55 }
0x2cc8   :  { %11078 = vpow2.f32 %v7057_v58 }
0x2cc9   :  { %11080 = vpow2.f32 %v7055_v57 }
0x2cd2   :  { %v11079_v59 = vpop.eup %11078 }
0x2cd3   :  { %v7062_v60 = vsel %vm3385_vm10, %v11079_v59, 0.0  ;;  %v11081_v61 = vpop.eup %11080 }
0x2cd4   :  { %7063 = vadd.xlane.f32.xlu1 %v7062_v60  ;;  %v7059_v63 = vsel %vm3381_vm11, %v11081_v61, 0.0 }
0x2cd8   :  { %7060 = vadd.xlane.f32.xlu1 %v7059_v63  ;;  %v9103_v63 = vld [vmem:[#allocation2 + $0x268] ss:$0 sm:$0xff] }
0x2ce9   :  { %10855 = vrot.lane.b32.xlu1 %v11836_v41, %s11172_s12 }
0x2d0a   :  { %v10043_v1 = vpop.f32.mrb[54].mxu0 }
0x2d0b   :  { %v6864_v2 = vpop.f32.mrb[55].mxu0 }
0x2d0c   :  { %10046 = vmatprep.mubr.msk.f32.mxu0 %vm314_vm1, %v6864_v2  ;;  %v9104_v2 = vld [vmem:[#allocation2 + $0x260] ss:$0 sm:$0xff] }
0x2d0d   :  { %10047 = vmatmul.mubr.msk.f32.vlgmr.msra.gmra.mrb[52].mxu0 %vm314_vm1, %v10043_v1 }
0x2d61   :  { %v7064_v4 = vpop.xlane.xlu1 %7063 }
0x2d62   :  { %11082 = vrcp.f32 %v7064_v4 }
0x2d65   :  { %v7061_v9 = vpop.xlane.xlu1 %7060 }
0x2d66   :  { %11084 = vrcp.f32 %v7061_v9 }
0x2d69   :  { %v10856_v11 = vpop.permute.xlu1 %10855 }
0x2d6a   :  { %v10858_v14 = vunpack.i.h.bf16 %v10856_v11  ;;  %v10857_v19 = vunpack.i.l.bf16 %v10856_v11 }
0x2d6c   :  { %v10526_v20 = vpack.c.bf16 %v10858_v14, %v10857_v19  ;;  %v11083_v16 = vpop.eup %11082 }
0x2d6d   :  { %v7068_v13 = vmul.f32 %v11083_v16, %v11079_v59 }
0x2d6e   :  { %10528 = vmatprep.subr.msk.bf16.mxu0 %vm11608_vm14, %v10526_v20 }
0x2d6f   :  { %10531 = vmatpush3.bf16.msk.msra.mxu0 %vm11608_vm14, %v10526_v20 }
0x2d70   :  { %v11085_v41 = vpop.eup %11084  ;;  %10063 = vmatprep.subr.mxu0 %v119_v18 }
0x2d71   :  { %v7066_v62 = vmul.f32 %v11085_v41, %v11081_v61 }
0x2d73   :  { %10060 = vmatprep.mubr.msk.f32.mxu0 %vm3381_vm11, %v7066_v62 }
0x2d74   :  { %10061 = vmatmul.mubr.msk.f32.vlgmr.msra.gmra.mrb[56].mxu0 %vm3381_vm11, %v7068_v13  ;;  %v9105_v13 = vld [vmem:[#allocation2 + $0x1a8] ss:$0 sm:$0xff] }
0x2d75   :  { %10064 = vmatpush3.msra.mxu0 %v119_v18 }
0x2d76   :  { %10541 = vmatprep.subr.bf16.mxu0 %v10540_v6 }
0x2e47   :  { %v10062_v23 = vpop.f32.mrb[56].mxu0 }
0x2e48   :  { %v7148_v3 = vpop.f32.mrb[57].mxu0 }
0x2e49   :  { %10065 = vmatprep.mubr.msk.f32.mxu0 %vm314_vm1, %v7148_v3 }
0x2e4a   :  { %10066 = vmatmul.mubr.msk.f32.vlgmr.msra.gmra.mrb[52].mxu0 %vm314_vm1, %v10062_v23 }
0x2e4b   :  { %10543 = vmatpush3.bf16.msra.mxu0 %v10540_v6  ;;  %10087 = vmatprep.mubr.msk.f32.mxu0 %vm226_vm0, %v11680_v37 }
0x2e4c   :  { %10545 = vmatprep.subr.bf16.mxu0 %v10544_v24 }
0x2e4f   :  { %10547 = vmatpush3.bf16.msra.mxu0 %v10544_v24 }
0x2e52   :  { %10088 = vmatmul.mubr.msk.f32.vlgmr.msra.gmra.mrb[58].mxu0 %vm226_vm0, %v11682_v43 }
0x2f1d   :  { %v10067_v28 = vpop.f32.mrb[52].mxu0 }
0x2f1e   :  { %v7245_v29 = vadd.f32 %v10067_v28, %v9102_v0  ;;  %v7229_v8 = vpop.f32.mrb[53].mxu0 }
0x2f1f   :  { %v7244_v37 = vadd.f32 %v9102_v0, %v7229_v8 }
0x2f20   :  { %v7247_v7 = vadd.f32 %v7245_v29, %v11824_v36 }
0x2f21   :  { %v7246_v12 = vadd.f32 %v7244_v37, %v11820_v40 }
0x2f22   :  { %v7251_v43 = vsel %vm4436_vm15, %v7247_v7, 0.0 }
0x2f23   :  { %7252 = vadd.xlane.f32.xlu1 %v7251_v43  ;;  %v7248_v35 = vsel %vm226_vm0, %v7246_v12, 0.0 }
0x2f24   :  { %7249 = vadd.xlane.f32.xlu0 %v7248_v35 }
0x2f25   :  { %v10089_v56 = vpop.f32.mrb[58].mxu0 }
0x2f26   :  { %v7447_v30 = vadd.f32 %v10089_v56, %v9108_v31  ;;  %v7441_v42 = vpop.f32.mrb[59].mxu0 }
0x2f27   :  { %v7442_v44 = vadd.f32 %v9108_v31, %v7441_v42 }
0x2f29   :  { %v10548_v45 = vpack.c.bf16 %v7447_v30, %v7442_v44  ;;  %v11954_v46 = vpack.i.bf16 %v7447_v30, %v7442_v44 }
0x2f2b   :  { %10550 = vmatprep.subr.msk.bf16.mxu1 %vm11246_vm2, %v10548_v45 }
0x2fb0   :  { %v7253_v36 = vpop.xlane.xlu1 %7252 }
0x2fb1   :  { %v7255_v47 = vmul.f32 0.03125, %v7253_v36  ;;  %v7250_v40 = vpop.xlane.xlu0 %7249 }
0x2fb2   :  { %v7254_v50 = vmul.f32 0.03125, %v7250_v40 }
0x2fb3   :  { %v7257_v38 = vsub.f32 %v7247_v7, %v7255_v47 }
0x2fb4   :  { %v7256_v51 = vsub.f32 %v7246_v12, %v7254_v50 }
0x2fb5   :  { %v7259_v33 = vmul.f32 %v7257_v38, %v7257_v38 }
0x2fb6   :  { %v7258_v52 = vmul.f32 %v7256_v51, %v7256_v51 }
0x2fb7   :  { %v7263_v53 = vsel %vm4436_vm15, %v7259_v33, 0.0 }
0x2fb8   :  { %v7260_v34 = vsel %vm226_vm0, %v7258_v52, 0.0 }
0x2fb9   :  { %7261 = vadd.xlane.f32.xlu0 %v7260_v34 }
0x2fbd   :  { %7264 = vadd.xlane.f32.xlu0 %v7263_v53 }
0x2fd3   :  { %10860 = vrot.lane.b32.xlu0 %v11954_v46, %s11161_s29 }
0x3046   :  { %v7262_v39 = vpop.xlane.xlu0 %7261 }
0x3047   :  { %v7266_v55 = vmul.f32 0.03125, %v7262_v39 }
0x3049   :  { %v7268_v57 = vadd.f32 1e-05, %v7266_v55 }
0x304a   :  { %v7265_v58 = vpop.xlane.xlu0 %7264 }
0x304b   :  { %11086 = vrsqrt.f32 %v7268_v57  ;;  %v7267_v59 = vmul.f32 0.03125, %v7265_v58 }
0x304d   :  { %v7269_v60 = vadd.f32 1e-05, %v7267_v59 }
0x304e   :  { %v10861_v11 = vpop.permute.xlu0 %10860 }
0x304f   :  { %11088 = vrsqrt.f32 %v7269_v60  ;;  %v10863_v20 = vunpack.i.h.bf16 %v10861_v11  ;;  %v10862_v18 = vunpack.i.l.bf16 %v10861_v11 }
0x3051   :  { %v10558_v62 = vpack.c.bf16 %v10863_v20, %v10862_v18 }
0x3055   :  { %v11087_v61 = vpop.eup %11086 }
0x3056   :  { %v7272_v1 = vmul.f32 %v11087_v61, %v7256_v51 }
0x3058   :  { %v7278_v4 = vmul.f32 %v9103_v63, %v7272_v1 }
0x3059   :  { %v11089_v9 = vpop.eup %11088 }
0x305a   :  { %v7273_v14 = vmul.f32 %v11089_v9, %v7257_v38  ;;  %v11962_v19 = vadd.f32 %v9104_v2, %v7278_v4 }
0x305c   :  { %v7279_v16 = vmul.f32 %v9103_v63, %v7273_v14  ;;  %10076 = vmatprep.mubr.msk.f32.mxu1 %vm226_vm0, %v11962_v19 }
0x305e   :  { %v11966_v41 = vadd.f32 %v9104_v2, %v7279_v16 }
0x3060   :  { %10077 = vmatmul.mubr.msk.f32.vlgmr.msra.gmra.mrb[56].mxu1 %vm226_vm0, %v11966_v41 }
0x3061   :  { %10553 = vmatpush3.bf16.xpose.msk.msra.mxu1 %vm11246_vm2, %v10548_v45 }
0x3062   :  { %10560 = vmatprep.subr.msk.bf16.mxu1 %vm11246_vm2, %v10558_v62 }
0x3133   :  { %v10078_v54 = vpop.f32.mrb[56].mxu1 }
0x3134   :  { %v11974_v10 = vadd.f32 %v10078_v54, %v9105_v13  ;;  %v7362_v6 = vpop.f32.mrb[57].mxu1 }
0x3135   :  { %v11976_v21 = vadd.f32 %v9105_v13, %v7362_v6 }
0x3136   :  { %7648 = vrot.lane.b32.xlu0 %v11974_v10, %s11161_s29 }
0x3137   :  { %7646 = vrot.lane.b32.xlu1 %v11976_v21, %s11161_s29  ;;  %10094 = vmatprep.mubr.msk.f32.mxu1 %vm314_vm1, %v11976_v21 }
0x3138   :  { %10095 = vmatmul.mubr.msk.f32.vlgmr.msra.gmra.mrb[58].mxu1 %vm314_vm1, %v11974_v10 }
0x3139   :  { %10563 = vmatpush3.bf16.xpose.msk.msra.mxu1 %vm11246_vm2, %v10558_v62 }
0x313a   :  { %10865 = vrot.lane.b32.xlu0 %v11954_v46, %s11164_s4 }
0x313b   :  { %8008 = vrot.lane.b32.xlu1 %v11976_v21, %s11164_s4 }
0x313e   :  { %8010 = vrot.lane.b32.xlu0 %v11974_v10, %s11164_s4 }
0x31a8   :  { %v7649_v22 = vpop.permute.xlu0 %7648 }
0x31a9   :  { %v7647_v23 = vpop.permute.xlu1 %7646 }
0x31aa   :  { %10108 = vmatprep.mubr.msk.f32.mxu1 %vm314_vm1, %v7647_v23 }
0x31ab   :  { %10109 = vmatmul.mubr.msk.f32.vlgmr.msra.gmra.mrb[60].mxu1 %vm314_vm1, %v7649_v22 }
0x31ac   :  { %v10866_v3 = vpop.permute.xlu0 %10865 }
0x31ad   :  { %v10868_v24 = vunpack.i.h.bf16 %v10866_v3  ;;  %v10867_v32 = vunpack.i.l.bf16 %v10866_v3  ;;  %v8009_v25 = vpop.permute.xlu1 %8008 }
0x31ae   :  { %10132 = vmatprep.mubr.msk.f32.mxu1 %vm314_vm1, %v8009_v25 }
0x31af   :  { %v10568_v48 = vpack.c.bf16 %v10868_v24, %v10867_v32 }
0x31b0   :  { %v8011_v49 = vpop.permute.xlu0 %8010 }
0x31b1   :  { %10570 = vmatprep.subr.msk.bf16.mxu1 %vm11246_vm2, %v10568_v48 }
0x31b2   :  { %10573 = vmatpush3.bf16.xpose.msk.msra.mxu1 %vm11246_vm2, %v10568_v48 }
0x31b9   :  { %10133 = vmatmul.mubr.msk.f32.vlgmr.msra.gmra.mrb[62].mxu1 %vm314_vm1, %v8011_v49 }
0x320b   :  { %v10096_v26 = vpop.f32.mrb[58].mxu1 }
0x320c   :  { %v7534_v27 = vadd.f32 %v10096_v26, %v11741_v15  ;;  %v7528_v0 = vpop.f32.mrb[59].mxu1 }
0x320d   :  { %v7529_v28 = vadd.f32 %v7528_v0, %v11744_v5 }
0x320e   :  { %v7540_v29 = vsel %vm4732_vm7, %v7534_v27, -inf }
0x320f   :  { %7541 = vmax.xlane.f32.xlu0 %v7540_v29  ;;  %v7537_v8 = vsel %vm398_vm5, %v7529_v28, -inf }
0x3210   :  { %7538 = vmax.xlane.f32.xlu1 %v7537_v8 }
0x327e   :  { %v10110_v37 = vpop.f32.mrb[60].mxu1 }
0x327f   :  { %v7734_v7 = vadd.f32 %v10110_v37, %v11741_v15  ;;  %v7728_v12 = vpop.f32.mrb[61].mxu1 }
0x3280   :  { %v7729_v43 = vadd.f32 %v7728_v12, %v11744_v5 }
0x3281   :  { %v7740_v31 = vsel %vm4732_vm7, %v7734_v7, -inf }
0x3282   :  { %7741 = vmax.xlane.f32.xlu1 %v7740_v31  ;;  %v7737_v35 = vsel %vm398_vm5, %v7729_v43, -inf }
0x3283   :  { %7738 = vmax.xlane.f32.xlu0 %v7737_v35 }
0x328c   :  { %v10134_v56 = vpop.f32.mrb[62].mxu1 }
0x328d   :  { %v8090_v30 = vpop.f32.mrb[63].mxu1  ;;  %v8096_v9 = vadd.f32 %v10134_v56, %v11741_v15 }
0x328e   :  { %v8091_v4 = vadd.f32 %v8090_v30, %v11744_v5 }
0x328f   :  { %v8102_v14 = vsel %vm4732_vm7, %v8096_v9, -inf }
0x3290   :  { %v8099_v11 = vsel %vm398_vm5, %v8091_v4, -inf }
0x329c   :  { %v7542_v42 = vpop.xlane.xlu0 %7541 }
0x329d   :  { %v7544_v44 = vsub.f32 %v7534_v27, %v7542_v42  ;;  %v7539_v45 = vpop.xlane.xlu1 %7538 }
0x329e   :  { %v7543_v36 = vsub.f32 %v7529_v28, %v7539_v45  ;;  %v86_v45 = vld [vmem:[#allocation2 + $0x1d0] sm:$0xff] }
0x329f   :  { %v7547_v47 = vmul.f32 1.442695, %v7544_v44  ;;  %v87_v44 = vld [vmem:[#allocation2 + $0x1d8] sm:$0xff] }
0x32a0   :  { %v7545_v40 = vmul.f32 1.442695, %v7543_v36 }
0x32a1   :  { %11090 = vpow2.f32 %v7547_v47 }
0x32a2   :  { %11092 = vpow2.f32 %v7545_v40 }
0x32ab   :  { %v11091_v50 = vpop.eup %11090 }
0x32ac   :  { %v11093_v38 = vpop.eup %11092  ;;  %v7552_v51 = vsel %vm4732_vm7, %v11091_v50, 0.0 }
0x32ad   :  { %7553 = vadd.xlane.f32.xlu1 %v7552_v51  ;;  %v7549_v52 = vsel %vm398_vm5, %v11093_v38, 0.0 }
0x32ae   :  { %7550 = vadd.xlane.f32.xlu0 %v7549_v52 }
0x330f   :  { %v7742_v34 = vpop.xlane.xlu1 %7741 }
0x3310   :  { %v7744_v33 = vsub.f32 %v7734_v7, %v7742_v34  ;;  %v7739_v53 = vpop.xlane.xlu0 %7738 }
0x3311   :  { %v7743_v39 = vsub.f32 %v7729_v43, %v7739_v53 }
0x3312   :  { %v7747_v55 = vmul.f32 1.442695, %v7744_v33 }
0x3313   :  { %v7745_v57 = vmul.f32 1.442695, %v7743_v39 }
0x3314   :  { %11094 = vpow2.f32 %v7747_v55 }
0x3315   :  { %11096 = vpow2.f32 %v7745_v57 }
0x331e   :  { %v11095_v58 = vpop.eup %11094 }
0x331f   :  { %v11097_v59 = vpop.eup %11096  ;;  %v7752_v60 = vsel %vm4732_vm7, %v11095_v58, 0.0 }
0x3320   :  { %7753 = vadd.xlane.f32.xlu1 %v7752_v60  ;;  %v7749_v61 = vsel %vm398_vm5, %v11097_v59, 0.0 }
0x3321   :  { %7750 = vadd.xlane.f32.xlu0 %v7749_v61 }
0x3331   :  { %10875 = vrot.lane.b32.xlu1 %v11954_v46, %s11163_s30 }
0x3335   :  { %10880 = vrot.lane.b32.xlu1 %v11954_v46, %s11170_s10 }
0x3337   :  { %10870 = vrot.lane.b32.xlu0 %v11954_v46, %s11162_s1 }
0x3339   :  { %8293 = vrot.lane.b32.xlu1 %v11974_v10, %s11170_s10 }
0x333a   :  { %v7554_v20 = vpop.xlane.xlu1 %7553 }
0x333b   :  { %8291 = vrot.lane.b32.xlu0 %v11976_v21, %s11170_s10  ;;  %v7551_v63 = vpop.xlane.xlu0 %7550 }
0x333c   :  { %11098 = vrcp.f32 %v7551_v63 }
0x333d   :  { %11100 = vrcp.f32 %v7554_v20 }
0x3346   :  { %v11099_v1 = vpop.eup %11098 }
0x3347   :  { %v7556_v2 = vmul.f32 %v11099_v1, %v11093_v38  ;;  %v11101_v3 = vpop.eup %11100 }
0x3348   :  { %v7558_v27 = vmul.f32 %v11101_v3, %v11091_v50 }
0x3349   :  { %10101 = vmatprep.mubr.msk.f32.mxu0 %vm398_vm5, %v7556_v2 }
0x335a   :  { %8100 = vmax.xlane.f32.xlu0 %v8099_v11 }
0x335d   :  { %8103 = vmax.xlane.f32.xlu1 %v8102_v14 }
0x336e   :  { %10885 = vrot.lane.b32.xlu1 %v11954_v46, %s11165_s5 }
0x33ad   :  { %v7754_v18 = vpop.xlane.xlu1 %7753 }
0x33ae   :  { %v7751_v16 = vpop.xlane.xlu0 %7750 }
0x33af   :  { %11102 = vrcp.f32 %v7751_v16 }
0x33b0   :  { %11104 = vrcp.f32 %v7754_v18 }
0x33b1   :  { %v10876_v62 = vpop.permute.xlu1 %10875 }
0x33b2   :  { %v10871_v13 = vpop.permute.xlu0 %10870  ;;  %v10878_v54 = vunpack.i.h.bf16 %v10876_v62  ;;  %v10877_v10 = vunpack.i.l.bf16 %v10876_v62 }
0x33b3   :  { %v10873_v6 = vunpack.i.h.bf16 %v10871_v13  ;;  %v10872_v21 = vunpack.i.l.bf16 %v10871_v13 }
0x33b4   :  { %v10564_v48 = vpack.c.bf16 %v10878_v54, %v10877_v10 }
0x33b5   :  { %v10554_v22 = vpack.c.bf16 %v10873_v6, %v10872_v21  ;;  %v10881_v23 = vpop.permute.xlu1 %10880 }
0x33b6   :  { %v10883_v24 = vunpack.i.h.bf16 %v10881_v23  ;;  %v10882_v32 = vunpack.i.l.bf16 %v10881_v23  ;;  %v8292_v25 = vpop.permute.xlu0 %8291 }
0x33b7   :  { %10555 = vmatprep.subr.bf16.mxu0 %v10554_v22  ;;  %10151 = vmatprep.mubr.msk.f32.mxu1 %vm314_vm1, %v8292_v25 }
0x33b8   :  { %v10578_v49 = vpack.c.bf16 %v10883_v24, %v10882_v32  ;;  %10557 = vmatpush3.bf16.msra.mxu0 %v10554_v22  ;;  %v89_v32 = vld [vmem:[#allocation2 + $0x1e8] sm:$0xff] }
0x33b9   :  { %v11103_v26 = vpop.eup %11102  ;;  %10565 = vmatprep.subr.bf16.mxu0 %v10564_v48  ;;  %v8294_v8 = vpop.permute.xlu1 %8293 }
0x33ba   :  { %v11105_v0 = vpop.eup %11104  ;;  %10580 = vmatprep.subr.msk.bf16.mxu1 %vm11246_vm2, %v10578_v49  ;;  %v7756_v28 = vmul.f32 %v11103_v26, %v11097_v59 }
0x33bb   :  { %10102 = vmatmul.mubr.msk.f32.vlgmr.msra.gmra.mrb[60].mxu0 %vm398_vm5, %v7558_v27  ;;  %10583 = vmatpush3.bf16.xpose.msk.msra.mxu1 %vm11246_vm2, %v10578_v49  ;;  %v7758_v29 = vmul.f32 %v11105_v0, %v11095_v58  ;;  %v9143_v0 = vld [vmem:[#allocation2 + $0x178] ss:$0 sm:$0xff] }
0x33bc   :  { %10567 = vmatpush3.bf16.msra.mxu0 %v10564_v48  ;;  %10115 = vmatprep.mubr.msk.f32.mxu0 %vm398_vm5, %v7756_v28 }
0x33bd   :  { %10118 = vmatprep.subr.mxu0 %v87_v44 }
0x33bf   :  { %10116 = vmatmul.mubr.msk.f32.vlgmr.msra.gmra.mrb[62].mxu0 %vm398_vm5, %v7758_v29 }
0x33c0   :  { %10119 = vmatpush3.msra.mxu0 %v87_v44 }
0x33c1   :  { %10123 = vmatprep.subr.mxu0 %v86_v45 }
0x33c2   :  { %10152 = vmatmul.mubr.msk.f32.vlgmr.msra.gmra.mrb[64].mxu1 %vm314_vm1, %v8294_v8 }
0x33e7   :  { %v8101_v37 = vpop.xlane.xlu0 %8100 }
0x33e8   :  { %v8105_v7 = vsub.f32 %v8091_v4, %v8101_v37 }
0x33ea   :  { %v8107_v12 = vmul.f32 1.442695, %v8105_v7  ;;  %v8104_v43 = vpop.xlane.xlu1 %8103 }
0x33eb   :  { %v8106_v31 = vsub.f32 %v8096_v9, %v8104_v43 }
0x33ec   :  { %11106 = vpow2.f32 %v8107_v12 }
0x33ed   :  { %v8109_v35 = vmul.f32 1.442695, %v8106_v31 }
0x33ee   :  { %v10886_v47 = vpop.permute.xlu1 %10885 }
0x33ef   :  { %11108 = vpow2.f32 %v8109_v35  ;;  %v10888_v51 = vunpack.i.h.bf16 %v10886_v47  ;;  %v10887_v52 = vunpack.i.l.bf16 %v10886_v47 }
0x33f1   :  { %v10574_v53 = vpack.c.bf16 %v10888_v51, %v10887_v52  ;;  %v94_v51 = vld [vmem:[#allocation2 + $0x210] sm:$0xff] }
0x33f6   :  { %v11107_v56 = vpop.eup %11106 }
0x33f7   :  { %v8111_v17 = vsel %vm398_vm5, %v11107_v56, 0.0 }
0x33f8   :  { %8112 = vadd.xlane.f32.xlu0 %v8111_v17 }
0x33f9   :  { %v11109_v30 = vpop.eup %11108 }
0x33fa   :  { %v8114_v42 = vsel %vm4732_vm7, %v11109_v30, 0.0 }
0x33fc   :  { %8115 = vadd.xlane.f32.xlu0 %v8114_v42 }
0x3485   :  { %v8113_v36 = vpop.xlane.xlu0 %8112 }
0x3486   :  { %11110 = vrcp.f32 %v8113_v36 }
0x3489   :  { %v8116_v50 = vpop.xlane.xlu0 %8115 }
0x348a   :  { %11112 = vrcp.f32 %v8116_v50 }
0x348e   :  { %v10103_v40 = vpop.f32.mrb[60].mxu0 }
0x348f   :  { %v7637_v38 = vpop.f32.mrb[61].mxu0 }
0x3490   :  { %v11111_v60 = vpop.eup %11110 }
0x3491   :  { %v8118_v1 = vmul.f32 %v11111_v60, %v11107_v56 }
0x3492   :  { %v10117_v34 = vpop.f32.mrb[62].mxu0 }
0x3493   :  { %v7837_v33 = vpop.f32.mrb[63].mxu0 }
0x3494   :  { %10120 = vmatprep.mubr.msk.f32.mxu0 %vm314_vm1, %v7837_v33  ;;  %v11113_v61 = vpop.eup %11112  ;;  %v97_v33 = vld [vmem:[#allocation2 + $0x228] sm:$0xff] }
0x3495   :  { %10121 = vmatmul.mubr.msk.f32.vlgmr.msra.gmra.mrb[64].mxu0 %vm314_vm1, %v10117_v34  ;;  %v10153_v39 = vpop.f32.mrb[64].mxu1  ;;  %v8120_v2 = vmul.f32 %v11113_v61, %v11109_v30  ;;  %v96_v34 = vld [vmem:[#allocation2 + $0x220] sm:$0xff] }
0x3496   :  { %10124 = vmatpush3.msra.mxu0 %v86_v45  ;;  %10125 = vmatprep.mubr.msk.f32.mxu0 %vm314_vm1, %v7637_v38  ;;  %v8373_v55 = vpop.f32.mrb[65].mxu1  ;;  %v8379_v58 = vadd.f32 %v10153_v39, %v11741_v15  ;;  %v93_v38 = vld [vmem:[#allocation2 + $0x208] sm:$0xff]  ;;  %v10596_v39 = vpack.c.bf16 %v97_v33, %v96_v34 }
0x3497   :  { %10575 = vmatprep.subr.bf16.mxu0 %v10574_v53  ;;  %v8374_v57 = vadd.f32 %v8373_v55, %v11744_v5  ;;  %v88_v5 = vld [vmem:[#allocation2 + $0x1e0] sm:$0xff]  ;;  %v10592_v52 = vpack.c.bf16 %v94_v51, %v93_v38  ;;  %v99_v55 = vld [vmem:[#allocation2 + $0x238] sm:$0xff]  ;;  %v9152_v38 = vld [vmem:[#allocation2 + $0x288] ss:$0 sm:$0xff] }
0x3498   :  { %v8385_v63 = vsel %vm4732_vm7, %v8379_v58, -inf }
0x3499   :  { %v8382_v59 = vsel %vm398_vm5, %v8374_v57, -inf }
0x349a   :  { %8383 = vmax.xlane.f32.xlu0 %v8382_v59  ;;  %v101_v59 = vld [vmem:[#allocation2 + $0x248] sm:$0xff] }
0x349d   :  { %10126 = vmatmul.mubr.msk.f32.vlgmr.msra.gmra.mrb[64].mxu0 %vm314_vm1, %v10103_v40  ;;  %v92_v40 = vld [vmem:[#allocation2 + $0x200] sm:$0xff] }
0x349e   :  { %10577 = vmatpush3.bf16.msra.mxu0 %v10574_v53  ;;  %8386 = vmax.xlane.f32.xlu0 %v8385_v63  ;;  %v98_v53 = vld [vmem:[#allocation2 + $0x230] sm:$0xff] }
0x349f   :  { %10139 = vmatprep.mubr.msk.f32.mxu0 %vm398_vm5, %v8118_v1  ;;  %10142 = vmatprep.subr.mxu0 %v88_v5 }
0x34a1   :  { %10140 = vmatmul.mubr.msk.f32.vlgmr.msra.gmra.mrb[66].mxu0 %vm398_vm5, %v8120_v2 }
0x34a2   :  { %10143 = vmatpush3.msra.mxu0 %v88_v5 }
0x3527   :  { %v8384_v15 = vpop.xlane.xlu0 %8383 }
0x3528   :  { %v8388_v4 = vsub.f32 %v8374_v57, %v8384_v15  ;;  %v10600_v57 = vpack.c.bf16 %v99_v55, %v98_v53 }
0x352a   :  { %v8390_v14 = vmul.f32 1.442695, %v8388_v4 }
0x352b   :  { %v8387_v9 = vpop.xlane.xlu0 %8386 }
0x352c   :  { %v8389_v11 = vsub.f32 %v8379_v58, %v8387_v9  ;;  %v100_v58 = vld [vmem:[#allocation2 + $0x240] sm:$0xff]  ;;  %v9144_v9 = vld [vmem:[#allocation2 + $0x278] ss:$0 sm:$0xff] }
0x352d   :  { %v10604_v60 = vpack.c.bf16 %v101_v59, %v100_v58 }
0x352e   :  { %v8392_v20 = vmul.f32 1.442695, %v8389_v11 }
0x3530   :  { %11114 = vpow2.f32 %v8392_v20 }
0x3531   :  { %11116 = vpow2.f32 %v8390_v14  ;;  %v9145_v14 = vld [vmem:[#allocation2 + $0x270] ss:$0 sm:$0xff] }
0x353a   :  { %v11115_v18 = vpop.eup %11114 }
0x353b   :  { %v8397_v16 = vsel %vm4732_vm7, %v11115_v18, 0.0  ;;  %v11117_v62 = vpop.eup %11116 }
0x353c   :  { %8398 = vadd.xlane.f32.xlu0 %v8397_v16  ;;  %v8394_v13 = vsel %vm398_vm5, %v11117_v62, 0.0 }
0x3540   :  { %8395 = vadd.xlane.f32.xlu0 %v8394_v13 }
0x3556   :  { %10890 = vrot.lane.b32.xlu0 %v11954_v46, %s11168_s8 }
0x3574   :  { %v10141_v54 = vpop.f32.mrb[66].mxu0 }
0x3575   :  { %v8199_v10 = vpop.f32.mrb[67].mxu0 }
0x3576   :  { %10144 = vmatprep.mubr.msk.f32.mxu0 %vm314_vm1, %v8199_v10  ;;  %v102_v10 = vld [vmem:[#allocation2 + $0x250] sm:$0xff] }
0x3577   :  { %10145 = vmatmul.mubr.msk.f32.vlgmr.msra.gmra.mrb[64].mxu0 %vm314_vm1, %v10141_v54 }
0x35c9   :  { %v8399_v6 = vpop.xlane.xlu0 %8398 }
0x35ca   :  { %11118 = vrcp.f32 %v8399_v6  ;;  %v103_v6 = vld [vmem:[#allocation2 + $0x258] sm:$0xff] }
0x35cd   :  { %v8396_v21 = vpop.xlane.xlu0 %8395 }
0x35ce   :  { %11120 = vrcp.f32 %v8396_v21  ;;  %v10608_v21 = vpack.c.bf16 %v103_v6, %v102_v10  ;;  %v9154_v10 = vld [vmem:[#allocation2 + $0x8] ss:$0 sm:$0xff] }
0x35d1   :  { %v10891_v22 = vpop.permute.xlu0 %10890 }
0x35d2   :  { %v10893_v23 = vunpack.i.h.bf16 %v10891_v22  ;;  %v10892_v3 = vunpack.i.l.bf16 %v10891_v22  ;;  %v9146_v22 = vld [vmem:[#allocation2 + $0x1f0] ss:$0 sm:$0xff] }
0x35d4   :  { %v10584_v24 = vpack.c.bf16 %v10893_v23, %v10892_v3  ;;  %v11119_v25 = vpop.eup %11118 }
0x35d5   :  { %v8403_v49 = vmul.f32 %v11119_v25, %v11115_v18 }
0x35d6   :  { %10585 = vmatprep.subr.bf16.mxu0 %v10584_v24 }
0x35d7   :  { %10587 = vmatpush3.bf16.msra.mxu0 %v10584_v24 }
0x35d8   :  { %v11121_v48 = vpop.eup %11120  ;;  %10161 = vmatprep.subr.mxu0 %v89_v32 }
0x35d9   :  { %v8401_v46 = vmul.f32 %v11121_v48, %v11117_v62 }
0x35db   :  { %10158 = vmatprep.mubr.msk.f32.mxu0 %vm398_vm5, %v8401_v46  ;;  %v9149_v46 = vld [vmem:[#allocation2 + $0x218] ss:$0 sm:$0xff] }
0x35dc   :  { %10159 = vmatmul.mubr.msk.f32.vlgmr.msra.gmra.mrb[68].mxu0 %vm398_vm5, %v8403_v49 }
0x35dd   :  { %10162 = vmatpush3.msra.mxu0 %v89_v32 }
0x35de   :  { %10597 = vmatprep.subr.bf16.mxu0 %v10596_v39 }
0x36af   :  { %v10160_v26 = vpop.f32.mrb[68].mxu0 }
0x36b0   :  { %v8482_v27 = vpop.f32.mrb[69].mxu0 }
0x36b1   :  { %10163 = vmatprep.mubr.msk.f32.mxu0 %vm314_vm1, %v8482_v27 }
0x36b2   :  { %10164 = vmatmul.mubr.msk.f32.vlgmr.msra.gmra.mrb[64].mxu0 %vm314_vm1, %v10160_v26 }
0x36b3   :  { %10599 = vmatpush3.bf16.msra.mxu0 %v10596_v39 }
0x36b4   :  { %10601 = vmatprep.subr.bf16.mxu0 %v10600_v57 }
0x36b7   :  { %10603 = vmatpush3.bf16.msra.mxu0 %v10600_v57 }
0x36b8   :  { %10605 = vmatprep.subr.bf16.mxu0 %v10604_v60 }
0x36bb   :  { %10607 = vmatpush3.bf16.msra.mxu0 %v10604_v60 }
0x36bc   :  { %10609 = vmatprep.subr.bf16.mxu0 %v10608_v21 }
0x36bf   :  { %10611 = vmatpush3.bf16.msra.mxu0 %v10608_v21  ;;  %v9155_v21 = vld [vmem:[#allocation2] ss:$0 sm:$0xff] }
0x3785   :  { %v10165_v28 = vpop.f32.mrb[64].mxu0 }
0x3786   :  { %v8579_v29 = vadd.f32 %v10165_v28, %v9143_v0  ;;  %v8563_v8 = vpop.f32.mrb[65].mxu0 }
0x3787   :  { %v8578_v37 = vadd.f32 %v9143_v0, %v8563_v8 }
0x3788   :  { %v8581_v7 = vadd.f32 %v8579_v29, %v11966_v41 }
0x3789   :  { %v8580_v12 = vadd.f32 %v8578_v37, %v11962_v19  ;;  %v91_v19 = vld [vmem:[#allocation2 + $0x1f8] sm:$0xff] }
0x378a   :  { %v8585_v43 = vsel %vm4436_vm15, %v8581_v7, 0.0  ;;  %v10588_v50 = vpack.c.bf16 %v92_v40, %v91_v19 }
0x378b   :  { %8586 = vadd.xlane.f32.xlu0 %v8585_v43  ;;  %v8582_v31 = vsel %vm226_vm0, %v8580_v12, 0.0 }
0x378c   :  { %8583 = vadd.xlane.f32.xlu1 %v8582_v31  ;;  %10589 = vmatprep.subr.bf16.mxu1 %v10588_v50 }
0x378d   :  { %10591 = vmatpush3.bf16.msra.mxu1 %v10588_v50 }
0x378e   :  { %10593 = vmatprep.subr.bf16.mxu1 %v10592_v52 }
0x3791   :  { %10595 = vmatpush3.bf16.msra.mxu1 %v10592_v52  ;;  %v9153_v52 = vld [vmem:[#allocation2 + $0x280] ss:$0 sm:$0xff] }
0x3818   :  { %v8587_v35 = vpop.xlane.xlu0 %8586 }
0x3819   :  { %v8589_v56 = vmul.f32 0.03125, %v8587_v35  ;;  %v8584_v17 = vpop.xlane.xlu1 %8583 }
0x381a   :  { %v8588_v30 = vmul.f32 0.03125, %v8584_v17 }
0x381b   :  { %v8591_v42 = vsub.f32 %v8581_v7, %v8589_v56 }
0x381c   :  { %v8590_v44 = vsub.f32 %v8580_v12, %v8588_v30 }
0x381d   :  { %v8593_v47 = vmul.f32 %v8591_v42, %v8591_v42 }
0x381e   :  { %v8592_v45 = vmul.f32 %v8590_v44, %v8590_v44 }
0x381f   :  { %v8597_v41 = vsel %vm4436_vm15, %v8593_v47, 0.0 }
0x3820   :  { %v8594_v36 = vsel %vm226_vm0, %v8592_v45, 0.0 }
0x3821   :  { %8595 = vadd.xlane.f32.xlu1 %v8594_v36 }
0x3825   :  { %8598 = vadd.xlane.f32.xlu1 %v8597_v41 }
0x38ae   :  { %v8596_v61 = vpop.xlane.xlu1 %8595 }
0x38af   :  { %v8600_v63 = vmul.f32 0.03125, %v8596_v61 }
0x38b1   :  { %v8602_v1 = vadd.f32 1e-05, %v8600_v63 }
0x38b2   :  { %v8599_v2 = vpop.xlane.xlu1 %8598 }
0x38b3   :  { %11122 = vrsqrt.f32 %v8602_v1  ;;  %v8601_v5 = vmul.f32 0.03125, %v8599_v2 }
0x38b5   :  { %v8603_v15 = vadd.f32 1e-05, %v8601_v5 }
0x38b7   :  { %11124 = vrsqrt.f32 %v8603_v15 }
0x38bd   :  { %v11123_v4 = vpop.eup %11122 }
0x38be   :  { %v8606_v11 = vmul.f32 %v11123_v4, %v8590_v44 }
0x38c0   :  { %v8612_v20 = vmul.f32 %v9144_v9, %v8606_v11 }
0x38c1   :  { %v11125_v18 = vpop.eup %11124 }
0x38c2   :  { %v8607_v16 = vmul.f32 %v11125_v18, %v8591_v42  ;;  %v8618_v62 = vadd.f32 %v9145_v14, %v8612_v20 }
0x38c4   :  { %v8613_v13 = vmul.f32 %v9144_v9, %v8607_v16  ;;  %10174 = vmatprep.mubr.msk.f32.mxu1 %vm226_vm0, %v8618_v62 }
0x38c6   :  { %v8619_v54 = vadd.f32 %v9145_v14, %v8613_v13 }
0x38c8   :  { %10175 = vmatmul.mubr.msk.f32.vlgmr.msra.gmra.mrb[66].mxu1 %vm226_vm0, %v8619_v54 }
0x399b   :  { %v10176_v23 = vpop.f32.mrb[66].mxu1 }
0x399c   :  { %v8702_v3 = vadd.f32 %v10176_v23, %v9146_v22  ;;  %v8696_v24 = vpop.f32.mrb[67].mxu1 }
0x399d   :  { %v8697_v32 = vadd.f32 %v9146_v22, %v8696_v24 }
0x399e   :  { %v8706_v48 = vmax.f32 %v8702_v3, 0.0 }
0x399f   :  { %v8705_v25 = vmax.f32 %v8697_v32, 0.0 }
0x39a1   :  { %10193 = vmatprep.mubr.msk.f32.mxu0 %vm1574_vm6, %v8705_v25 }
0x39a2   :  { %10194 = vmatmul.mubr.msk.f32.vlgmr.msra.gmra.mrb[70].mxu0 %vm1574_vm6, %v8706_v48 }
0x3a75   :  { %v10195_v49 = vpop.f32.mrb[70].mxu0 }
0x3a76   :  { %v8783_v26 = vpop.f32.mrb[71].mxu0  ;;  %v8789_v27 = vadd.f32 %v10195_v49, %v9149_v46 }
0x3a77   :  { %v8784_v0 = vadd.f32 %v9149_v46, %v8783_v26 }
0x3a78   :  { %v8793_v29 = vadd.f32 %v8789_v27, %v8619_v54 }
0x3a79   :  { %v8792_v28 = vadd.f32 %v8784_v0, %v8618_v62 }
0x3a7a   :  { %v8797_v37 = vsel %vm4436_vm15, %v8793_v29, 0.0 }
0x3a7b   :  { %v8794_v8 = vsel %vm226_vm0, %v8792_v28, 0.0 }
0x3a7c   :  { %8795 = vadd.xlane.f32.xlu1 %v8794_v8 }
0x3a80   :  { %8798 = vadd.xlane.f32.xlu1 %v8797_v37 }
0x3b09   :  { %v8796_v7 = vpop.xlane.xlu1 %8795 }
0x3b0a   :  { %v8800_v12 = vmul.f32 0.03125, %v8796_v7 }
0x3b0c   :  { %v8802_v43 = vsub.f32 %v8792_v28, %v8800_v12 }
0x3b0d   :  { %v8799_v31 = vpop.xlane.xlu1 %8798 }
0x3b0e   :  { %v8801_v35 = vmul.f32 0.03125, %v8799_v31  ;;  %v8804_v56 = vmul.f32 %v8802_v43, %v8802_v43 }
0x3b10   :  { %v8803_v17 = vsub.f32 %v8793_v29, %v8801_v35  ;;  %v8806_v30 = vsel %vm226_vm0, %v8804_v56, 0.0 }
0x3b11   :  { %8807 = vadd.xlane.f32.xlu1 %v8806_v30 }
0x3b12   :  { %v8805_v42 = vmul.f32 %v8803_v17, %v8803_v17 }
0x3b14   :  { %v8809_v44 = vsel %vm4436_vm15, %v8805_v42, 0.0 }
0x3b15   :  { %8810 = vadd.xlane.f32.xlu0 %v8809_v44 }
0x3b9e   :  { %v8808_v45 = vpop.xlane.xlu1 %8807 }
0x3b9f   :  { %v8812_v36 = vmul.f32 0.03125, %v8808_v45 }
0x3ba1   :  { %v8814_v47 = vadd.f32 1e-05, %v8812_v36 }
0x3ba2   :  { %v8811_v41 = vpop.xlane.xlu0 %8810 }
0x3ba3   :  { %11126 = vrsqrt.f32 %v8814_v47  ;;  %v8813_v19 = vmul.f32 0.03125, %v8811_v41 }
0x3ba5   :  { %v8815_v40 = vadd.f32 1e-05, %v8813_v19 }
0x3ba7   :  { %11128 = vrsqrt.f32 %v8815_v40 }
0x3bad   :  { %v11127_v50 = vpop.eup %11126 }
0x3bae   :  { %v8818_v51 = vmul.f32 %v11127_v50, %v8802_v43 }
0x3bb0   :  { %v8824_v34 = vmul.f32 %v9152_v38, %v8818_v51 }
0x3bb1   :  { %v11129_v33 = vpop.eup %11128 }
0x3bb2   :  { %v8830_v53 = vadd.f32 %v9153_v52, %v8824_v34  ;;  %v8819_v39 = vmul.f32 %v11129_v33, %v8803_v17 }
0x3bb4   :  { %v8832_v55 = vsel %vm226_vm0, %v8830_v53, 0.0  ;;  %v8825_v57 = vmul.f32 %v9152_v38, %v8819_v39 }
0x3bb5   :  { %8833 = vadd.xlane.f32.xlu1 %v8832_v55 }
0x3bb6   :  { %v8831_v58 = vadd.f32 %v9153_v52, %v8825_v57 }
0x3bb8   :  { %v8835_v59 = vsel %vm4436_vm15, %v8831_v58, 0.0 }
0x3bb9   :  { %8836 = vadd.xlane.f32.xlu0 %v8835_v59 }
0x3c42   :  { %v8834_v60 = vpop.xlane.xlu1 %8833 }
0x3c43   :  { %v8838_v61 = vmul.f32 0.03125, %v8834_v60 }
0x3c45   :  { %v8840_v63 = vsub.f32 %v8830_v53, %v8838_v61 }
0x3c46   :  { %v8837_v1 = vpop.xlane.xlu0 %8836 }
0x3c47   :  { %v8839_v2 = vmul.f32 0.03125, %v8837_v1  ;;  %v8842_v5 = vmul.f32 %v8840_v63, %v8840_v63 }
0x3c49   :  { %v8841_v15 = vsub.f32 %v8831_v58, %v8839_v2  ;;  %v8844_v4 = vsel %vm226_vm0, %v8842_v5, 0.0 }
0x3c4a   :  { %8845 = vadd.xlane.f32.xlu1 %v8844_v4 }
0x3c4b   :  { %v8843_v9 = vmul.f32 %v8841_v15, %v8841_v15 }
0x3c4d   :  { %v8847_v11 = vsel %vm4436_vm15, %v8843_v9, 0.0 }
0x3c4e   :  { %8848 = vadd.xlane.f32.xlu0 %v8847_v11 }
0x3cd7   :  { %v8846_v14 = vpop.xlane.xlu1 %8845 }
0x3cd8   :  { %v8850_v20 = vmul.f32 0.03125, %v8846_v14 }
0x3cda   :  { %v8852_v18 = vadd.f32 1e-05, %v8850_v20 }
0x3cdb   :  { %v8849_v16 = vpop.xlane.xlu0 %8848 }
0x3cdc   :  { %11130 = vrsqrt.f32 %v8852_v18  ;;  %v8851_v62 = vmul.f32 0.03125, %v8849_v16 }
0x3cde   :  { %v8853_v13 = vadd.f32 1e-05, %v8851_v62 }
0x3ce0   :  { %11132 = vrsqrt.f32 %v8853_v13 }
0x3ce6   :  { %v11131_v54 = vpop.eup %11130 }
0x3ce7   :  { %v8856_v6 = vmul.f32 %v11131_v54, %v8840_v63 }
0x3ce9   :  { %v8862_v22 = vmul.f32 %v9154_v10, %v8856_v6 }
0x3cea   :  { %v11133_v23 = vpop.eup %11132 }
0x3ceb   :  { %v8868_v3 = vadd.f32 %v9155_v21, %v8862_v22  ;;  %v8857_v24 = vmul.f32 %v11133_v23, %v8841_v15 }
0x3ced   :  { %8870 = vst.msk [vmem:[%s12091_s3] sm:$0xff] %vm226_vm0, %v8868_v3  ;;  %v8863_v32 = vmul.f32 %v9154_v10, %v8857_v24 }
0x3cef   :  { %v8869_v25 = vadd.f32 %v9155_v21, %v8863_v32 }
0x3cf1   :  { %8871 = vst.msk [vmem:[%s12091_s3 + $0x8] sm:$0x3] %vm4436_vm15, %v8869_v25 }
0x3cf2   :  { %8876 = vsyncpa [#allocation3], 1 }

</bundles_post_ra>
